<compile_context>
chip_gen: v7x
topology: tpu7x:2x2x1
jax: 0.10.0
libtpu: 0.0.40
codegen_flags: <defaults>
</compile_context>

<pallas_src>
import functools
import math

import numpy as np
import jax
import jax.numpy as jnp
from jax.experimental import pallas as pl
from jax.experimental.pallas import tpu as pltpu


def _fused_upsample_kernel(x_ref, w0_ref, w1_ref, b_ref, o_ref):
    """One (batch, row-tile) step of the phase-space transposed conv.

    x_ref : (1, T*W2, 2*Cinp)   row-pair input: [.., y*W2 + x, a*Cinp + ci]
                                = xpad[b, y + a, x, ci]
    w0_ref: (2*Cinp, 4*Coutp)   tap matrix for column offset c = 0
    w1_ref: (2*Cinp, 4*Coutp)   tap matrix for column offset c = 1
    b_ref : (1, 4*Coutp)        bias, replicated over the 4 phase groups
    o_ref : (1, T*W2, 4*Coutp)  phase output: [..., (py*2 + px)*Coutp + co]
    """
    x0 = x_ref[0, :, :]
    # Column tap c=1 needs the window one column to the right.  A circular
    # shift by one flattened-spatial element does it: the wrapped / cross-row
    # element only lands at x = W+1, which the wrapper crops away.
    # (pltpu.roll on the XLU would also work; the concatenate form keeps the
    # shift semantics explicit.)
    x1 = jnp.concatenate([x0[1:, :], x0[:1, :]], axis=0)
    acc = jnp.dot(x0, w0_ref[...], preferred_element_type=jnp.float32)
    acc = acc + jnp.dot(x1, w1_ref[...], preferred_element_type=jnp.float32)
    o_ref[0, :, :] = (acc + b_ref[...]).astype(o_ref.dtype)


def _round_up(x, m):
    return (x + m - 1) // m * m


@functools.partial(jax.jit, static_argnames=("padding",))
def fused_upsample(x, weight, bias, *, padding=0):
    """Forward pass of UpsamplingLayperByFusing.

    x      : (B, Cin, H, W)      NCHW input
    weight : (Cin, Cout, k, k)   raw (unscaled) transposed-conv weight
    bias   : (Cout,)
    returns: (B, Cout, 2H + 2 - 2*padding, 2W + 2 - 2*padding)   for k = 3
    """
    B, Cin, H, W = x.shape
    w_cin, Cout, k, k2 = weight.shape
    assert w_cin == Cin and k == k2
    # TODO(synk): generalize to filter_dimension != 3 (blurred kernel != 4x4).
    assert k == 3, "kernel implements the filter_dimension=3 configuration"
    multi = math.sqrt(2.0 / (Cin * k * k))

    # ---- tiny weight preprocessing (hoisted out of the kernel) --------------
    wp = jnp.pad(weight * multi, ((0, 0), (0, 0), (1, 1), (1, 1)))
    wb = (wp[:, :, 1:, 1:] + wp[:, :, :-1, 1:]
          + wp[:, :, 1:, :-1] + wp[:, :, :-1, :-1]) * 0.25    # (Cin, Cout, 4, 4)

    LANE = 128
    Cinp, Coutp = _round_up(Cin, LANE), _round_up(Cout, LANE)

    H1, W1, W2 = H + 1, W + 1, W + 2   # phase-output extent / padded width

    # padding=0 transposed-conv output, phase decomposed:
    #   out0[b, 2y+py, 2x+px, co] =
    #       sum_{a,c,ci} xpad[b, y+a, x+c, ci] * wb[ci, co, 2+py-2a, 2+px-2c]
    # Fold (a, ci) into the matmul K axis and (py, px, co) into N; one matrix
    # per column tap c.
    wtap = jnp.zeros((2, 2, Cin, 2, 2, Cout), jnp.float32)  # [c,a,ci,py,px,co]
    for c in (0, 1):
        for a in (0, 1):
            for py in (0, 1):
                for px in (0, 1):
                    wtap = wtap.at[c, a, :, py, px, :].set(
                        wb[:, :, 2 + py - 2 * a, 2 + px - 2 * c])
    wtap = jnp.pad(wtap, ((0, 0), (0, 0), (0, Cinp - Cin),
                          (0, 0), (0, 0), (0, Coutp - Cout)))
    wmat = wtap.reshape(2, 2 * Cinp, 4 * Coutp)
    wc0, wc1 = wmat[0], wmat[1]
    bias4 = jnp.tile(jnp.pad(bias, (0, Coutp - Cout)), 4).reshape(1, 4 * Coutp)

    # ---- row-tile size: multiple of 8 phase rows, ~<=2 MiB output block -----
    H1r = _round_up(H1, 8)
    row_out_bytes = W2 * 4 * Coutp * 4
    T = 8
    while H1r % (2 * T) == 0 and 2 * T * row_out_bytes <= (2 << 20):
        T *= 2

    # ---- lane-dense, row-pair-packed input ----------------------------------
    x_nhwc = jnp.transpose(x, (0, 2, 3, 1))
    x_nhwc = jnp.pad(x_nhwc, ((0, 0), (0, 0), (0, 0), (0, Cinp - Cin)))
    xpad = jnp.pad(x_nhwc, ((0, 0), (1, 1 + (H1r - H1)), (1, 1), (0, 0)))
    # xrp[b, y, x, a*Cinp + ci] = xpad[b, y + a, x, ci]
    xrp = jnp.concatenate([xpad[:, 0:H1r], xpad[:, 1:H1r + 1]], axis=-1)
    xrp = xrp.reshape(B, H1r * W2, 2 * Cinp)

    TS = T * W2
    grid = (B, H1r // T)
    in_blk = TS * 2 * Cinp * 4
    out_blk = TS * 4 * Coutp * 4
    w_bytes = 2 * (2 * Cinp) * (4 * Coutp) * 4 + 4 * Coutp * 4
    vmem_limit = int(min(64 << 20,
                         max(16 << 20, 4 * (in_blk + out_blk) + 2 * w_bytes)))

    ph = pl.pallas_call(
        _fused_upsample_kernel,
        out_shape=jax.ShapeDtypeStruct((B, H1r * W2, 4 * Coutp), jnp.float32),
        grid=grid,
        in_specs=[
            pl.BlockSpec((1, TS, 2 * Cinp), lambda b, i: (b, i, 0)),
            pl.BlockSpec((2 * Cinp, 4 * Coutp), lambda b, i: (0, 0)),
            pl.BlockSpec((2 * Cinp, 4 * Coutp), lambda b, i: (0, 0)),
            pl.BlockSpec((1, 4 * Coutp), lambda b, i: (0, 0)),
        ],
        out_specs=pl.BlockSpec((1, TS, 4 * Coutp), lambda b, i: (b, i, 0)),
        compiler_params=pltpu.CompilerParams(
            dimension_semantics=("parallel", "parallel"),
            vmem_limit_bytes=vmem_limit),
    )(xrp, wc0, wc1, bias4)

    # ---- depth-to-space (phase interleave), crop, back to NCHW --------------
    ph = ph.reshape(B, H1r, W2, 2, 2, Coutp)[:, :H1, :W1]
    out0 = ph.transpose(0, 1, 3, 2, 4, 5).reshape(B, 2 * H1, 2 * W1, Coutp)
    Ho, Wo = 2 * H + 2, 2 * W + 2
    out = out0[:, padding:Ho - padding, padding:Wo - padding, :Cout]
    return jnp.transpose(out, (0, 3, 1, 2))


# ---------------- pure-JAX reference (direct transposed-conv sum) ------------
def ref_fused_upsample(x, weight, bias, *, padding=0):
    cin, cout, k, _ = weight.shape
    multi = math.sqrt(2.0 / (cin * k * k))
    w = jnp.pad(weight * multi, ((0, 0), (0, 0), (1, 1), (1, 1)))
    w = (w[:, :, 1:, 1:] + w[:, :, :-1, 1:]
         + w[:, :, 1:, :-1] + w[:, :, :-1, :-1]) * 0.25        # (Cin,Cout,K,K)
    K = k + 1
    B, _, H, W = x.shape
    Ho, Wo = (H - 1) * 2 + K, (W - 1) * 2 + K
    out = jnp.zeros((B, cout, Ho, Wo), jnp.float32)
    for ky in range(K):
        for kx in range(K):
            tap = jnp.einsum('bchw,cd->bdhw', x, w[:, :, ky, kx],
                             precision=jax.lax.Precision.HIGHEST)
            out = out.at[:, :, ky:ky + 2 * H:2, kx:kx + 2 * W:2].add(tap)
    out = out + bias[None, :, None, None]
    return out[:, :, padding:Ho - padding, padding:Wo - padding]


if __name__ == "__main__":
    key = jax.random.PRNGKey(0)
    kx, kw, kb = jax.random.split(key, 3)

    B, Cin, Cout, H, W, K = 2, 4, 8, 16, 16, 3
    x = jax.random.normal(kx, (B, Cin, H, W), jnp.float32)
    weight = jax.random.normal(kw, (Cin, Cout, K, K), jnp.float32)
    # The module initialises bias to zeros; use a small random bias here so
    # the bias path is actually exercised by the check.
    bias = 0.1 * jax.random.normal(kb, (Cout,), jnp.float32)

    for pad in (1, 0):
        out = fused_upsample(x, weight, bias, padding=pad)
        out = jax.block_until_ready(out)
        ref = ref_fused_upsample(x, weight, bias, padding=pad)
        expect = (B, Cout, 2 * H + 2 - 2 * pad, 2 * W + 2 - 2 * pad)
        assert out.shape == expect, (out.shape, expect)
        np.testing.assert_allclose(np.asarray(out), np.asarray(ref),
                                   atol=5e-2, rtol=5e-2)

    print("KERNEL_OK")
</pallas_src>

<mosaic_0001>
module attributes {stable_mosaic.version = 11 : i64} {
  func.func @_fused_upsample_kernel(%arg0: i32, %arg1: i32, %arg2: memref<1x144x256xf32, #tpu.memory_space<vmem>>, %arg3: memref<256x512xf32, #tpu.memory_space<vmem>>, %arg4: memref<256x512xf32, #tpu.memory_space<vmem>>, %arg5: memref<1x512xf32, #tpu.memory_space<vmem>>, %arg6: memref<1x144x512xf32, #tpu.memory_space<vmem>>) attributes {dimension_semantics = [#tpu.dimension_semantics<parallel>, #tpu.dimension_semantics<parallel>], iteration_bounds = array<i64: 2, 3>, scalar_prefetch = 0 : i64, scratch_operands = 0 : i64, tpu.core_type = #tpu.core_type<tc>, window_params = [{transform_indices = @transform_0, window_bounds = array<i64: 1, 144, 256>}, {pipeline_mode = #tpu.pipeline_mode<synchronous>, transform_indices = @transform_1, window_bounds = array<i64: 256, 512>}, {pipeline_mode = #tpu.pipeline_mode<synchronous>, transform_indices = @transform_2, window_bounds = array<i64: 256, 512>}, {pipeline_mode = #tpu.pipeline_mode<synchronous>, transform_indices = @transform_3, window_bounds = array<i64: 1, 512>}, {transform_indices = @transform_4, window_bounds = array<i64: 1, 144, 512>}]} {
    %c0 = arith.constant 0 : index
    %c0_0 = arith.constant 0 : index
    %c0_1 = arith.constant 0 : index
    %0 = vector.load %arg2[%c0, %c0_0, %c0_1] : memref<1x144x256xf32, #tpu.memory_space<vmem>>, vector<1x144x256xf32>
    %1 = vector.shape_cast %0 : vector<1x144x256xf32> to vector<144x256xf32>
    %2 = vector.extract_strided_slice %1 {offsets = [1, 0], sizes = [143, 256], strides = [1, 1]} : vector<144x256xf32> to vector<143x256xf32>
    %3 = vector.extract_strided_slice %1 {offsets = [0, 0], sizes = [1, 256], strides = [1, 1]} : vector<144x256xf32> to vector<1x256xf32>
    %4 = tpu.concatenate %2, %3 in 0 : vector<143x256xf32>, vector<1x256xf32> -> vector<144x256xf32>
    %c0_2 = arith.constant 0 : index
    %c0_3 = arith.constant 0 : index
    %5 = vector.load %arg3[%c0_2, %c0_3] : memref<256x512xf32, #tpu.memory_space<vmem>>, vector<256x512xf32>
    %cst = arith.constant dense<0.000000e+00> : vector<144x512xf32>
    %6 = tpu.matmul %1, %5, %cst {dimension_numbers = #tpu.dot_dimension_numbers<[1], [0], [0], [1], [0, 0, 1, 1], [], []>} : vector<144x256xf32>, vector<256x512xf32>, vector<144x512xf32> -> vector<144x512xf32>
    %c0_4 = arith.constant 0 : index
    %c0_5 = arith.constant 0 : index
    %7 = vector.load %arg4[%c0_4, %c0_5] : memref<256x512xf32, #tpu.memory_space<vmem>>, vector<256x512xf32>
    %cst_6 = arith.constant dense<0.000000e+00> : vector<144x512xf32>
    %8 = tpu.matmul %4, %7, %cst_6 {dimension_numbers = #tpu.dot_dimension_numbers<[1], [0], [0], [1], [0, 0, 1, 1], [], []>} : vector<144x256xf32>, vector<256x512xf32>, vector<144x512xf32> -> vector<144x512xf32>
    %9 = arith.addf %6, %8 : vector<144x512xf32>
    %c0_7 = arith.constant 0 : index
    %c0_8 = arith.constant 0 : index
    %10 = vector.load %arg5[%c0_7, %c0_8] : memref<1x512xf32, #tpu.memory_space<vmem>>, vector<1x512xf32>
    %11 = vector.broadcast %10 : vector<1x512xf32> to vector<144x512xf32>
    %12 = arith.addf %9, %11 : vector<144x512xf32>
    %c0_9 = arith.constant 0 : index
    %c0_10 = arith.constant 0 : index
    %c0_11 = arith.constant 0 : index
    %13 = vector.load %arg6[%c0_9, %c0_10, %c0_11] : memref<1x144x512xf32, #tpu.memory_space<vmem>>, vector<1x144x512xf32>
    %14 = vector.shape_cast %13 : vector<1x144x512xf32> to vector<144x512xf32>
    %15 = vector.shape_cast %12 : vector<144x512xf32> to vector<1x144x512xf32>
    tpu.vector_store %arg6[%c0_9, %c0_10, %c0_11], %15 {strides = array<i32>} : memref<1x144x512xf32, #tpu.memory_space<vmem>>, vector<1x144x512xf32>,
    return
  }
  func.func @transform_0(%arg0: i32, %arg1: i32) -> (i32, i32, i32) {
    %c0_i32 = arith.constant 0 : i32
    %c0_i32_0 = arith.constant 0 : i32
    return %arg0, %arg1, %c0_i32 : i32, i32, i32
  }
  func.func @transform_1(%arg0: i32, %arg1: i32) -> (i32, i32) {
    %c0_i32 = arith.constant 0 : i32
    %c0_i32_0 = arith.constant 0 : i32
    %c0_i32_1 = arith.constant 0 : i32
    return %c0_i32, %c0_i32_0 : i32, i32
  }
  func.func @transform_2(%arg0: i32, %arg1: i32) -> (i32, i32) {
    %c0_i32 = arith.constant 0 : i32
    %c0_i32_0 = arith.constant 0 : i32
    %c0_i32_1 = arith.constant 0 : i32
    return %c0_i32, %c0_i32_0 : i32, i32
  }
  func.func @transform_3(%arg0: i32, %arg1: i32) -> (i32, i32) {
    %c0_i32 = arith.constant 0 : i32
    %c0_i32_0 = arith.constant 0 : i32
    %c0_i32_1 = arith.constant 0 : i32
    return %c0_i32, %c0_i32_0 : i32, i32
  }
  func.func @transform_4(%arg0: i32, %arg1: i32) -> (i32, i32, i32) {
    %c0_i32 = arith.constant 0 : i32
    %c0_i32_0 = arith.constant 0 : i32
    return %arg0, %arg1, %c0_i32 : i32, i32, i32
  }
}

</mosaic_0001>

<bundles_post_ra>
// kernel: tile.8
= control target key start
LH: loop header
LB: loop body
LE: loop exit
PB: predicated region body
PF: predicated region fallthrough
CT: control target
= control target key end

     0   :  { %s22_s0 = inlined_call_operand.vmem [shape: f32[128], index: 0, kind: input, shape index: {}]   ;;  %s23_s1 = inlined_call_operand.vmem [shape: f32[4,128], index: 1, kind: output, shape index: {}]  }
   0x1   :  { %v4_v0 = vld [vmem:[%s22_s0] ss:$0 sm:$0xff] }
   0x2   :  { %5 = vst [vmem:[%s23_s1] sm:$0xf] %v4_v0 }

// kernel: squeeze.34
= control target key start
LH: loop header
LB: loop body
LE: loop exit
PB: predicated region body
PF: predicated region fallthrough
CT: control target
= control target key end

     0   :  { %s9220_s0 = inlined_call_operand.vmem [shape: f32[1,2,128,2,2,128], index: 0, kind: input, shape index: {}]   ;;  %s9221_s1 = inlined_call_operand.vmem [shape: f32[256,512], index: 1, kind: output, shape index: {}]  }
   0x1   :  { %v5116_v0 = vld [vmem:[%s9220_s0 + $0x3fe] sm:$0x3]  ;;  %v5117_v1 = vld [vmem:[%s9220_s0 + $0x3fc] sm:$0x3]  ;;  %v5118_v2 = vld [vmem:[%s9220_s0 + $0x3fa] sm:$0x3] }
   0x2   :  { %8 = vst [vmem:[#allocation0 + $0xff8] sm:$0x3] %v5116_v0  ;;  %13 = vst [vmem:[#allocation0 + $0xff0] sm:$0x3] %v5117_v1  ;;  %v5119_v3 = vld [vmem:[%s9220_s0 + $0x3f8] sm:$0x3] }
   0x3   :  { %18 = vst [vmem:[#allocation0 + $0xfe8] sm:$0x3] %v5118_v2  ;;  %v5120_v4 = vld [vmem:[%s9220_s0 + $0x3f6] sm:$0x3]  ;;  %v5121_v5 = vld [vmem:[%s9220_s0 + $0x3f4] sm:$0x3] }
   0x4   :  { %23 = vst [vmem:[#allocation0 + $0xfe0] sm:$0x3] %v5119_v3  ;;  %28 = vst [vmem:[#allocation0 + $0xfd8] sm:$0x3] %v5120_v4  ;;  %v5122_v6 = vld [vmem:[%s9220_s0 + $0x3f2] sm:$0x3] }
   0x5   :  { %33 = vst [vmem:[#allocation0 + $0xfd0] sm:$0x3] %v5121_v5  ;;  %v5123_v7 = vld [vmem:[%s9220_s0 + $0x3f0] sm:$0x3]  ;;  %v5124_v8 = vld [vmem:[%s9220_s0 + $0x3ee] sm:$0x3] }
   0x6   :  { %38 = vst [vmem:[#allocation0 + $0xfc8] sm:$0x3] %v5122_v6  ;;  %43 = vst [vmem:[#allocation0 + $0xfc0] sm:$0x3] %v5123_v7  ;;  %v5125_v9 = vld [vmem:[%s9220_s0 + $0x3ec] sm:$0x3] }
   0x7   :  { %48 = vst [vmem:[#allocation0 + $0xfb8] sm:$0x3] %v5124_v8  ;;  %v5126_v10 = vld [vmem:[%s9220_s0 + $0x3ea] sm:$0x3]  ;;  %v5127_v11 = vld [vmem:[%s9220_s0 + $0x3e8] sm:$0x3] }
   0x8   :  { %53 = vst [vmem:[#allocation0 + $0xfb0] sm:$0x3] %v5125_v9  ;;  %58 = vst [vmem:[#allocation0 + $0xfa8] sm:$0x3] %v5126_v10  ;;  %v5128_v12 = vld [vmem:[%s9220_s0 + $0x3e6] sm:$0x3] }
   0x9   :  { %63 = vst [vmem:[#allocation0 + $0xfa0] sm:$0x3] %v5127_v11  ;;  %v5129_v13 = vld [vmem:[%s9220_s0 + $0x3e4] sm:$0x3]  ;;  %v5130_v14 = vld [vmem:[%s9220_s0 + $0x3e2] sm:$0x3] }
   0xa   :  { %68 = vst [vmem:[#allocation0 + $0xf98] sm:$0x3] %v5128_v12  ;;  %73 = vst [vmem:[#allocation0 + $0xf90] sm:$0x3] %v5129_v13  ;;  %v5131_v15 = vld [vmem:[%s9220_s0 + $0x3e0] sm:$0x3] }
   0xb   :  { %78 = vst [vmem:[#allocation0 + $0xf88] sm:$0x3] %v5130_v14  ;;  %v5132_v16 = vld [vmem:[%s9220_s0 + $0x3de] sm:$0x3]  ;;  %v5133_v17 = vld [vmem:[%s9220_s0 + $0x3dc] sm:$0x3] }
   0xc   :  { %83 = vst [vmem:[#allocation0 + $0xf80] sm:$0x3] %v5131_v15  ;;  %88 = vst [vmem:[#allocation0 + $0xf78] sm:$0x3] %v5132_v16  ;;  %v5134_v18 = vld [vmem:[%s9220_s0 + $0x3da] sm:$0x3] }
   0xd   :  { %93 = vst [vmem:[#allocation0 + $0xf70] sm:$0x3] %v5133_v17  ;;  %v5135_v19 = vld [vmem:[%s9220_s0 + $0x3d8] sm:$0x3]  ;;  %v5136_v20 = vld [vmem:[%s9220_s0 + $0x3d6] sm:$0x3] }
   0xe   :  { %98 = vst [vmem:[#allocation0 + $0xf68] sm:$0x3] %v5134_v18  ;;  %103 = vst [vmem:[#allocation0 + $0xf60] sm:$0x3] %v5135_v19  ;;  %v5137_v21 = vld [vmem:[%s9220_s0 + $0x3d4] sm:$0x3] }
   0xf   :  { %108 = vst [vmem:[#allocation0 + $0xf58] sm:$0x3] %v5136_v20  ;;  %v5138_v22 = vld [vmem:[%s9220_s0 + $0x3d2] sm:$0x3]  ;;  %v5139_v23 = vld [vmem:[%s9220_s0 + $0x3d0] sm:$0x3] }
  0x10   :  { %113 = vst [vmem:[#allocation0 + $0xf50] sm:$0x3] %v5137_v21  ;;  %118 = vst [vmem:[#allocation0 + $0xf48] sm:$0x3] %v5138_v22  ;;  %v5140_v24 = vld [vmem:[%s9220_s0 + $0x3ce] sm:$0x3] }
  0x11   :  { %123 = vst [vmem:[#allocation0 + $0xf40] sm:$0x3] %v5139_v23  ;;  %v5141_v25 = vld [vmem:[%s9220_s0 + $0x3cc] sm:$0x3]  ;;  %v5142_v26 = vld [vmem:[%s9220_s0 + $0x3ca] sm:$0x3] }
  0x12   :  { %128 = vst [vmem:[#allocation0 + $0xf38] sm:$0x3] %v5140_v24  ;;  %133 = vst [vmem:[#allocation0 + $0xf30] sm:$0x3] %v5141_v25  ;;  %v5143_v27 = vld [vmem:[%s9220_s0 + $0x3c8] sm:$0x3] }
  0x13   :  { %138 = vst [vmem:[#allocation0 + $0xf28] sm:$0x3] %v5142_v26  ;;  %v5144_v28 = vld [vmem:[%s9220_s0 + $0x3c6] sm:$0x3]  ;;  %v5145_v29 = vld [vmem:[%s9220_s0 + $0x3c4] sm:$0x3] }
  0x14   :  { %143 = vst [vmem:[#allocation0 + $0xf20] sm:$0x3] %v5143_v27  ;;  %148 = vst [vmem:[#allocation0 + $0xf18] sm:$0x3] %v5144_v28  ;;  %v5146_v30 = vld [vmem:[%s9220_s0 + $0x3c2] sm:$0x3] }
  0x15   :  { %153 = vst [vmem:[#allocation0 + $0xf10] sm:$0x3] %v5145_v29  ;;  %v5147_v31 = vld [vmem:[%s9220_s0 + $0x3c0] sm:$0x3]  ;;  %v5148_v32 = vld [vmem:[%s9220_s0 + $0x3be] sm:$0x3] }
  0x16   :  { %158 = vst [vmem:[#allocation0 + $0xf08] sm:$0x3] %v5146_v30  ;;  %163 = vst [vmem:[#allocation0 + $0xf00] sm:$0x3] %v5147_v31  ;;  %v5149_v33 = vld [vmem:[%s9220_s0 + $0x3bc] sm:$0x3] }
  0x17   :  { %168 = vst [vmem:[#allocation0 + $0xef8] sm:$0x3] %v5148_v32  ;;  %v5150_v34 = vld [vmem:[%s9220_s0 + $0x3ba] sm:$0x3]  ;;  %v5151_v35 = vld [vmem:[%s9220_s0 + $0x3b8] sm:$0x3] }
  0x18   :  { %173 = vst [vmem:[#allocation0 + $0xef0] sm:$0x3] %v5149_v33  ;;  %178 = vst [vmem:[#allocation0 + $0xee8] sm:$0x3] %v5150_v34  ;;  %v5152_v36 = vld [vmem:[%s9220_s0 + $0x3b6] sm:$0x3] }
  0x19   :  { %183 = vst [vmem:[#allocation0 + $0xee0] sm:$0x3] %v5151_v35  ;;  %v5153_v37 = vld [vmem:[%s9220_s0 + $0x3b4] sm:$0x3]  ;;  %v5154_v38 = vld [vmem:[%s9220_s0 + $0x3b2] sm:$0x3] }
  0x1a   :  { %188 = vst [vmem:[#allocation0 + $0xed8] sm:$0x3] %v5152_v36  ;;  %193 = vst [vmem:[#allocation0 + $0xed0] sm:$0x3] %v5153_v37  ;;  %v5155_v39 = vld [vmem:[%s9220_s0 + $0x3b0] sm:$0x3] }
  0x1b   :  { %198 = vst [vmem:[#allocation0 + $0xec8] sm:$0x3] %v5154_v38  ;;  %v5156_v40 = vld [vmem:[%s9220_s0 + $0x3ae] sm:$0x3]  ;;  %v5157_v41 = vld [vmem:[%s9220_s0 + $0x3ac] sm:$0x3] }
  0x1c   :  { %203 = vst [vmem:[#allocation0 + $0xec0] sm:$0x3] %v5155_v39  ;;  %208 = vst [vmem:[#allocation0 + $0xeb8] sm:$0x3] %v5156_v40  ;;  %v5158_v42 = vld [vmem:[%s9220_s0 + $0x3aa] sm:$0x3] }
  0x1d   :  { %213 = vst [vmem:[#allocation0 + $0xeb0] sm:$0x3] %v5157_v41  ;;  %v5159_v43 = vld [vmem:[%s9220_s0 + $0x3a8] sm:$0x3]  ;;  %v5160_v44 = vld [vmem:[%s9220_s0 + $0x3a6] sm:$0x3] }
  0x1e   :  { %218 = vst [vmem:[#allocation0 + $0xea8] sm:$0x3] %v5158_v42  ;;  %223 = vst [vmem:[#allocation0 + $0xea0] sm:$0x3] %v5159_v43  ;;  %v5161_v45 = vld [vmem:[%s9220_s0 + $0x3a4] sm:$0x3] }
  0x1f   :  { %228 = vst [vmem:[#allocation0 + $0xe98] sm:$0x3] %v5160_v44  ;;  %v5162_v46 = vld [vmem:[%s9220_s0 + $0x3a2] sm:$0x3]  ;;  %v5163_v47 = vld [vmem:[%s9220_s0 + $0x3a0] sm:$0x3] }
  0x20   :  { %233 = vst [vmem:[#allocation0 + $0xe90] sm:$0x3] %v5161_v45  ;;  %238 = vst [vmem:[#allocation0 + $0xe88] sm:$0x3] %v5162_v46  ;;  %v5164_v48 = vld [vmem:[%s9220_s0 + $0x39e] sm:$0x3] }
  0x21   :  { %243 = vst [vmem:[#allocation0 + $0xe80] sm:$0x3] %v5163_v47  ;;  %v5165_v49 = vld [vmem:[%s9220_s0 + $0x39c] sm:$0x3]  ;;  %v5166_v50 = vld [vmem:[%s9220_s0 + $0x39a] sm:$0x3] }
  0x22   :  { %248 = vst [vmem:[#allocation0 + $0xe78] sm:$0x3] %v5164_v48  ;;  %253 = vst [vmem:[#allocation0 + $0xe70] sm:$0x3] %v5165_v49  ;;  %v5167_v51 = vld [vmem:[%s9220_s0 + $0x398] sm:$0x3] }
  0x23   :  { %258 = vst [vmem:[#allocation0 + $0xe68] sm:$0x3] %v5166_v50  ;;  %v5168_v52 = vld [vmem:[%s9220_s0 + $0x396] sm:$0x3]  ;;  %v5169_v53 = vld [vmem:[%s9220_s0 + $0x394] sm:$0x3] }
  0x24   :  { %263 = vst [vmem:[#allocation0 + $0xe60] sm:$0x3] %v5167_v51  ;;  %268 = vst [vmem:[#allocation0 + $0xe58] sm:$0x3] %v5168_v52  ;;  %v5170_v54 = vld [vmem:[%s9220_s0 + $0x392] sm:$0x3] }
  0x25   :  { %273 = vst [vmem:[#allocation0 + $0xe50] sm:$0x3] %v5169_v53  ;;  %v5171_v55 = vld [vmem:[%s9220_s0 + $0x390] sm:$0x3]  ;;  %v5172_v56 = vld [vmem:[%s9220_s0 + $0x38e] sm:$0x3] }
  0x26   :  { %278 = vst [vmem:[#allocation0 + $0xe48] sm:$0x3] %v5170_v54  ;;  %283 = vst [vmem:[#allocation0 + $0xe40] sm:$0x3] %v5171_v55  ;;  %v5173_v57 = vld [vmem:[%s9220_s0 + $0x38c] sm:$0x3] }
  0x27   :  { %288 = vst [vmem:[#allocation0 + $0xe38] sm:$0x3] %v5172_v56  ;;  %v5174_v58 = vld [vmem:[%s9220_s0 + $0x38a] sm:$0x3]  ;;  %v5175_v59 = vld [vmem:[%s9220_s0 + $0x388] sm:$0x3] }
  0x28   :  { %293 = vst [vmem:[#allocation0 + $0xe30] sm:$0x3] %v5173_v57  ;;  %298 = vst [vmem:[#allocation0 + $0xe28] sm:$0x3] %v5174_v58  ;;  %v5176_v60 = vld [vmem:[%s9220_s0 + $0x386] sm:$0x3] }
  0x29   :  { %303 = vst [vmem:[#allocation0 + $0xe20] sm:$0x3] %v5175_v59  ;;  %v5177_v61 = vld [vmem:[%s9220_s0 + $0x384] sm:$0x3]  ;;  %v5178_v62 = vld [vmem:[%s9220_s0 + $0x382] sm:$0x3] }
  0x2a   :  { %308 = vst [vmem:[#allocation0 + $0xe18] sm:$0x3] %v5176_v60  ;;  %313 = vst [vmem:[#allocation0 + $0xe10] sm:$0x3] %v5177_v61  ;;  %v5179_v63 = vld [vmem:[%s9220_s0 + $0x380] sm:$0x3] }
  0x2b   :  { %318 = vst [vmem:[#allocation0 + $0xe08] sm:$0x3] %v5178_v62  ;;  %v5180_v0 = vld [vmem:[%s9220_s0 + $0x37e] sm:$0x3]  ;;  %v5181_v1 = vld [vmem:[%s9220_s0 + $0x37c] sm:$0x3] }
  0x2c   :  { %323 = vst [vmem:[#allocation0 + $0xe00] sm:$0x3] %v5179_v63  ;;  %328 = vst [vmem:[#allocation0 + $0xdf8] sm:$0x3] %v5180_v0  ;;  %v5182_v2 = vld [vmem:[%s9220_s0 + $0x37a] sm:$0x3] }
  0x2d   :  { %333 = vst [vmem:[#allocation0 + $0xdf0] sm:$0x3] %v5181_v1  ;;  %v5183_v3 = vld [vmem:[%s9220_s0 + $0x378] sm:$0x3]  ;;  %v5184_v4 = vld [vmem:[%s9220_s0 + $0x376] sm:$0x3] }
  0x2e   :  { %338 = vst [vmem:[#allocation0 + $0xde8] sm:$0x3] %v5182_v2  ;;  %343 = vst [vmem:[#allocation0 + $0xde0] sm:$0x3] %v5183_v3  ;;  %v5185_v5 = vld [vmem:[%s9220_s0 + $0x374] sm:$0x3] }
  0x2f   :  { %348 = vst [vmem:[#allocation0 + $0xdd8] sm:$0x3] %v5184_v4  ;;  %v5186_v6 = vld [vmem:[%s9220_s0 + $0x372] sm:$0x3]  ;;  %v5187_v7 = vld [vmem:[%s9220_s0 + $0x370] sm:$0x3] }
  0x30   :  { %353 = vst [vmem:[#allocation0 + $0xdd0] sm:$0x3] %v5185_v5  ;;  %358 = vst [vmem:[#allocation0 + $0xdc8] sm:$0x3] %v5186_v6  ;;  %v5188_v8 = vld [vmem:[%s9220_s0 + $0x36e] sm:$0x3] }
  0x31   :  { %363 = vst [vmem:[#allocation0 + $0xdc0] sm:$0x3] %v5187_v7  ;;  %v5189_v9 = vld [vmem:[%s9220_s0 + $0x36c] sm:$0x3]  ;;  %v5190_v10 = vld [vmem:[%s9220_s0 + $0x36a] sm:$0x3] }
  0x32   :  { %368 = vst [vmem:[#allocation0 + $0xdb8] sm:$0x3] %v5188_v8  ;;  %373 = vst [vmem:[#allocation0 + $0xdb0] sm:$0x3] %v5189_v9  ;;  %v5191_v11 = vld [vmem:[%s9220_s0 + $0x368] sm:$0x3] }
  0x33   :  { %378 = vst [vmem:[#allocation0 + $0xda8] sm:$0x3] %v5190_v10  ;;  %v5192_v12 = vld [vmem:[%s9220_s0 + $0x366] sm:$0x3]  ;;  %v5193_v13 = vld [vmem:[%s9220_s0 + $0x364] sm:$0x3] }
  0x34   :  { %383 = vst [vmem:[#allocation0 + $0xda0] sm:$0x3] %v5191_v11  ;;  %388 = vst [vmem:[#allocation0 + $0xd98] sm:$0x3] %v5192_v12  ;;  %v5194_v14 = vld [vmem:[%s9220_s0 + $0x362] sm:$0x3] }
  0x35   :  { %393 = vst [vmem:[#allocation0 + $0xd90] sm:$0x3] %v5193_v13  ;;  %v5195_v15 = vld [vmem:[%s9220_s0 + $0x360] sm:$0x3]  ;;  %v5196_v16 = vld [vmem:[%s9220_s0 + $0x35e] sm:$0x3] }
  0x36   :  { %398 = vst [vmem:[#allocation0 + $0xd88] sm:$0x3] %v5194_v14  ;;  %403 = vst [vmem:[#allocation0 + $0xd80] sm:$0x3] %v5195_v15  ;;  %v5197_v17 = vld [vmem:[%s9220_s0 + $0x35c] sm:$0x3] }
  0x37   :  { %408 = vst [vmem:[#allocation0 + $0xd78] sm:$0x3] %v5196_v16  ;;  %v5198_v18 = vld [vmem:[%s9220_s0 + $0x35a] sm:$0x3]  ;;  %v5199_v19 = vld [vmem:[%s9220_s0 + $0x358] sm:$0x3] }
  0x38   :  { %413 = vst [vmem:[#allocation0 + $0xd70] sm:$0x3] %v5197_v17  ;;  %418 = vst [vmem:[#allocation0 + $0xd68] sm:$0x3] %v5198_v18  ;;  %v5200_v20 = vld [vmem:[%s9220_s0 + $0x356] sm:$0x3] }
  0x39   :  { %423 = vst [vmem:[#allocation0 + $0xd60] sm:$0x3] %v5199_v19  ;;  %v5201_v21 = vld [vmem:[%s9220_s0 + $0x354] sm:$0x3]  ;;  %v5202_v22 = vld [vmem:[%s9220_s0 + $0x352] sm:$0x3] }
  0x3a   :  { %428 = vst [vmem:[#allocation0 + $0xd58] sm:$0x3] %v5200_v20  ;;  %433 = vst [vmem:[#allocation0 + $0xd50] sm:$0x3] %v5201_v21  ;;  %v5203_v23 = vld [vmem:[%s9220_s0 + $0x350] sm:$0x3] }
  0x3b   :  { %438 = vst [vmem:[#allocation0 + $0xd48] sm:$0x3] %v5202_v22  ;;  %v5204_v24 = vld [vmem:[%s9220_s0 + $0x34e] sm:$0x3]  ;;  %v5205_v25 = vld [vmem:[%s9220_s0 + $0x34c] sm:$0x3] }
  0x3c   :  { %443 = vst [vmem:[#allocation0 + $0xd40] sm:$0x3] %v5203_v23  ;;  %448 = vst [vmem:[#allocation0 + $0xd38] sm:$0x3] %v5204_v24  ;;  %v5206_v26 = vld [vmem:[%s9220_s0 + $0x34a] sm:$0x3] }
  0x3d   :  { %453 = vst [vmem:[#allocation0 + $0xd30] sm:$0x3] %v5205_v25  ;;  %v5207_v27 = vld [vmem:[%s9220_s0 + $0x348] sm:$0x3]  ;;  %v5208_v28 = vld [vmem:[%s9220_s0 + $0x346] sm:$0x3] }
  0x3e   :  { %458 = vst [vmem:[#allocation0 + $0xd28] sm:$0x3] %v5206_v26  ;;  %463 = vst [vmem:[#allocation0 + $0xd20] sm:$0x3] %v5207_v27  ;;  %v5209_v29 = vld [vmem:[%s9220_s0 + $0x344] sm:$0x3] }
  0x3f   :  { %468 = vst [vmem:[#allocation0 + $0xd18] sm:$0x3] %v5208_v28  ;;  %v5210_v30 = vld [vmem:[%s9220_s0 + $0x342] sm:$0x3]  ;;  %v5211_v31 = vld [vmem:[%s9220_s0 + $0x340] sm:$0x3] }
  0x40   :  { %473 = vst [vmem:[#allocation0 + $0xd10] sm:$0x3] %v5209_v29  ;;  %478 = vst [vmem:[#allocation0 + $0xd08] sm:$0x3] %v5210_v30  ;;  %v5212_v32 = vld [vmem:[%s9220_s0 + $0x33e] sm:$0x3] }
  0x41   :  { %483 = vst [vmem:[#allocation0 + $0xd00] sm:$0x3] %v5211_v31  ;;  %v5213_v33 = vld [vmem:[%s9220_s0 + $0x33c] sm:$0x3]  ;;  %v5214_v34 = vld [vmem:[%s9220_s0 + $0x33a] sm:$0x3] }
  0x42   :  { %488 = vst [vmem:[#allocation0 + $0xcf8] sm:$0x3] %v5212_v32  ;;  %493 = vst [vmem:[#allocation0 + $0xcf0] sm:$0x3] %v5213_v33  ;;  %v5215_v35 = vld [vmem:[%s9220_s0 + $0x338] sm:$0x3] }
  0x43   :  { %498 = vst [vmem:[#allocation0 + $0xce8] sm:$0x3] %v5214_v34  ;;  %v5216_v36 = vld [vmem:[%s9220_s0 + $0x336] sm:$0x3]  ;;  %v5217_v37 = vld [vmem:[%s9220_s0 + $0x334] sm:$0x3] }
  0x44   :  { %503 = vst [vmem:[#allocation0 + $0xce0] sm:$0x3] %v5215_v35  ;;  %508 = vst [vmem:[#allocation0 + $0xcd8] sm:$0x3] %v5216_v36  ;;  %v5218_v38 = vld [vmem:[%s9220_s0 + $0x332] sm:$0x3] }
  0x45   :  { %513 = vst [vmem:[#allocation0 + $0xcd0] sm:$0x3] %v5217_v37  ;;  %v5219_v39 = vld [vmem:[%s9220_s0 + $0x330] sm:$0x3]  ;;  %v5220_v40 = vld [vmem:[%s9220_s0 + $0x32e] sm:$0x3] }
  0x46   :  { %518 = vst [vmem:[#allocation0 + $0xcc8] sm:$0x3] %v5218_v38  ;;  %523 = vst [vmem:[#allocation0 + $0xcc0] sm:$0x3] %v5219_v39  ;;  %v5221_v41 = vld [vmem:[%s9220_s0 + $0x32c] sm:$0x3] }
  0x47   :  { %528 = vst [vmem:[#allocation0 + $0xcb8] sm:$0x3] %v5220_v40  ;;  %v5222_v42 = vld [vmem:[%s9220_s0 + $0x32a] sm:$0x3]  ;;  %v5223_v43 = vld [vmem:[%s9220_s0 + $0x328] sm:$0x3] }
  0x48   :  { %533 = vst [vmem:[#allocation0 + $0xcb0] sm:$0x3] %v5221_v41  ;;  %538 = vst [vmem:[#allocation0 + $0xca8] sm:$0x3] %v5222_v42  ;;  %v5224_v44 = vld [vmem:[%s9220_s0 + $0x326] sm:$0x3] }
  0x49   :  { %543 = vst [vmem:[#allocation0 + $0xca0] sm:$0x3] %v5223_v43  ;;  %v5225_v45 = vld [vmem:[%s9220_s0 + $0x324] sm:$0x3]  ;;  %v5226_v46 = vld [vmem:[%s9220_s0 + $0x322] sm:$0x3] }
  0x4a   :  { %548 = vst [vmem:[#allocation0 + $0xc98] sm:$0x3] %v5224_v44  ;;  %553 = vst [vmem:[#allocation0 + $0xc90] sm:$0x3] %v5225_v45  ;;  %v5227_v47 = vld [vmem:[%s9220_s0 + $0x320] sm:$0x3] }
  0x4b   :  { %558 = vst [vmem:[#allocation0 + $0xc88] sm:$0x3] %v5226_v46  ;;  %v5228_v48 = vld [vmem:[%s9220_s0 + $0x31e] sm:$0x3]  ;;  %v5229_v49 = vld [vmem:[%s9220_s0 + $0x31c] sm:$0x3] }
  0x4c   :  { %563 = vst [vmem:[#allocation0 + $0xc80] sm:$0x3] %v5227_v47  ;;  %568 = vst [vmem:[#allocation0 + $0xc78] sm:$0x3] %v5228_v48  ;;  %v5230_v50 = vld [vmem:[%s9220_s0 + $0x31a] sm:$0x3] }
  0x4d   :  { %573 = vst [vmem:[#allocation0 + $0xc70] sm:$0x3] %v5229_v49  ;;  %v5231_v51 = vld [vmem:[%s9220_s0 + $0x318] sm:$0x3]  ;;  %v5232_v52 = vld [vmem:[%s9220_s0 + $0x316] sm:$0x3] }
  0x4e   :  { %578 = vst [vmem:[#allocation0 + $0xc68] sm:$0x3] %v5230_v50  ;;  %583 = vst [vmem:[#allocation0 + $0xc60] sm:$0x3] %v5231_v51  ;;  %v5233_v53 = vld [vmem:[%s9220_s0 + $0x314] sm:$0x3] }
  0x4f   :  { %588 = vst [vmem:[#allocation0 + $0xc58] sm:$0x3] %v5232_v52  ;;  %v5234_v54 = vld [vmem:[%s9220_s0 + $0x312] sm:$0x3]  ;;  %v5235_v55 = vld [vmem:[%s9220_s0 + $0x310] sm:$0x3] }
  0x50   :  { %593 = vst [vmem:[#allocation0 + $0xc50] sm:$0x3] %v5233_v53  ;;  %598 = vst [vmem:[#allocation0 + $0xc48] sm:$0x3] %v5234_v54  ;;  %v5236_v56 = vld [vmem:[%s9220_s0 + $0x30e] sm:$0x3] }
  0x51   :  { %603 = vst [vmem:[#allocation0 + $0xc40] sm:$0x3] %v5235_v55  ;;  %v5237_v57 = vld [vmem:[%s9220_s0 + $0x30c] sm:$0x3]  ;;  %v5238_v58 = vld [vmem:[%s9220_s0 + $0x30a] sm:$0x3] }
  0x52   :  { %608 = vst [vmem:[#allocation0 + $0xc38] sm:$0x3] %v5236_v56  ;;  %613 = vst [vmem:[#allocation0 + $0xc30] sm:$0x3] %v5237_v57  ;;  %v5239_v59 = vld [vmem:[%s9220_s0 + $0x308] sm:$0x3] }
  0x53   :  { %618 = vst [vmem:[#allocation0 + $0xc28] sm:$0x3] %v5238_v58  ;;  %v5240_v60 = vld [vmem:[%s9220_s0 + $0x306] sm:$0x3]  ;;  %v5241_v61 = vld [vmem:[%s9220_s0 + $0x304] sm:$0x3] }
  0x54   :  { %623 = vst [vmem:[#allocation0 + $0xc20] sm:$0x3] %v5239_v59  ;;  %628 = vst [vmem:[#allocation0 + $0xc18] sm:$0x3] %v5240_v60  ;;  %v5242_v62 = vld [vmem:[%s9220_s0 + $0x302] sm:$0x3] }
  0x55   :  { %633 = vst [vmem:[#allocation0 + $0xc10] sm:$0x3] %v5241_v61  ;;  %v5243_v63 = vld [vmem:[%s9220_s0 + $0x300] sm:$0x3]  ;;  %v5244_v0 = vld [vmem:[%s9220_s0 + $0x2fe] sm:$0x3] }
  0x56   :  { %638 = vst [vmem:[#allocation0 + $0xc08] sm:$0x3] %v5242_v62  ;;  %643 = vst [vmem:[#allocation0 + $0xc00] sm:$0x3] %v5243_v63  ;;  %v5245_v1 = vld [vmem:[%s9220_s0 + $0x2fc] sm:$0x3] }
  0x57   :  { %648 = vst [vmem:[#allocation0 + $0xbf8] sm:$0x3] %v5244_v0  ;;  %v5246_v2 = vld [vmem:[%s9220_s0 + $0x2fa] sm:$0x3]  ;;  %v5247_v3 = vld [vmem:[%s9220_s0 + $0x2f8] sm:$0x3] }
  0x58   :  { %653 = vst [vmem:[#allocation0 + $0xbf0] sm:$0x3] %v5245_v1  ;;  %658 = vst [vmem:[#allocation0 + $0xbe8] sm:$0x3] %v5246_v2  ;;  %v5248_v4 = vld [vmem:[%s9220_s0 + $0x2f6] sm:$0x3] }
  0x59   :  { %663 = vst [vmem:[#allocation0 + $0xbe0] sm:$0x3] %v5247_v3  ;;  %v5249_v5 = vld [vmem:[%s9220_s0 + $0x2f4] sm:$0x3]  ;;  %v5250_v6 = vld [vmem:[%s9220_s0 + $0x2f2] sm:$0x3] }
  0x5a   :  { %668 = vst [vmem:[#allocation0 + $0xbd8] sm:$0x3] %v5248_v4  ;;  %673 = vst [vmem:[#allocation0 + $0xbd0] sm:$0x3] %v5249_v5  ;;  %v5251_v7 = vld [vmem:[%s9220_s0 + $0x2f0] sm:$0x3] }
  0x5b   :  { %678 = vst [vmem:[#allocation0 + $0xbc8] sm:$0x3] %v5250_v6  ;;  %v5252_v8 = vld [vmem:[%s9220_s0 + $0x2ee] sm:$0x3]  ;;  %v5253_v9 = vld [vmem:[%s9220_s0 + $0x2ec] sm:$0x3] }
  0x5c   :  { %683 = vst [vmem:[#allocation0 + $0xbc0] sm:$0x3] %v5251_v7  ;;  %688 = vst [vmem:[#allocation0 + $0xbb8] sm:$0x3] %v5252_v8  ;;  %v5254_v10 = vld [vmem:[%s9220_s0 + $0x2ea] sm:$0x3] }
  0x5d   :  { %693 = vst [vmem:[#allocation0 + $0xbb0] sm:$0x3] %v5253_v9  ;;  %v5255_v11 = vld [vmem:[%s9220_s0 + $0x2e8] sm:$0x3]  ;;  %v5256_v12 = vld [vmem:[%s9220_s0 + $0x2e6] sm:$0x3] }
  0x5e   :  { %698 = vst [vmem:[#allocation0 + $0xba8] sm:$0x3] %v5254_v10  ;;  %703 = vst [vmem:[#allocation0 + $0xba0] sm:$0x3] %v5255_v11  ;;  %v5257_v13 = vld [vmem:[%s9220_s0 + $0x2e4] sm:$0x3] }
  0x5f   :  { %708 = vst [vmem:[#allocation0 + $0xb98] sm:$0x3] %v5256_v12  ;;  %v5258_v14 = vld [vmem:[%s9220_s0 + $0x2e2] sm:$0x3]  ;;  %v5259_v15 = vld [vmem:[%s9220_s0 + $0x2e0] sm:$0x3] }
  0x60   :  { %713 = vst [vmem:[#allocation0 + $0xb90] sm:$0x3] %v5257_v13  ;;  %718 = vst [vmem:[#allocation0 + $0xb88] sm:$0x3] %v5258_v14  ;;  %v5260_v16 = vld [vmem:[%s9220_s0 + $0x2de] sm:$0x3] }
  0x61   :  { %723 = vst [vmem:[#allocation0 + $0xb80] sm:$0x3] %v5259_v15  ;;  %v5261_v17 = vld [vmem:[%s9220_s0 + $0x2dc] sm:$0x3]  ;;  %v5262_v18 = vld [vmem:[%s9220_s0 + $0x2da] sm:$0x3] }
  0x62   :  { %728 = vst [vmem:[#allocation0 + $0xb78] sm:$0x3] %v5260_v16  ;;  %733 = vst [vmem:[#allocation0 + $0xb70] sm:$0x3] %v5261_v17  ;;  %v5263_v19 = vld [vmem:[%s9220_s0 + $0x2d8] sm:$0x3] }
  0x63   :  { %738 = vst [vmem:[#allocation0 + $0xb68] sm:$0x3] %v5262_v18  ;;  %v5264_v20 = vld [vmem:[%s9220_s0 + $0x2d6] sm:$0x3]  ;;  %v5265_v21 = vld [vmem:[%s9220_s0 + $0x2d4] sm:$0x3] }
  0x64   :  { %743 = vst [vmem:[#allocation0 + $0xb60] sm:$0x3] %v5263_v19  ;;  %748 = vst [vmem:[#allocation0 + $0xb58] sm:$0x3] %v5264_v20  ;;  %v5266_v22 = vld [vmem:[%s9220_s0 + $0x2d2] sm:$0x3] }
  0x65   :  { %753 = vst [vmem:[#allocation0 + $0xb50] sm:$0x3] %v5265_v21  ;;  %v5267_v23 = vld [vmem:[%s9220_s0 + $0x2d0] sm:$0x3]  ;;  %v5268_v24 = vld [vmem:[%s9220_s0 + $0x2ce] sm:$0x3] }
  0x66   :  { %758 = vst [vmem:[#allocation0 + $0xb48] sm:$0x3] %v5266_v22  ;;  %763 = vst [vmem:[#allocation0 + $0xb40] sm:$0x3] %v5267_v23  ;;  %v5269_v25 = vld [vmem:[%s9220_s0 + $0x2cc] sm:$0x3] }
  0x67   :  { %768 = vst [vmem:[#allocation0 + $0xb38] sm:$0x3] %v5268_v24  ;;  %v5270_v26 = vld [vmem:[%s9220_s0 + $0x2ca] sm:$0x3]  ;;  %v5271_v27 = vld [vmem:[%s9220_s0 + $0x2c8] sm:$0x3] }
  0x68   :  { %773 = vst [vmem:[#allocation0 + $0xb30] sm:$0x3] %v5269_v25  ;;  %778 = vst [vmem:[#allocation0 + $0xb28] sm:$0x3] %v5270_v26  ;;  %v5272_v28 = vld [vmem:[%s9220_s0 + $0x2c6] sm:$0x3] }
  0x69   :  { %783 = vst [vmem:[#allocation0 + $0xb20] sm:$0x3] %v5271_v27  ;;  %v5273_v29 = vld [vmem:[%s9220_s0 + $0x2c4] sm:$0x3]  ;;  %v5274_v30 = vld [vmem:[%s9220_s0 + $0x2c2] sm:$0x3] }
  0x6a   :  { %788 = vst [vmem:[#allocation0 + $0xb18] sm:$0x3] %v5272_v28  ;;  %793 = vst [vmem:[#allocation0 + $0xb10] sm:$0x3] %v5273_v29  ;;  %v5275_v31 = vld [vmem:[%s9220_s0 + $0x2c0] sm:$0x3] }
  0x6b   :  { %798 = vst [vmem:[#allocation0 + $0xb08] sm:$0x3] %v5274_v30  ;;  %v5276_v32 = vld [vmem:[%s9220_s0 + $0x2be] sm:$0x3]  ;;  %v5277_v33 = vld [vmem:[%s9220_s0 + $0x2bc] sm:$0x3] }
  0x6c   :  { %803 = vst [vmem:[#allocation0 + $0xb00] sm:$0x3] %v5275_v31  ;;  %808 = vst [vmem:[#allocation0 + $0xaf8] sm:$0x3] %v5276_v32  ;;  %v5278_v34 = vld [vmem:[%s9220_s0 + $0x2ba] sm:$0x3] }
  0x6d   :  { %813 = vst [vmem:[#allocation0 + $0xaf0] sm:$0x3] %v5277_v33  ;;  %v5279_v35 = vld [vmem:[%s9220_s0 + $0x2b8] sm:$0x3]  ;;  %v5280_v36 = vld [vmem:[%s9220_s0 + $0x2b6] sm:$0x3] }
  0x6e   :  { %818 = vst [vmem:[#allocation0 + $0xae8] sm:$0x3] %v5278_v34  ;;  %823 = vst [vmem:[#allocation0 + $0xae0] sm:$0x3] %v5279_v35  ;;  %v5281_v37 = vld [vmem:[%s9220_s0 + $0x2b4] sm:$0x3] }
  0x6f   :  { %828 = vst [vmem:[#allocation0 + $0xad8] sm:$0x3] %v5280_v36  ;;  %v5282_v38 = vld [vmem:[%s9220_s0 + $0x2b2] sm:$0x3]  ;;  %v5283_v39 = vld [vmem:[%s9220_s0 + $0x2b0] sm:$0x3] }
  0x70   :  { %833 = vst [vmem:[#allocation0 + $0xad0] sm:$0x3] %v5281_v37  ;;  %838 = vst [vmem:[#allocation0 + $0xac8] sm:$0x3] %v5282_v38  ;;  %v5284_v40 = vld [vmem:[%s9220_s0 + $0x2ae] sm:$0x3] }
  0x71   :  { %843 = vst [vmem:[#allocation0 + $0xac0] sm:$0x3] %v5283_v39  ;;  %v5285_v41 = vld [vmem:[%s9220_s0 + $0x2ac] sm:$0x3]  ;;  %v5286_v42 = vld [vmem:[%s9220_s0 + $0x2aa] sm:$0x3] }
  0x72   :  { %848 = vst [vmem:[#allocation0 + $0xab8] sm:$0x3] %v5284_v40  ;;  %853 = vst [vmem:[#allocation0 + $0xab0] sm:$0x3] %v5285_v41  ;;  %v5287_v43 = vld [vmem:[%s9220_s0 + $0x2a8] sm:$0x3] }
  0x73   :  { %858 = vst [vmem:[#allocation0 + $0xaa8] sm:$0x3] %v5286_v42  ;;  %v5288_v44 = vld [vmem:[%s9220_s0 + $0x2a6] sm:$0x3]  ;;  %v5289_v45 = vld [vmem:[%s9220_s0 + $0x2a4] sm:$0x3] }
  0x74   :  { %863 = vst [vmem:[#allocation0 + $0xaa0] sm:$0x3] %v5287_v43  ;;  %868 = vst [vmem:[#allocation0 + $0xa98] sm:$0x3] %v5288_v44  ;;  %v5290_v46 = vld [vmem:[%s9220_s0 + $0x2a2] sm:$0x3] }
  0x75   :  { %873 = vst [vmem:[#allocation0 + $0xa90] sm:$0x3] %v5289_v45  ;;  %v5291_v47 = vld [vmem:[%s9220_s0 + $0x2a0] sm:$0x3]  ;;  %v5292_v48 = vld [vmem:[%s9220_s0 + $0x29e] sm:$0x3] }
  0x76   :  { %878 = vst [vmem:[#allocation0 + $0xa88] sm:$0x3] %v5290_v46  ;;  %883 = vst [vmem:[#allocation0 + $0xa80] sm:$0x3] %v5291_v47  ;;  %v5293_v49 = vld [vmem:[%s9220_s0 + $0x29c] sm:$0x3] }
  0x77   :  { %888 = vst [vmem:[#allocation0 + $0xa78] sm:$0x3] %v5292_v48  ;;  %v5294_v50 = vld [vmem:[%s9220_s0 + $0x29a] sm:$0x3]  ;;  %v5295_v51 = vld [vmem:[%s9220_s0 + $0x298] sm:$0x3] }
  0x78   :  { %893 = vst [vmem:[#allocation0 + $0xa70] sm:$0x3] %v5293_v49  ;;  %898 = vst [vmem:[#allocation0 + $0xa68] sm:$0x3] %v5294_v50  ;;  %v5296_v52 = vld [vmem:[%s9220_s0 + $0x296] sm:$0x3] }
  0x79   :  { %903 = vst [vmem:[#allocation0 + $0xa60] sm:$0x3] %v5295_v51  ;;  %v5297_v53 = vld [vmem:[%s9220_s0 + $0x294] sm:$0x3]  ;;  %v5298_v54 = vld [vmem:[%s9220_s0 + $0x292] sm:$0x3] }
  0x7a   :  { %908 = vst [vmem:[#allocation0 + $0xa58] sm:$0x3] %v5296_v52  ;;  %913 = vst [vmem:[#allocation0 + $0xa50] sm:$0x3] %v5297_v53  ;;  %v5299_v55 = vld [vmem:[%s9220_s0 + $0x290] sm:$0x3] }
  0x7b   :  { %918 = vst [vmem:[#allocation0 + $0xa48] sm:$0x3] %v5298_v54  ;;  %v5300_v56 = vld [vmem:[%s9220_s0 + $0x28e] sm:$0x3]  ;;  %v5301_v57 = vld [vmem:[%s9220_s0 + $0x28c] sm:$0x3] }
  0x7c   :  { %923 = vst [vmem:[#allocation0 + $0xa40] sm:$0x3] %v5299_v55  ;;  %928 = vst [vmem:[#allocation0 + $0xa38] sm:$0x3] %v5300_v56  ;;  %v5302_v58 = vld [vmem:[%s9220_s0 + $0x28a] sm:$0x3] }
  0x7d   :  { %933 = vst [vmem:[#allocation0 + $0xa30] sm:$0x3] %v5301_v57  ;;  %v5303_v59 = vld [vmem:[%s9220_s0 + $0x288] sm:$0x3]  ;;  %v5304_v60 = vld [vmem:[%s9220_s0 + $0x286] sm:$0x3] }
  0x7e   :  { %938 = vst [vmem:[#allocation0 + $0xa28] sm:$0x3] %v5302_v58  ;;  %943 = vst [vmem:[#allocation0 + $0xa20] sm:$0x3] %v5303_v59  ;;  %v5305_v61 = vld [vmem:[%s9220_s0 + $0x284] sm:$0x3] }
  0x7f   :  { %948 = vst [vmem:[#allocation0 + $0xa18] sm:$0x3] %v5304_v60  ;;  %v5306_v62 = vld [vmem:[%s9220_s0 + $0x282] sm:$0x3]  ;;  %v5307_v63 = vld [vmem:[%s9220_s0 + $0x280] sm:$0x3] }
  0x80   :  { %953 = vst [vmem:[#allocation0 + $0xa10] sm:$0x3] %v5305_v61  ;;  %958 = vst [vmem:[#allocation0 + $0xa08] sm:$0x3] %v5306_v62  ;;  %v5308_v0 = vld [vmem:[%s9220_s0 + $0x27e] sm:$0x3] }
  0x81   :  { %963 = vst [vmem:[#allocation0 + $0xa00] sm:$0x3] %v5307_v63  ;;  %v5309_v1 = vld [vmem:[%s9220_s0 + $0x27c] sm:$0x3]  ;;  %v5310_v2 = vld [vmem:[%s9220_s0 + $0x27a] sm:$0x3] }
  0x82   :  { %968 = vst [vmem:[#allocation0 + $0x9f8] sm:$0x3] %v5308_v0  ;;  %973 = vst [vmem:[#allocation0 + $0x9f0] sm:$0x3] %v5309_v1  ;;  %v5311_v3 = vld [vmem:[%s9220_s0 + $0x278] sm:$0x3] }
  0x83   :  { %978 = vst [vmem:[#allocation0 + $0x9e8] sm:$0x3] %v5310_v2  ;;  %v5312_v4 = vld [vmem:[%s9220_s0 + $0x276] sm:$0x3]  ;;  %v5313_v5 = vld [vmem:[%s9220_s0 + $0x274] sm:$0x3] }
  0x84   :  { %983 = vst [vmem:[#allocation0 + $0x9e0] sm:$0x3] %v5311_v3  ;;  %988 = vst [vmem:[#allocation0 + $0x9d8] sm:$0x3] %v5312_v4  ;;  %v5314_v6 = vld [vmem:[%s9220_s0 + $0x272] sm:$0x3] }
  0x85   :  { %993 = vst [vmem:[#allocation0 + $0x9d0] sm:$0x3] %v5313_v5  ;;  %v5315_v7 = vld [vmem:[%s9220_s0 + $0x270] sm:$0x3]  ;;  %v5316_v8 = vld [vmem:[%s9220_s0 + $0x26e] sm:$0x3] }
  0x86   :  { %998 = vst [vmem:[#allocation0 + $0x9c8] sm:$0x3] %v5314_v6  ;;  %1003 = vst [vmem:[#allocation0 + $0x9c0] sm:$0x3] %v5315_v7  ;;  %v5317_v9 = vld [vmem:[%s9220_s0 + $0x26c] sm:$0x3] }
  0x87   :  { %1008 = vst [vmem:[#allocation0 + $0x9b8] sm:$0x3] %v5316_v8  ;;  %v5318_v10 = vld [vmem:[%s9220_s0 + $0x26a] sm:$0x3]  ;;  %v5319_v11 = vld [vmem:[%s9220_s0 + $0x268] sm:$0x3] }
  0x88   :  { %1013 = vst [vmem:[#allocation0 + $0x9b0] sm:$0x3] %v5317_v9  ;;  %1018 = vst [vmem:[#allocation0 + $0x9a8] sm:$0x3] %v5318_v10  ;;  %v5320_v12 = vld [vmem:[%s9220_s0 + $0x266] sm:$0x3] }
  0x89   :  { %1023 = vst [vmem:[#allocation0 + $0x9a0] sm:$0x3] %v5319_v11  ;;  %v5321_v13 = vld [vmem:[%s9220_s0 + $0x264] sm:$0x3]  ;;  %v5322_v14 = vld [vmem:[%s9220_s0 + $0x262] sm:$0x3] }
  0x8a   :  { %1028 = vst [vmem:[#allocation0 + $0x998] sm:$0x3] %v5320_v12  ;;  %1033 = vst [vmem:[#allocation0 + $0x990] sm:$0x3] %v5321_v13  ;;  %v5323_v15 = vld [vmem:[%s9220_s0 + $0x260] sm:$0x3] }
  0x8b   :  { %1038 = vst [vmem:[#allocation0 + $0x988] sm:$0x3] %v5322_v14  ;;  %v5324_v16 = vld [vmem:[%s9220_s0 + $0x25e] sm:$0x3]  ;;  %v5325_v17 = vld [vmem:[%s9220_s0 + $0x25c] sm:$0x3] }
  0x8c   :  { %1043 = vst [vmem:[#allocation0 + $0x980] sm:$0x3] %v5323_v15  ;;  %1048 = vst [vmem:[#allocation0 + $0x978] sm:$0x3] %v5324_v16  ;;  %v5326_v18 = vld [vmem:[%s9220_s0 + $0x25a] sm:$0x3] }
  0x8d   :  { %1053 = vst [vmem:[#allocation0 + $0x970] sm:$0x3] %v5325_v17  ;;  %v5327_v19 = vld [vmem:[%s9220_s0 + $0x258] sm:$0x3]  ;;  %v5328_v20 = vld [vmem:[%s9220_s0 + $0x256] sm:$0x3] }
  0x8e   :  { %1058 = vst [vmem:[#allocation0 + $0x968] sm:$0x3] %v5326_v18  ;;  %1063 = vst [vmem:[#allocation0 + $0x960] sm:$0x3] %v5327_v19  ;;  %v5329_v21 = vld [vmem:[%s9220_s0 + $0x254] sm:$0x3] }
  0x8f   :  { %1068 = vst [vmem:[#allocation0 + $0x958] sm:$0x3] %v5328_v20  ;;  %v5330_v22 = vld [vmem:[%s9220_s0 + $0x252] sm:$0x3]  ;;  %v5331_v23 = vld [vmem:[%s9220_s0 + $0x250] sm:$0x3] }
  0x90   :  { %1073 = vst [vmem:[#allocation0 + $0x950] sm:$0x3] %v5329_v21  ;;  %1078 = vst [vmem:[#allocation0 + $0x948] sm:$0x3] %v5330_v22  ;;  %v5332_v24 = vld [vmem:[%s9220_s0 + $0x24e] sm:$0x3] }
  0x91   :  { %1083 = vst [vmem:[#allocation0 + $0x940] sm:$0x3] %v5331_v23  ;;  %v5333_v25 = vld [vmem:[%s9220_s0 + $0x24c] sm:$0x3]  ;;  %v5334_v26 = vld [vmem:[%s9220_s0 + $0x24a] sm:$0x3] }
  0x92   :  { %1088 = vst [vmem:[#allocation0 + $0x938] sm:$0x3] %v5332_v24  ;;  %1093 = vst [vmem:[#allocation0 + $0x930] sm:$0x3] %v5333_v25  ;;  %v5335_v27 = vld [vmem:[%s9220_s0 + $0x248] sm:$0x3] }
  0x93   :  { %1098 = vst [vmem:[#allocation0 + $0x928] sm:$0x3] %v5334_v26  ;;  %v5336_v28 = vld [vmem:[%s9220_s0 + $0x246] sm:$0x3]  ;;  %v5337_v29 = vld [vmem:[%s9220_s0 + $0x244] sm:$0x3] }
  0x94   :  { %1103 = vst [vmem:[#allocation0 + $0x920] sm:$0x3] %v5335_v27  ;;  %1108 = vst [vmem:[#allocation0 + $0x918] sm:$0x3] %v5336_v28  ;;  %v5338_v30 = vld [vmem:[%s9220_s0 + $0x242] sm:$0x3] }
  0x95   :  { %1113 = vst [vmem:[#allocation0 + $0x910] sm:$0x3] %v5337_v29  ;;  %v5339_v31 = vld [vmem:[%s9220_s0 + $0x240] sm:$0x3]  ;;  %v5340_v32 = vld [vmem:[%s9220_s0 + $0x23e] sm:$0x3] }
  0x96   :  { %1118 = vst [vmem:[#allocation0 + $0x908] sm:$0x3] %v5338_v30  ;;  %1123 = vst [vmem:[#allocation0 + $0x900] sm:$0x3] %v5339_v31  ;;  %v5341_v33 = vld [vmem:[%s9220_s0 + $0x23c] sm:$0x3] }
  0x97   :  { %1128 = vst [vmem:[#allocation0 + $0x8f8] sm:$0x3] %v5340_v32  ;;  %v5342_v34 = vld [vmem:[%s9220_s0 + $0x23a] sm:$0x3]  ;;  %v5343_v35 = vld [vmem:[%s9220_s0 + $0x238] sm:$0x3] }
  0x98   :  { %1133 = vst [vmem:[#allocation0 + $0x8f0] sm:$0x3] %v5341_v33  ;;  %1138 = vst [vmem:[#allocation0 + $0x8e8] sm:$0x3] %v5342_v34  ;;  %v5344_v36 = vld [vmem:[%s9220_s0 + $0x236] sm:$0x3] }
  0x99   :  { %1143 = vst [vmem:[#allocation0 + $0x8e0] sm:$0x3] %v5343_v35  ;;  %v5345_v37 = vld [vmem:[%s9220_s0 + $0x234] sm:$0x3]  ;;  %v5346_v38 = vld [vmem:[%s9220_s0 + $0x232] sm:$0x3] }
  0x9a   :  { %1148 = vst [vmem:[#allocation0 + $0x8d8] sm:$0x3] %v5344_v36  ;;  %1153 = vst [vmem:[#allocation0 + $0x8d0] sm:$0x3] %v5345_v37  ;;  %v5347_v39 = vld [vmem:[%s9220_s0 + $0x230] sm:$0x3] }
  0x9b   :  { %1158 = vst [vmem:[#allocation0 + $0x8c8] sm:$0x3] %v5346_v38  ;;  %v5348_v40 = vld [vmem:[%s9220_s0 + $0x22e] sm:$0x3]  ;;  %v5349_v41 = vld [vmem:[%s9220_s0 + $0x22c] sm:$0x3] }
  0x9c   :  { %1163 = vst [vmem:[#allocation0 + $0x8c0] sm:$0x3] %v5347_v39  ;;  %1168 = vst [vmem:[#allocation0 + $0x8b8] sm:$0x3] %v5348_v40  ;;  %v5350_v42 = vld [vmem:[%s9220_s0 + $0x22a] sm:$0x3] }
  0x9d   :  { %1173 = vst [vmem:[#allocation0 + $0x8b0] sm:$0x3] %v5349_v41  ;;  %v5351_v43 = vld [vmem:[%s9220_s0 + $0x228] sm:$0x3]  ;;  %v5352_v44 = vld [vmem:[%s9220_s0 + $0x226] sm:$0x3] }
  0x9e   :  { %1178 = vst [vmem:[#allocation0 + $0x8a8] sm:$0x3] %v5350_v42  ;;  %1183 = vst [vmem:[#allocation0 + $0x8a0] sm:$0x3] %v5351_v43  ;;  %v5353_v45 = vld [vmem:[%s9220_s0 + $0x224] sm:$0x3] }
  0x9f   :  { %1188 = vst [vmem:[#allocation0 + $0x898] sm:$0x3] %v5352_v44  ;;  %v5354_v46 = vld [vmem:[%s9220_s0 + $0x222] sm:$0x3]  ;;  %v5355_v47 = vld [vmem:[%s9220_s0 + $0x220] sm:$0x3] }
  0xa0   :  { %1193 = vst [vmem:[#allocation0 + $0x890] sm:$0x3] %v5353_v45  ;;  %1198 = vst [vmem:[#allocation0 + $0x888] sm:$0x3] %v5354_v46  ;;  %v5356_v48 = vld [vmem:[%s9220_s0 + $0x21e] sm:$0x3] }
  0xa1   :  { %1203 = vst [vmem:[#allocation0 + $0x880] sm:$0x3] %v5355_v47  ;;  %v5357_v49 = vld [vmem:[%s9220_s0 + $0x21c] sm:$0x3]  ;;  %v5358_v50 = vld [vmem:[%s9220_s0 + $0x21a] sm:$0x3] }
  0xa2   :  { %1208 = vst [vmem:[#allocation0 + $0x878] sm:$0x3] %v5356_v48  ;;  %1213 = vst [vmem:[#allocation0 + $0x870] sm:$0x3] %v5357_v49  ;;  %v5359_v51 = vld [vmem:[%s9220_s0 + $0x218] sm:$0x3] }
  0xa3   :  { %1218 = vst [vmem:[#allocation0 + $0x868] sm:$0x3] %v5358_v50  ;;  %v5360_v52 = vld [vmem:[%s9220_s0 + $0x216] sm:$0x3]  ;;  %v5361_v53 = vld [vmem:[%s9220_s0 + $0x214] sm:$0x3] }
  0xa4   :  { %1223 = vst [vmem:[#allocation0 + $0x860] sm:$0x3] %v5359_v51  ;;  %1228 = vst [vmem:[#allocation0 + $0x858] sm:$0x3] %v5360_v52  ;;  %v5362_v54 = vld [vmem:[%s9220_s0 + $0x212] sm:$0x3] }
  0xa5   :  { %1233 = vst [vmem:[#allocation0 + $0x850] sm:$0x3] %v5361_v53  ;;  %v5363_v55 = vld [vmem:[%s9220_s0 + $0x210] sm:$0x3]  ;;  %v5364_v56 = vld [vmem:[%s9220_s0 + $0x20e] sm:$0x3] }
  0xa6   :  { %1238 = vst [vmem:[#allocation0 + $0x848] sm:$0x3] %v5362_v54  ;;  %1243 = vst [vmem:[#allocation0 + $0x840] sm:$0x3] %v5363_v55  ;;  %v5365_v57 = vld [vmem:[%s9220_s0 + $0x20c] sm:$0x3] }
  0xa7   :  { %1248 = vst [vmem:[#allocation0 + $0x838] sm:$0x3] %v5364_v56  ;;  %v5366_v58 = vld [vmem:[%s9220_s0 + $0x20a] sm:$0x3]  ;;  %v5367_v59 = vld [vmem:[%s9220_s0 + $0x208] sm:$0x3] }
  0xa8   :  { %1253 = vst [vmem:[#allocation0 + $0x830] sm:$0x3] %v5365_v57  ;;  %1258 = vst [vmem:[#allocation0 + $0x828] sm:$0x3] %v5366_v58  ;;  %v5368_v60 = vld [vmem:[%s9220_s0 + $0x206] sm:$0x3] }
  0xa9   :  { %1263 = vst [vmem:[#allocation0 + $0x820] sm:$0x3] %v5367_v59  ;;  %v5369_v61 = vld [vmem:[%s9220_s0 + $0x204] sm:$0x3]  ;;  %v5370_v62 = vld [vmem:[%s9220_s0 + $0x202] sm:$0x3] }
  0xaa   :  { %1268 = vst [vmem:[#allocation0 + $0x818] sm:$0x3] %v5368_v60  ;;  %1273 = vst [vmem:[#allocation0 + $0x810] sm:$0x3] %v5369_v61  ;;  %v5371_v63 = vld [vmem:[%s9220_s0 + $0x200] sm:$0x3] }
  0xab   :  { %1278 = vst [vmem:[#allocation0 + $0x808] sm:$0x3] %v5370_v62  ;;  %v5372_v0 = vld [vmem:[%s9220_s0 + $0x1fe] sm:$0x3]  ;;  %v5373_v1 = vld [vmem:[%s9220_s0 + $0x1fc] sm:$0x3] }
  0xac   :  { %1283 = vst [vmem:[#allocation0 + $0x800] sm:$0x3] %v5371_v63  ;;  %1288 = vst [vmem:[#allocation0 + $0x7f8] sm:$0x3] %v5372_v0  ;;  %v5374_v2 = vld [vmem:[%s9220_s0 + $0x1fa] sm:$0x3] }
  0xad   :  { %1293 = vst [vmem:[#allocation0 + $0x7f0] sm:$0x3] %v5373_v1  ;;  %v5375_v3 = vld [vmem:[%s9220_s0 + $0x1f8] sm:$0x3]  ;;  %v5376_v4 = vld [vmem:[%s9220_s0 + $0x1f6] sm:$0x3] }
  0xae   :  { %1298 = vst [vmem:[#allocation0 + $0x7e8] sm:$0x3] %v5374_v2  ;;  %1303 = vst [vmem:[#allocation0 + $0x7e0] sm:$0x3] %v5375_v3  ;;  %v5377_v5 = vld [vmem:[%s9220_s0 + $0x1f4] sm:$0x3] }
  0xaf   :  { %1308 = vst [vmem:[#allocation0 + $0x7d8] sm:$0x3] %v5376_v4  ;;  %v5378_v6 = vld [vmem:[%s9220_s0 + $0x1f2] sm:$0x3]  ;;  %v5379_v7 = vld [vmem:[%s9220_s0 + $0x1f0] sm:$0x3] }
  0xb0   :  { %1313 = vst [vmem:[#allocation0 + $0x7d0] sm:$0x3] %v5377_v5  ;;  %1318 = vst [vmem:[#allocation0 + $0x7c8] sm:$0x3] %v5378_v6  ;;  %v5380_v8 = vld [vmem:[%s9220_s0 + $0x1ee] sm:$0x3] }
  0xb1   :  { %1323 = vst [vmem:[#allocation0 + $0x7c0] sm:$0x3] %v5379_v7  ;;  %v5381_v9 = vld [vmem:[%s9220_s0 + $0x1ec] sm:$0x3]  ;;  %v5382_v10 = vld [vmem:[%s9220_s0 + $0x1ea] sm:$0x3] }
  0xb2   :  { %1328 = vst [vmem:[#allocation0 + $0x7b8] sm:$0x3] %v5380_v8  ;;  %1333 = vst [vmem:[#allocation0 + $0x7b0] sm:$0x3] %v5381_v9  ;;  %v5383_v11 = vld [vmem:[%s9220_s0 + $0x1e8] sm:$0x3] }
  0xb3   :  { %1338 = vst [vmem:[#allocation0 + $0x7a8] sm:$0x3] %v5382_v10  ;;  %v5384_v12 = vld [vmem:[%s9220_s0 + $0x1e6] sm:$0x3]  ;;  %v5385_v13 = vld [vmem:[%s9220_s0 + $0x1e4] sm:$0x3] }
  0xb4   :  { %1343 = vst [vmem:[#allocation0 + $0x7a0] sm:$0x3] %v5383_v11  ;;  %1348 = vst [vmem:[#allocation0 + $0x798] sm:$0x3] %v5384_v12  ;;  %v5386_v14 = vld [vmem:[%s9220_s0 + $0x1e2] sm:$0x3] }
  0xb5   :  { %1353 = vst [vmem:[#allocation0 + $0x790] sm:$0x3] %v5385_v13  ;;  %v5387_v15 = vld [vmem:[%s9220_s0 + $0x1e0] sm:$0x3]  ;;  %v5388_v16 = vld [vmem:[%s9220_s0 + $0x1de] sm:$0x3] }
  0xb6   :  { %1358 = vst [vmem:[#allocation0 + $0x788] sm:$0x3] %v5386_v14  ;;  %1363 = vst [vmem:[#allocation0 + $0x780] sm:$0x3] %v5387_v15  ;;  %v5389_v17 = vld [vmem:[%s9220_s0 + $0x1dc] sm:$0x3] }
  0xb7   :  { %1368 = vst [vmem:[#allocation0 + $0x778] sm:$0x3] %v5388_v16  ;;  %v5390_v18 = vld [vmem:[%s9220_s0 + $0x1da] sm:$0x3]  ;;  %v5391_v19 = vld [vmem:[%s9220_s0 + $0x1d8] sm:$0x3] }
  0xb8   :  { %1373 = vst [vmem:[#allocation0 + $0x770] sm:$0x3] %v5389_v17  ;;  %1378 = vst [vmem:[#allocation0 + $0x768] sm:$0x3] %v5390_v18  ;;  %v5392_v20 = vld [vmem:[%s9220_s0 + $0x1d6] sm:$0x3] }
  0xb9   :  { %1383 = vst [vmem:[#allocation0 + $0x760] sm:$0x3] %v5391_v19  ;;  %v5393_v21 = vld [vmem:[%s9220_s0 + $0x1d4] sm:$0x3]  ;;  %v5394_v22 = vld [vmem:[%s9220_s0 + $0x1d2] sm:$0x3] }
  0xba   :  { %1388 = vst [vmem:[#allocation0 + $0x758] sm:$0x3] %v5392_v20  ;;  %1393 = vst [vmem:[#allocation0 + $0x750] sm:$0x3] %v5393_v21  ;;  %v5395_v23 = vld [vmem:[%s9220_s0 + $0x1d0] sm:$0x3] }
  0xbb   :  { %1398 = vst [vmem:[#allocation0 + $0x748] sm:$0x3] %v5394_v22  ;;  %v5396_v24 = vld [vmem:[%s9220_s0 + $0x1ce] sm:$0x3]  ;;  %v5397_v25 = vld [vmem:[%s9220_s0 + $0x1cc] sm:$0x3] }
  0xbc   :  { %1403 = vst [vmem:[#allocation0 + $0x740] sm:$0x3] %v5395_v23  ;;  %1408 = vst [vmem:[#allocation0 + $0x738] sm:$0x3] %v5396_v24  ;;  %v5398_v26 = vld [vmem:[%s9220_s0 + $0x1ca] sm:$0x3] }
  0xbd   :  { %1413 = vst [vmem:[#allocation0 + $0x730] sm:$0x3] %v5397_v25  ;;  %v5399_v27 = vld [vmem:[%s9220_s0 + $0x1c8] sm:$0x3]  ;;  %v5400_v28 = vld [vmem:[%s9220_s0 + $0x1c6] sm:$0x3] }
  0xbe   :  { %1418 = vst [vmem:[#allocation0 + $0x728] sm:$0x3] %v5398_v26  ;;  %1423 = vst [vmem:[#allocation0 + $0x720] sm:$0x3] %v5399_v27  ;;  %v5401_v29 = vld [vmem:[%s9220_s0 + $0x1c4] sm:$0x3] }
  0xbf   :  { %1428 = vst [vmem:[#allocation0 + $0x718] sm:$0x3] %v5400_v28  ;;  %v5402_v30 = vld [vmem:[%s9220_s0 + $0x1c2] sm:$0x3]  ;;  %v5403_v31 = vld [vmem:[%s9220_s0 + $0x1c0] sm:$0x3] }
  0xc0   :  { %1433 = vst [vmem:[#allocation0 + $0x710] sm:$0x3] %v5401_v29  ;;  %1438 = vst [vmem:[#allocation0 + $0x708] sm:$0x3] %v5402_v30  ;;  %v5404_v32 = vld [vmem:[%s9220_s0 + $0x1be] sm:$0x3] }
  0xc1   :  { %1443 = vst [vmem:[#allocation0 + $0x700] sm:$0x3] %v5403_v31  ;;  %v5405_v33 = vld [vmem:[%s9220_s0 + $0x1bc] sm:$0x3]  ;;  %v5406_v34 = vld [vmem:[%s9220_s0 + $0x1ba] sm:$0x3] }
  0xc2   :  { %1448 = vst [vmem:[#allocation0 + $0x6f8] sm:$0x3] %v5404_v32  ;;  %1453 = vst [vmem:[#allocation0 + $0x6f0] sm:$0x3] %v5405_v33  ;;  %v5407_v35 = vld [vmem:[%s9220_s0 + $0x1b8] sm:$0x3] }
  0xc3   :  { %1458 = vst [vmem:[#allocation0 + $0x6e8] sm:$0x3] %v5406_v34  ;;  %v5408_v36 = vld [vmem:[%s9220_s0 + $0x1b6] sm:$0x3]  ;;  %v5409_v37 = vld [vmem:[%s9220_s0 + $0x1b4] sm:$0x3] }
  0xc4   :  { %1463 = vst [vmem:[#allocation0 + $0x6e0] sm:$0x3] %v5407_v35  ;;  %1468 = vst [vmem:[#allocation0 + $0x6d8] sm:$0x3] %v5408_v36  ;;  %v5410_v38 = vld [vmem:[%s9220_s0 + $0x1b2] sm:$0x3] }
  0xc5   :  { %1473 = vst [vmem:[#allocation0 + $0x6d0] sm:$0x3] %v5409_v37  ;;  %v5411_v39 = vld [vmem:[%s9220_s0 + $0x1b0] sm:$0x3]  ;;  %v5412_v40 = vld [vmem:[%s9220_s0 + $0x1ae] sm:$0x3] }
  0xc6   :  { %1478 = vst [vmem:[#allocation0 + $0x6c8] sm:$0x3] %v5410_v38  ;;  %1483 = vst [vmem:[#allocation0 + $0x6c0] sm:$0x3] %v5411_v39  ;;  %v5413_v41 = vld [vmem:[%s9220_s0 + $0x1ac] sm:$0x3] }
  0xc7   :  { %1488 = vst [vmem:[#allocation0 + $0x6b8] sm:$0x3] %v5412_v40  ;;  %v5414_v42 = vld [vmem:[%s9220_s0 + $0x1aa] sm:$0x3]  ;;  %v5415_v43 = vld [vmem:[%s9220_s0 + $0x1a8] sm:$0x3] }
  0xc8   :  { %1493 = vst [vmem:[#allocation0 + $0x6b0] sm:$0x3] %v5413_v41  ;;  %1498 = vst [vmem:[#allocation0 + $0x6a8] sm:$0x3] %v5414_v42  ;;  %v5416_v44 = vld [vmem:[%s9220_s0 + $0x1a6] sm:$0x3] }
  0xc9   :  { %1503 = vst [vmem:[#allocation0 + $0x6a0] sm:$0x3] %v5415_v43  ;;  %v5417_v45 = vld [vmem:[%s9220_s0 + $0x1a4] sm:$0x3]  ;;  %v5418_v46 = vld [vmem:[%s9220_s0 + $0x1a2] sm:$0x3] }
  0xca   :  { %1508 = vst [vmem:[#allocation0 + $0x698] sm:$0x3] %v5416_v44  ;;  %1513 = vst [vmem:[#allocation0 + $0x690] sm:$0x3] %v5417_v45  ;;  %v5419_v47 = vld [vmem:[%s9220_s0 + $0x1a0] sm:$0x3] }
  0xcb   :  { %1518 = vst [vmem:[#allocation0 + $0x688] sm:$0x3] %v5418_v46  ;;  %v5420_v48 = vld [vmem:[%s9220_s0 + $0x19e] sm:$0x3]  ;;  %v5421_v49 = vld [vmem:[%s9220_s0 + $0x19c] sm:$0x3] }
  0xcc   :  { %1523 = vst [vmem:[#allocation0 + $0x680] sm:$0x3] %v5419_v47  ;;  %1528 = vst [vmem:[#allocation0 + $0x678] sm:$0x3] %v5420_v48  ;;  %v5422_v50 = vld [vmem:[%s9220_s0 + $0x19a] sm:$0x3] }
  0xcd   :  { %1533 = vst [vmem:[#allocation0 + $0x670] sm:$0x3] %v5421_v49  ;;  %v5423_v51 = vld [vmem:[%s9220_s0 + $0x198] sm:$0x3]  ;;  %v5424_v52 = vld [vmem:[%s9220_s0 + $0x196] sm:$0x3] }
  0xce   :  { %1538 = vst [vmem:[#allocation0 + $0x668] sm:$0x3] %v5422_v50  ;;  %1543 = vst [vmem:[#allocation0 + $0x660] sm:$0x3] %v5423_v51  ;;  %v5425_v53 = vld [vmem:[%s9220_s0 + $0x194] sm:$0x3] }
  0xcf   :  { %1548 = vst [vmem:[#allocation0 + $0x658] sm:$0x3] %v5424_v52  ;;  %v5426_v54 = vld [vmem:[%s9220_s0 + $0x192] sm:$0x3]  ;;  %v5427_v55 = vld [vmem:[%s9220_s0 + $0x190] sm:$0x3] }
  0xd0   :  { %1553 = vst [vmem:[#allocation0 + $0x650] sm:$0x3] %v5425_v53  ;;  %1558 = vst [vmem:[#allocation0 + $0x648] sm:$0x3] %v5426_v54  ;;  %v5428_v56 = vld [vmem:[%s9220_s0 + $0x18e] sm:$0x3] }
  0xd1   :  { %1563 = vst [vmem:[#allocation0 + $0x640] sm:$0x3] %v5427_v55  ;;  %v5429_v57 = vld [vmem:[%s9220_s0 + $0x18c] sm:$0x3]  ;;  %v5430_v58 = vld [vmem:[%s9220_s0 + $0x18a] sm:$0x3] }
  0xd2   :  { %1568 = vst [vmem:[#allocation0 + $0x638] sm:$0x3] %v5428_v56  ;;  %1573 = vst [vmem:[#allocation0 + $0x630] sm:$0x3] %v5429_v57  ;;  %v5431_v59 = vld [vmem:[%s9220_s0 + $0x188] sm:$0x3] }
  0xd3   :  { %1578 = vst [vmem:[#allocation0 + $0x628] sm:$0x3] %v5430_v58  ;;  %v5432_v60 = vld [vmem:[%s9220_s0 + $0x186] sm:$0x3]  ;;  %v5433_v61 = vld [vmem:[%s9220_s0 + $0x184] sm:$0x3] }
  0xd4   :  { %1583 = vst [vmem:[#allocation0 + $0x620] sm:$0x3] %v5431_v59  ;;  %1588 = vst [vmem:[#allocation0 + $0x618] sm:$0x3] %v5432_v60  ;;  %v5434_v62 = vld [vmem:[%s9220_s0 + $0x182] sm:$0x3] }
  0xd5   :  { %1593 = vst [vmem:[#allocation0 + $0x610] sm:$0x3] %v5433_v61  ;;  %v5435_v63 = vld [vmem:[%s9220_s0 + $0x180] sm:$0x3]  ;;  %v5436_v0 = vld [vmem:[%s9220_s0 + $0x17e] sm:$0x3] }
  0xd6   :  { %1598 = vst [vmem:[#allocation0 + $0x608] sm:$0x3] %v5434_v62  ;;  %1603 = vst [vmem:[#allocation0 + $0x600] sm:$0x3] %v5435_v63  ;;  %v5437_v1 = vld [vmem:[%s9220_s0 + $0x17c] sm:$0x3] }
  0xd7   :  { %1608 = vst [vmem:[#allocation0 + $0x5f8] sm:$0x3] %v5436_v0  ;;  %v5438_v2 = vld [vmem:[%s9220_s0 + $0x17a] sm:$0x3]  ;;  %v5439_v3 = vld [vmem:[%s9220_s0 + $0x178] sm:$0x3] }
  0xd8   :  { %1613 = vst [vmem:[#allocation0 + $0x5f0] sm:$0x3] %v5437_v1  ;;  %1618 = vst [vmem:[#allocation0 + $0x5e8] sm:$0x3] %v5438_v2  ;;  %v5440_v4 = vld [vmem:[%s9220_s0 + $0x176] sm:$0x3] }
  0xd9   :  { %1623 = vst [vmem:[#allocation0 + $0x5e0] sm:$0x3] %v5439_v3  ;;  %v5441_v5 = vld [vmem:[%s9220_s0 + $0x174] sm:$0x3]  ;;  %v5442_v6 = vld [vmem:[%s9220_s0 + $0x172] sm:$0x3] }
  0xda   :  { %1628 = vst [vmem:[#allocation0 + $0x5d8] sm:$0x3] %v5440_v4  ;;  %1633 = vst [vmem:[#allocation0 + $0x5d0] sm:$0x3] %v5441_v5  ;;  %v5443_v7 = vld [vmem:[%s9220_s0 + $0x170] sm:$0x3] }
  0xdb   :  { %1638 = vst [vmem:[#allocation0 + $0x5c8] sm:$0x3] %v5442_v6  ;;  %v5444_v8 = vld [vmem:[%s9220_s0 + $0x16e] sm:$0x3]  ;;  %v5445_v9 = vld [vmem:[%s9220_s0 + $0x16c] sm:$0x3] }
  0xdc   :  { %1643 = vst [vmem:[#allocation0 + $0x5c0] sm:$0x3] %v5443_v7  ;;  %1648 = vst [vmem:[#allocation0 + $0x5b8] sm:$0x3] %v5444_v8  ;;  %v5446_v10 = vld [vmem:[%s9220_s0 + $0x16a] sm:$0x3] }
  0xdd   :  { %1653 = vst [vmem:[#allocation0 + $0x5b0] sm:$0x3] %v5445_v9  ;;  %v5447_v11 = vld [vmem:[%s9220_s0 + $0x168] sm:$0x3]  ;;  %v5448_v12 = vld [vmem:[%s9220_s0 + $0x166] sm:$0x3] }
  0xde   :  { %1658 = vst [vmem:[#allocation0 + $0x5a8] sm:$0x3] %v5446_v10  ;;  %1663 = vst [vmem:[#allocation0 + $0x5a0] sm:$0x3] %v5447_v11  ;;  %v5449_v13 = vld [vmem:[%s9220_s0 + $0x164] sm:$0x3] }
  0xdf   :  { %1668 = vst [vmem:[#allocation0 + $0x598] sm:$0x3] %v5448_v12  ;;  %v5450_v14 = vld [vmem:[%s9220_s0 + $0x162] sm:$0x3]  ;;  %v5451_v15 = vld [vmem:[%s9220_s0 + $0x160] sm:$0x3] }
  0xe0   :  { %1673 = vst [vmem:[#allocation0 + $0x590] sm:$0x3] %v5449_v13  ;;  %1678 = vst [vmem:[#allocation0 + $0x588] sm:$0x3] %v5450_v14  ;;  %v5452_v16 = vld [vmem:[%s9220_s0 + $0x15e] sm:$0x3] }
  0xe1   :  { %1683 = vst [vmem:[#allocation0 + $0x580] sm:$0x3] %v5451_v15  ;;  %v5453_v17 = vld [vmem:[%s9220_s0 + $0x15c] sm:$0x3]  ;;  %v5454_v18 = vld [vmem:[%s9220_s0 + $0x15a] sm:$0x3] }
  0xe2   :  { %1688 = vst [vmem:[#allocation0 + $0x578] sm:$0x3] %v5452_v16  ;;  %1693 = vst [vmem:[#allocation0 + $0x570] sm:$0x3] %v5453_v17  ;;  %v5455_v19 = vld [vmem:[%s9220_s0 + $0x158] sm:$0x3] }
  0xe3   :  { %1698 = vst [vmem:[#allocation0 + $0x568] sm:$0x3] %v5454_v18  ;;  %v5456_v20 = vld [vmem:[%s9220_s0 + $0x156] sm:$0x3]  ;;  %v5457_v21 = vld [vmem:[%s9220_s0 + $0x154] sm:$0x3] }
  0xe4   :  { %1703 = vst [vmem:[#allocation0 + $0x560] sm:$0x3] %v5455_v19  ;;  %1708 = vst [vmem:[#allocation0 + $0x558] sm:$0x3] %v5456_v20  ;;  %v5458_v22 = vld [vmem:[%s9220_s0 + $0x152] sm:$0x3] }
  0xe5   :  { %1713 = vst [vmem:[#allocation0 + $0x550] sm:$0x3] %v5457_v21  ;;  %v5459_v23 = vld [vmem:[%s9220_s0 + $0x150] sm:$0x3]  ;;  %v5460_v24 = vld [vmem:[%s9220_s0 + $0x14e] sm:$0x3] }
  0xe6   :  { %1718 = vst [vmem:[#allocation0 + $0x548] sm:$0x3] %v5458_v22  ;;  %1723 = vst [vmem:[#allocation0 + $0x540] sm:$0x3] %v5459_v23  ;;  %v5461_v25 = vld [vmem:[%s9220_s0 + $0x14c] sm:$0x3] }
  0xe7   :  { %1728 = vst [vmem:[#allocation0 + $0x538] sm:$0x3] %v5460_v24  ;;  %v5462_v26 = vld [vmem:[%s9220_s0 + $0x14a] sm:$0x3]  ;;  %v5463_v27 = vld [vmem:[%s9220_s0 + $0x148] sm:$0x3] }
  0xe8   :  { %1733 = vst [vmem:[#allocation0 + $0x530] sm:$0x3] %v5461_v25  ;;  %1738 = vst [vmem:[#allocation0 + $0x528] sm:$0x3] %v5462_v26  ;;  %v5464_v28 = vld [vmem:[%s9220_s0 + $0x146] sm:$0x3] }
  0xe9   :  { %1743 = vst [vmem:[#allocation0 + $0x520] sm:$0x3] %v5463_v27  ;;  %v5465_v29 = vld [vmem:[%s9220_s0 + $0x144] sm:$0x3]  ;;  %v5466_v30 = vld [vmem:[%s9220_s0 + $0x142] sm:$0x3] }
  0xea   :  { %1748 = vst [vmem:[#allocation0 + $0x518] sm:$0x3] %v5464_v28  ;;  %1753 = vst [vmem:[#allocation0 + $0x510] sm:$0x3] %v5465_v29  ;;  %v5467_v31 = vld [vmem:[%s9220_s0 + $0x140] sm:$0x3] }
  0xeb   :  { %1758 = vst [vmem:[#allocation0 + $0x508] sm:$0x3] %v5466_v30  ;;  %v5468_v32 = vld [vmem:[%s9220_s0 + $0x13e] sm:$0x3]  ;;  %v5469_v33 = vld [vmem:[%s9220_s0 + $0x13c] sm:$0x3] }
  0xec   :  { %1763 = vst [vmem:[#allocation0 + $0x500] sm:$0x3] %v5467_v31  ;;  %1768 = vst [vmem:[#allocation0 + $0x4f8] sm:$0x3] %v5468_v32  ;;  %v5470_v34 = vld [vmem:[%s9220_s0 + $0x13a] sm:$0x3] }
  0xed   :  { %1773 = vst [vmem:[#allocation0 + $0x4f0] sm:$0x3] %v5469_v33  ;;  %v5471_v35 = vld [vmem:[%s9220_s0 + $0x138] sm:$0x3]  ;;  %v5472_v36 = vld [vmem:[%s9220_s0 + $0x136] sm:$0x3] }
  0xee   :  { %1778 = vst [vmem:[#allocation0 + $0x4e8] sm:$0x3] %v5470_v34  ;;  %1783 = vst [vmem:[#allocation0 + $0x4e0] sm:$0x3] %v5471_v35  ;;  %v5473_v37 = vld [vmem:[%s9220_s0 + $0x134] sm:$0x3] }
  0xef   :  { %1788 = vst [vmem:[#allocation0 + $0x4d8] sm:$0x3] %v5472_v36  ;;  %v5474_v38 = vld [vmem:[%s9220_s0 + $0x132] sm:$0x3]  ;;  %v5475_v39 = vld [vmem:[%s9220_s0 + $0x130] sm:$0x3] }
  0xf0   :  { %1793 = vst [vmem:[#allocation0 + $0x4d0] sm:$0x3] %v5473_v37  ;;  %1798 = vst [vmem:[#allocation0 + $0x4c8] sm:$0x3] %v5474_v38  ;;  %v5476_v40 = vld [vmem:[%s9220_s0 + $0x12e] sm:$0x3] }
  0xf1   :  { %1803 = vst [vmem:[#allocation0 + $0x4c0] sm:$0x3] %v5475_v39  ;;  %v5477_v41 = vld [vmem:[%s9220_s0 + $0x12c] sm:$0x3]  ;;  %v5478_v42 = vld [vmem:[%s9220_s0 + $0x12a] sm:$0x3] }
  0xf2   :  { %1808 = vst [vmem:[#allocation0 + $0x4b8] sm:$0x3] %v5476_v40  ;;  %1813 = vst [vmem:[#allocation0 + $0x4b0] sm:$0x3] %v5477_v41  ;;  %v5479_v43 = vld [vmem:[%s9220_s0 + $0x128] sm:$0x3] }
  0xf3   :  { %1818 = vst [vmem:[#allocation0 + $0x4a8] sm:$0x3] %v5478_v42  ;;  %v5480_v44 = vld [vmem:[%s9220_s0 + $0x126] sm:$0x3]  ;;  %v5481_v45 = vld [vmem:[%s9220_s0 + $0x124] sm:$0x3] }
  0xf4   :  { %1823 = vst [vmem:[#allocation0 + $0x4a0] sm:$0x3] %v5479_v43  ;;  %1828 = vst [vmem:[#allocation0 + $0x498] sm:$0x3] %v5480_v44  ;;  %v5482_v46 = vld [vmem:[%s9220_s0 + $0x122] sm:$0x3] }
  0xf5   :  { %1833 = vst [vmem:[#allocation0 + $0x490] sm:$0x3] %v5481_v45  ;;  %v5483_v47 = vld [vmem:[%s9220_s0 + $0x120] sm:$0x3]  ;;  %v5484_v48 = vld [vmem:[%s9220_s0 + $0x11e] sm:$0x3] }
  0xf6   :  { %1838 = vst [vmem:[#allocation0 + $0x488] sm:$0x3] %v5482_v46  ;;  %1843 = vst [vmem:[#allocation0 + $0x480] sm:$0x3] %v5483_v47  ;;  %v5485_v49 = vld [vmem:[%s9220_s0 + $0x11c] sm:$0x3] }
  0xf7   :  { %1848 = vst [vmem:[#allocation0 + $0x478] sm:$0x3] %v5484_v48  ;;  %v5486_v50 = vld [vmem:[%s9220_s0 + $0x11a] sm:$0x3]  ;;  %v5487_v51 = vld [vmem:[%s9220_s0 + $0x118] sm:$0x3] }
  0xf8   :  { %1853 = vst [vmem:[#allocation0 + $0x470] sm:$0x3] %v5485_v49  ;;  %1858 = vst [vmem:[#allocation0 + $0x468] sm:$0x3] %v5486_v50  ;;  %v5488_v52 = vld [vmem:[%s9220_s0 + $0x116] sm:$0x3] }
  0xf9   :  { %1863 = vst [vmem:[#allocation0 + $0x460] sm:$0x3] %v5487_v51  ;;  %v5489_v53 = vld [vmem:[%s9220_s0 + $0x114] sm:$0x3]  ;;  %v5490_v54 = vld [vmem:[%s9220_s0 + $0x112] sm:$0x3] }
  0xfa   :  { %1868 = vst [vmem:[#allocation0 + $0x458] sm:$0x3] %v5488_v52  ;;  %1873 = vst [vmem:[#allocation0 + $0x450] sm:$0x3] %v5489_v53  ;;  %v5491_v55 = vld [vmem:[%s9220_s0 + $0x110] sm:$0x3] }
  0xfb   :  { %1878 = vst [vmem:[#allocation0 + $0x448] sm:$0x3] %v5490_v54  ;;  %v5492_v56 = vld [vmem:[%s9220_s0 + $0x10e] sm:$0x3]  ;;  %v5493_v57 = vld [vmem:[%s9220_s0 + $0x10c] sm:$0x3] }
  0xfc   :  { %1883 = vst [vmem:[#allocation0 + $0x440] sm:$0x3] %v5491_v55  ;;  %1888 = vst [vmem:[#allocation0 + $0x438] sm:$0x3] %v5492_v56  ;;  %v5494_v58 = vld [vmem:[%s9220_s0 + $0x10a] sm:$0x3] }
  0xfd   :  { %1893 = vst [vmem:[#allocation0 + $0x430] sm:$0x3] %v5493_v57  ;;  %v5495_v59 = vld [vmem:[%s9220_s0 + $0x108] sm:$0x3]  ;;  %v5496_v60 = vld [vmem:[%s9220_s0 + $0x106] sm:$0x3] }
  0xfe   :  { %1898 = vst [vmem:[#allocation0 + $0x428] sm:$0x3] %v5494_v58  ;;  %1903 = vst [vmem:[#allocation0 + $0x420] sm:$0x3] %v5495_v59  ;;  %v5497_v61 = vld [vmem:[%s9220_s0 + $0x104] sm:$0x3] }
  0xff   :  { %1908 = vst [vmem:[#allocation0 + $0x418] sm:$0x3] %v5496_v60  ;;  %v5498_v62 = vld [vmem:[%s9220_s0 + $0x102] sm:$0x3]  ;;  %v5499_v63 = vld [vmem:[%s9220_s0 + $0x100] sm:$0x3] }
 0x100   :  { %1913 = vst [vmem:[#allocation0 + $0x410] sm:$0x3] %v5497_v61  ;;  %1918 = vst [vmem:[#allocation0 + $0x408] sm:$0x3] %v5498_v62  ;;  %v5500_v0 = vld [vmem:[%s9220_s0 + $0xfe] sm:$0x3] }
 0x101   :  { %1923 = vst [vmem:[#allocation0 + $0x400] sm:$0x3] %v5499_v63  ;;  %v5501_v1 = vld [vmem:[%s9220_s0 + $0xfc] sm:$0x3]  ;;  %v5502_v2 = vld [vmem:[%s9220_s0 + $0xfa] sm:$0x3] }
 0x102   :  { %1928 = vst [vmem:[#allocation0 + $0x3f8] sm:$0x3] %v5500_v0  ;;  %1933 = vst [vmem:[#allocation0 + $0x3f0] sm:$0x3] %v5501_v1  ;;  %v5503_v3 = vld [vmem:[%s9220_s0 + $0xf8] sm:$0x3] }
 0x103   :  { %1938 = vst [vmem:[#allocation0 + $0x3e8] sm:$0x3] %v5502_v2  ;;  %v5504_v4 = vld [vmem:[%s9220_s0 + $0xf6] sm:$0x3]  ;;  %v5505_v5 = vld [vmem:[%s9220_s0 + $0xf4] sm:$0x3] }
 0x104   :  { %1943 = vst [vmem:[#allocation0 + $0x3e0] sm:$0x3] %v5503_v3  ;;  %1948 = vst [vmem:[#allocation0 + $0x3d8] sm:$0x3] %v5504_v4  ;;  %v5506_v6 = vld [vmem:[%s9220_s0 + $0xf2] sm:$0x3] }
 0x105   :  { %1953 = vst [vmem:[#allocation0 + $0x3d0] sm:$0x3] %v5505_v5  ;;  %v5507_v7 = vld [vmem:[%s9220_s0 + $0xf0] sm:$0x3]  ;;  %v5508_v8 = vld [vmem:[%s9220_s0 + $0xee] sm:$0x3] }
 0x106   :  { %1958 = vst [vmem:[#allocation0 + $0x3c8] sm:$0x3] %v5506_v6  ;;  %1963 = vst [vmem:[#allocation0 + $0x3c0] sm:$0x3] %v5507_v7  ;;  %v5509_v9 = vld [vmem:[%s9220_s0 + $0xec] sm:$0x3] }
 0x107   :  { %1968 = vst [vmem:[#allocation0 + $0x3b8] sm:$0x3] %v5508_v8  ;;  %v5510_v10 = vld [vmem:[%s9220_s0 + $0xea] sm:$0x3]  ;;  %v5511_v11 = vld [vmem:[%s9220_s0 + $0xe8] sm:$0x3] }
 0x108   :  { %1973 = vst [vmem:[#allocation0 + $0x3b0] sm:$0x3] %v5509_v9  ;;  %1978 = vst [vmem:[#allocation0 + $0x3a8] sm:$0x3] %v5510_v10  ;;  %v5512_v12 = vld [vmem:[%s9220_s0 + $0xe6] sm:$0x3] }
 0x109   :  { %1983 = vst [vmem:[#allocation0 + $0x3a0] sm:$0x3] %v5511_v11  ;;  %v5513_v13 = vld [vmem:[%s9220_s0 + $0xe4] sm:$0x3]  ;;  %v5514_v14 = vld [vmem:[%s9220_s0 + $0xe2] sm:$0x3] }
 0x10a   :  { %1988 = vst [vmem:[#allocation0 + $0x398] sm:$0x3] %v5512_v12  ;;  %1993 = vst [vmem:[#allocation0 + $0x390] sm:$0x3] %v5513_v13  ;;  %v5515_v15 = vld [vmem:[%s9220_s0 + $0xe0] sm:$0x3] }
 0x10b   :  { %1998 = vst [vmem:[#allocation0 + $0x388] sm:$0x3] %v5514_v14  ;;  %v5516_v16 = vld [vmem:[%s9220_s0 + $0xde] sm:$0x3]  ;;  %v5517_v17 = vld [vmem:[%s9220_s0 + $0xdc] sm:$0x3] }
 0x10c   :  { %2003 = vst [vmem:[#allocation0 + $0x380] sm:$0x3] %v5515_v15  ;;  %2008 = vst [vmem:[#allocation0 + $0x378] sm:$0x3] %v5516_v16  ;;  %v5518_v18 = vld [vmem:[%s9220_s0 + $0xda] sm:$0x3] }
 0x10d   :  { %2013 = vst [vmem:[#allocation0 + $0x370] sm:$0x3] %v5517_v17  ;;  %v5519_v19 = vld [vmem:[%s9220_s0 + $0xd8] sm:$0x3]  ;;  %v5520_v20 = vld [vmem:[%s9220_s0 + $0xd6] sm:$0x3] }
 0x10e   :  { %2018 = vst [vmem:[#allocation0 + $0x368] sm:$0x3] %v5518_v18  ;;  %2023 = vst [vmem:[#allocation0 + $0x360] sm:$0x3] %v5519_v19  ;;  %v5521_v21 = vld [vmem:[%s9220_s0 + $0xd4] sm:$0x3] }
 0x10f   :  { %2028 = vst [vmem:[#allocation0 + $0x358] sm:$0x3] %v5520_v20  ;;  %v5522_v22 = vld [vmem:[%s9220_s0 + $0xd2] sm:$0x3]  ;;  %v5523_v23 = vld [vmem:[%s9220_s0 + $0xd0] sm:$0x3] }
 0x110   :  { %2033 = vst [vmem:[#allocation0 + $0x350] sm:$0x3] %v5521_v21  ;;  %2038 = vst [vmem:[#allocation0 + $0x348] sm:$0x3] %v5522_v22  ;;  %v5524_v24 = vld [vmem:[%s9220_s0 + $0xce] sm:$0x3] }
 0x111   :  { %2043 = vst [vmem:[#allocation0 + $0x340] sm:$0x3] %v5523_v23  ;;  %v5525_v25 = vld [vmem:[%s9220_s0 + $0xcc] sm:$0x3]  ;;  %v5526_v26 = vld [vmem:[%s9220_s0 + $0xca] sm:$0x3] }
 0x112   :  { %2048 = vst [vmem:[#allocation0 + $0x338] sm:$0x3] %v5524_v24  ;;  %2053 = vst [vmem:[#allocation0 + $0x330] sm:$0x3] %v5525_v25  ;;  %v5527_v27 = vld [vmem:[%s9220_s0 + $0xc8] sm:$0x3] }
 0x113   :  { %2058 = vst [vmem:[#allocation0 + $0x328] sm:$0x3] %v5526_v26  ;;  %v5528_v28 = vld [vmem:[%s9220_s0 + $0xc6] sm:$0x3]  ;;  %v5529_v29 = vld [vmem:[%s9220_s0 + $0xc4] sm:$0x3] }
 0x114   :  { %2063 = vst [vmem:[#allocation0 + $0x320] sm:$0x3] %v5527_v27  ;;  %2068 = vst [vmem:[#allocation0 + $0x318] sm:$0x3] %v5528_v28  ;;  %v5530_v30 = vld [vmem:[%s9220_s0 + $0xc2] sm:$0x3] }
 0x115   :  { %2073 = vst [vmem:[#allocation0 + $0x310] sm:$0x3] %v5529_v29  ;;  %v5531_v31 = vld [vmem:[%s9220_s0 + $0xc0] sm:$0x3]  ;;  %v5532_v32 = vld [vmem:[%s9220_s0 + $0xbe] sm:$0x3] }
 0x116   :  { %2078 = vst [vmem:[#allocation0 + $0x308] sm:$0x3] %v5530_v30  ;;  %2083 = vst [vmem:[#allocation0 + $0x300] sm:$0x3] %v5531_v31  ;;  %v5533_v33 = vld [vmem:[%s9220_s0 + $0xbc] sm:$0x3] }
 0x117   :  { %2088 = vst [vmem:[#allocation0 + $0x2f8] sm:$0x3] %v5532_v32  ;;  %v5534_v34 = vld [vmem:[%s9220_s0 + $0xba] sm:$0x3]  ;;  %v5535_v35 = vld [vmem:[%s9220_s0 + $0xb8] sm:$0x3] }
 0x118   :  { %2093 = vst [vmem:[#allocation0 + $0x2f0] sm:$0x3] %v5533_v33  ;;  %2098 = vst [vmem:[#allocation0 + $0x2e8] sm:$0x3] %v5534_v34  ;;  %v5536_v36 = vld [vmem:[%s9220_s0 + $0xb6] sm:$0x3] }
 0x119   :  { %2103 = vst [vmem:[#allocation0 + $0x2e0] sm:$0x3] %v5535_v35  ;;  %v5537_v37 = vld [vmem:[%s9220_s0 + $0xb4] sm:$0x3]  ;;  %v5538_v38 = vld [vmem:[%s9220_s0 + $0xb2] sm:$0x3] }
 0x11a   :  { %2108 = vst [vmem:[#allocation0 + $0x2d8] sm:$0x3] %v5536_v36  ;;  %2113 = vst [vmem:[#allocation0 + $0x2d0] sm:$0x3] %v5537_v37  ;;  %v5539_v39 = vld [vmem:[%s9220_s0 + $0xb0] sm:$0x3] }
 0x11b   :  { %2118 = vst [vmem:[#allocation0 + $0x2c8] sm:$0x3] %v5538_v38  ;;  %v5540_v40 = vld [vmem:[%s9220_s0 + $0xae] sm:$0x3]  ;;  %v5541_v41 = vld [vmem:[%s9220_s0 + $0xac] sm:$0x3] }
 0x11c   :  { %2123 = vst [vmem:[#allocation0 + $0x2c0] sm:$0x3] %v5539_v39  ;;  %2128 = vst [vmem:[#allocation0 + $0x2b8] sm:$0x3] %v5540_v40  ;;  %v5542_v42 = vld [vmem:[%s9220_s0 + $0xaa] sm:$0x3] }
 0x11d   :  { %2133 = vst [vmem:[#allocation0 + $0x2b0] sm:$0x3] %v5541_v41  ;;  %v5543_v43 = vld [vmem:[%s9220_s0 + $0xa8] sm:$0x3]  ;;  %v5544_v44 = vld [vmem:[%s9220_s0 + $0xa6] sm:$0x3] }
 0x11e   :  { %2138 = vst [vmem:[#allocation0 + $0x2a8] sm:$0x3] %v5542_v42  ;;  %2143 = vst [vmem:[#allocation0 + $0x2a0] sm:$0x3] %v5543_v43  ;;  %v5545_v45 = vld [vmem:[%s9220_s0 + $0xa4] sm:$0x3] }
 0x11f   :  { %2148 = vst [vmem:[#allocation0 + $0x298] sm:$0x3] %v5544_v44  ;;  %v5546_v46 = vld [vmem:[%s9220_s0 + $0xa2] sm:$0x3]  ;;  %v5547_v47 = vld [vmem:[%s9220_s0 + $0xa0] sm:$0x3] }
 0x120   :  { %2153 = vst [vmem:[#allocation0 + $0x290] sm:$0x3] %v5545_v45  ;;  %2158 = vst [vmem:[#allocation0 + $0x288] sm:$0x3] %v5546_v46  ;;  %v5548_v48 = vld [vmem:[%s9220_s0 + $0x9e] sm:$0x3] }
 0x121   :  { %2163 = vst [vmem:[#allocation0 + $0x280] sm:$0x3] %v5547_v47  ;;  %v5549_v49 = vld [vmem:[%s9220_s0 + $0x9c] sm:$0x3]  ;;  %v5550_v50 = vld [vmem:[%s9220_s0 + $0x9a] sm:$0x3] }
 0x122   :  { %2168 = vst [vmem:[#allocation0 + $0x278] sm:$0x3] %v5548_v48  ;;  %2173 = vst [vmem:[#allocation0 + $0x270] sm:$0x3] %v5549_v49  ;;  %v5551_v51 = vld [vmem:[%s9220_s0 + $0x98] sm:$0x3] }
 0x123   :  { %2178 = vst [vmem:[#allocation0 + $0x268] sm:$0x3] %v5550_v50  ;;  %v5552_v52 = vld [vmem:[%s9220_s0 + $0x96] sm:$0x3]  ;;  %v5553_v53 = vld [vmem:[%s9220_s0 + $0x94] sm:$0x3] }
 0x124   :  { %2183 = vst [vmem:[#allocation0 + $0x260] sm:$0x3] %v5551_v51  ;;  %2188 = vst [vmem:[#allocation0 + $0x258] sm:$0x3] %v5552_v52  ;;  %v5554_v54 = vld [vmem:[%s9220_s0 + $0x92] sm:$0x3] }
 0x125   :  { %2193 = vst [vmem:[#allocation0 + $0x250] sm:$0x3] %v5553_v53  ;;  %v5555_v55 = vld [vmem:[%s9220_s0 + $0x90] sm:$0x3]  ;;  %v5556_v56 = vld [vmem:[%s9220_s0 + $0x8e] sm:$0x3] }
 0x126   :  { %2198 = vst [vmem:[#allocation0 + $0x248] sm:$0x3] %v5554_v54  ;;  %2203 = vst [vmem:[#allocation0 + $0x240] sm:$0x3] %v5555_v55  ;;  %v5557_v57 = vld [vmem:[%s9220_s0 + $0x8c] sm:$0x3] }
 0x127   :  { %2208 = vst [vmem:[#allocation0 + $0x238] sm:$0x3] %v5556_v56  ;;  %v5558_v58 = vld [vmem:[%s9220_s0 + $0x8a] sm:$0x3]  ;;  %v5559_v59 = vld [vmem:[%s9220_s0 + $0x88] sm:$0x3] }
 0x128   :  { %2213 = vst [vmem:[#allocation0 + $0x230] sm:$0x3] %v5557_v57  ;;  %2218 = vst [vmem:[#allocation0 + $0x228] sm:$0x3] %v5558_v58  ;;  %v5560_v60 = vld [vmem:[%s9220_s0 + $0x86] sm:$0x3] }
 0x129   :  { %2223 = vst [vmem:[#allocation0 + $0x220] sm:$0x3] %v5559_v59  ;;  %v5561_v61 = vld [vmem:[%s9220_s0 + $0x84] sm:$0x3]  ;;  %v5562_v62 = vld [vmem:[%s9220_s0 + $0x82] sm:$0x3] }
 0x12a   :  { %2228 = vst [vmem:[#allocation0 + $0x218] sm:$0x3] %v5560_v60  ;;  %2233 = vst [vmem:[#allocation0 + $0x210] sm:$0x3] %v5561_v61  ;;  %v5563_v63 = vld [vmem:[%s9220_s0 + $0x80] sm:$0x3] }
 0x12b   :  { %2238 = vst [vmem:[#allocation0 + $0x208] sm:$0x3] %v5562_v62  ;;  %v5564_v0 = vld [vmem:[%s9220_s0 + $0x7e] sm:$0x3]  ;;  %v5565_v1 = vld [vmem:[%s9220_s0 + $0x7c] sm:$0x3] }
 0x12c   :  { %2243 = vst [vmem:[#allocation0 + $0x200] sm:$0x3] %v5563_v63  ;;  %2248 = vst [vmem:[#allocation0 + $0x1f8] sm:$0x3] %v5564_v0  ;;  %v5566_v2 = vld [vmem:[%s9220_s0 + $0x7a] sm:$0x3] }
 0x12d   :  { %2253 = vst [vmem:[#allocation0 + $0x1f0] sm:$0x3] %v5565_v1  ;;  %v5567_v3 = vld [vmem:[%s9220_s0 + $0x78] sm:$0x3]  ;;  %v5568_v4 = vld [vmem:[%s9220_s0 + $0x76] sm:$0x3] }
 0x12e   :  { %2258 = vst [vmem:[#allocation0 + $0x1e8] sm:$0x3] %v5566_v2  ;;  %2263 = vst [vmem:[#allocation0 + $0x1e0] sm:$0x3] %v5567_v3  ;;  %v5569_v5 = vld [vmem:[%s9220_s0 + $0x74] sm:$0x3] }
 0x12f   :  { %2268 = vst [vmem:[#allocation0 + $0x1d8] sm:$0x3] %v5568_v4  ;;  %v5570_v6 = vld [vmem:[%s9220_s0 + $0x72] sm:$0x3]  ;;  %v5571_v7 = vld [vmem:[%s9220_s0 + $0x70] sm:$0x3] }
 0x130   :  { %2273 = vst [vmem:[#allocation0 + $0x1d0] sm:$0x3] %v5569_v5  ;;  %2278 = vst [vmem:[#allocation0 + $0x1c8] sm:$0x3] %v5570_v6  ;;  %v5572_v8 = vld [vmem:[%s9220_s0 + $0x6e] sm:$0x3] }
 0x131   :  { %2283 = vst [vmem:[#allocation0 + $0x1c0] sm:$0x3] %v5571_v7  ;;  %v5573_v9 = vld [vmem:[%s9220_s0 + $0x6c] sm:$0x3]  ;;  %v5574_v10 = vld [vmem:[%s9220_s0 + $0x6a] sm:$0x3] }
 0x132   :  { %2288 = vst [vmem:[#allocation0 + $0x1b8] sm:$0x3] %v5572_v8  ;;  %2293 = vst [vmem:[#allocation0 + $0x1b0] sm:$0x3] %v5573_v9  ;;  %v5575_v11 = vld [vmem:[%s9220_s0 + $0x68] sm:$0x3] }
 0x133   :  { %2298 = vst [vmem:[#allocation0 + $0x1a8] sm:$0x3] %v5574_v10  ;;  %v5576_v12 = vld [vmem:[%s9220_s0 + $0x66] sm:$0x3]  ;;  %v5577_v13 = vld [vmem:[%s9220_s0 + $0x64] sm:$0x3] }
 0x134   :  { %2303 = vst [vmem:[#allocation0 + $0x1a0] sm:$0x3] %v5575_v11  ;;  %2308 = vst [vmem:[#allocation0 + $0x198] sm:$0x3] %v5576_v12  ;;  %v5578_v14 = vld [vmem:[%s9220_s0 + $0x62] sm:$0x3] }
 0x135   :  { %2313 = vst [vmem:[#allocation0 + $0x190] sm:$0x3] %v5577_v13  ;;  %v5579_v15 = vld [vmem:[%s9220_s0 + $0x60] sm:$0x3]  ;;  %v5580_v16 = vld [vmem:[%s9220_s0 + $0x5e] sm:$0x3] }
 0x136   :  { %2318 = vst [vmem:[#allocation0 + $0x188] sm:$0x3] %v5578_v14  ;;  %2323 = vst [vmem:[#allocation0 + $0x180] sm:$0x3] %v5579_v15  ;;  %v5581_v17 = vld [vmem:[%s9220_s0 + $0x5c] sm:$0x3] }
 0x137   :  { %2328 = vst [vmem:[#allocation0 + $0x178] sm:$0x3] %v5580_v16  ;;  %v5582_v18 = vld [vmem:[%s9220_s0 + $0x5a] sm:$0x3]  ;;  %v5583_v19 = vld [vmem:[%s9220_s0 + $0x58] sm:$0x3] }
 0x138   :  { %2333 = vst [vmem:[#allocation0 + $0x170] sm:$0x3] %v5581_v17  ;;  %2338 = vst [vmem:[#allocation0 + $0x168] sm:$0x3] %v5582_v18  ;;  %v5584_v20 = vld [vmem:[%s9220_s0 + $0x56] sm:$0x3] }
 0x139   :  { %2343 = vst [vmem:[#allocation0 + $0x160] sm:$0x3] %v5583_v19  ;;  %v5585_v21 = vld [vmem:[%s9220_s0 + $0x54] sm:$0x3]  ;;  %v5586_v22 = vld [vmem:[%s9220_s0 + $0x52] sm:$0x3] }
 0x13a   :  { %2348 = vst [vmem:[#allocation0 + $0x158] sm:$0x3] %v5584_v20  ;;  %2353 = vst [vmem:[#allocation0 + $0x150] sm:$0x3] %v5585_v21  ;;  %v5587_v23 = vld [vmem:[%s9220_s0 + $0x50] sm:$0x3] }
 0x13b   :  { %2358 = vst [vmem:[#allocation0 + $0x148] sm:$0x3] %v5586_v22  ;;  %v5588_v24 = vld [vmem:[%s9220_s0 + $0x4e] sm:$0x3]  ;;  %v5589_v25 = vld [vmem:[%s9220_s0 + $0x4c] sm:$0x3] }
 0x13c   :  { %2363 = vst [vmem:[#allocation0 + $0x140] sm:$0x3] %v5587_v23  ;;  %2368 = vst [vmem:[#allocation0 + $0x138] sm:$0x3] %v5588_v24  ;;  %v5590_v26 = vld [vmem:[%s9220_s0 + $0x4a] sm:$0x3] }
 0x13d   :  { %2373 = vst [vmem:[#allocation0 + $0x130] sm:$0x3] %v5589_v25  ;;  %v5591_v27 = vld [vmem:[%s9220_s0 + $0x48] sm:$0x3]  ;;  %v5592_v28 = vld [vmem:[%s9220_s0 + $0x46] sm:$0x3] }
 0x13e   :  { %2378 = vst [vmem:[#allocation0 + $0x128] sm:$0x3] %v5590_v26  ;;  %2383 = vst [vmem:[#allocation0 + $0x120] sm:$0x3] %v5591_v27  ;;  %v5593_v29 = vld [vmem:[%s9220_s0 + $0x44] sm:$0x3] }
 0x13f   :  { %2388 = vst [vmem:[#allocation0 + $0x118] sm:$0x3] %v5592_v28  ;;  %v5594_v30 = vld [vmem:[%s9220_s0 + $0x42] sm:$0x3]  ;;  %v5595_v31 = vld [vmem:[%s9220_s0 + $0x40] sm:$0x3] }
 0x140   :  { %2393 = vst [vmem:[#allocation0 + $0x110] sm:$0x3] %v5593_v29  ;;  %2398 = vst [vmem:[#allocation0 + $0x108] sm:$0x3] %v5594_v30  ;;  %v5596_v32 = vld [vmem:[%s9220_s0 + $0x3e] sm:$0x3] }
 0x141   :  { %2403 = vst [vmem:[#allocation0 + $0x100] sm:$0x3] %v5595_v31  ;;  %v5597_v33 = vld [vmem:[%s9220_s0 + $0x3c] sm:$0x3]  ;;  %v5598_v34 = vld [vmem:[%s9220_s0 + $0x3a] sm:$0x3] }
 0x142   :  { %2408 = vst [vmem:[#allocation0 + $0xf8] sm:$0x3] %v5596_v32  ;;  %2413 = vst [vmem:[#allocation0 + $0xf0] sm:$0x3] %v5597_v33  ;;  %v5599_v35 = vld [vmem:[%s9220_s0 + $0x38] sm:$0x3] }
 0x143   :  { %2418 = vst [vmem:[#allocation0 + $0xe8] sm:$0x3] %v5598_v34  ;;  %v5600_v36 = vld [vmem:[%s9220_s0 + $0x36] sm:$0x3]  ;;  %v5601_v37 = vld [vmem:[%s9220_s0 + $0x34] sm:$0x3] }
 0x144   :  { %2423 = vst [vmem:[#allocation0 + $0xe0] sm:$0x3] %v5599_v35  ;;  %2428 = vst [vmem:[#allocation0 + $0xd8] sm:$0x3] %v5600_v36  ;;  %v5602_v38 = vld [vmem:[%s9220_s0 + $0x32] sm:$0x3] }
 0x145   :  { %2433 = vst [vmem:[#allocation0 + $0xd0] sm:$0x3] %v5601_v37  ;;  %v5603_v39 = vld [vmem:[%s9220_s0 + $0x30] sm:$0x3]  ;;  %v5604_v40 = vld [vmem:[%s9220_s0 + $0x2e] sm:$0x3] }
 0x146   :  { %2438 = vst [vmem:[#allocation0 + $0xc8] sm:$0x3] %v5602_v38  ;;  %2443 = vst [vmem:[#allocation0 + $0xc0] sm:$0x3] %v5603_v39  ;;  %v5605_v41 = vld [vmem:[%s9220_s0 + $0x2c] sm:$0x3] }
 0x147   :  { %2448 = vst [vmem:[#allocation0 + $0xb8] sm:$0x3] %v5604_v40  ;;  %v5606_v42 = vld [vmem:[%s9220_s0 + $0x2a] sm:$0x3]  ;;  %v5607_v43 = vld [vmem:[%s9220_s0 + $0x28] sm:$0x3] }
 0x148   :  { %2453 = vst [vmem:[#allocation0 + $0xb0] sm:$0x3] %v5605_v41  ;;  %2458 = vst [vmem:[#allocation0 + $0xa8] sm:$0x3] %v5606_v42  ;;  %v5608_v44 = vld [vmem:[%s9220_s0 + $0x26] sm:$0x3] }
 0x149   :  { %2463 = vst [vmem:[#allocation0 + $0xa0] sm:$0x3] %v5607_v43  ;;  %v5609_v45 = vld [vmem:[%s9220_s0 + $0x24] sm:$0x3]  ;;  %v5610_v46 = vld [vmem:[%s9220_s0 + $0x22] sm:$0x3] }
 0x14a   :  { %2468 = vst [vmem:[#allocation0 + $0x98] sm:$0x3] %v5608_v44  ;;  %2473 = vst [vmem:[#allocation0 + $0x90] sm:$0x3] %v5609_v45  ;;  %v5611_v47 = vld [vmem:[%s9220_s0 + $0x20] sm:$0x3] }
 0x14b   :  { %2478 = vst [vmem:[#allocation0 + $0x88] sm:$0x3] %v5610_v46  ;;  %v5612_v48 = vld [vmem:[%s9220_s0 + $0x1e] sm:$0x3]  ;;  %v5613_v49 = vld [vmem:[%s9220_s0 + $0x1c] sm:$0x3] }
 0x14c   :  { %2483 = vst [vmem:[#allocation0 + $0x80] sm:$0x3] %v5611_v47  ;;  %2488 = vst [vmem:[#allocation0 + $0x78] sm:$0x3] %v5612_v48  ;;  %v5614_v50 = vld [vmem:[%s9220_s0 + $0x1a] sm:$0x3] }
 0x14d   :  { %2493 = vst [vmem:[#allocation0 + $0x70] sm:$0x3] %v5613_v49  ;;  %v5615_v51 = vld [vmem:[%s9220_s0 + $0x18] sm:$0x3]  ;;  %v5616_v52 = vld [vmem:[%s9220_s0 + $0x16] sm:$0x3] }
 0x14e   :  { %2498 = vst [vmem:[#allocation0 + $0x68] sm:$0x3] %v5614_v50  ;;  %2503 = vst [vmem:[#allocation0 + $0x60] sm:$0x3] %v5615_v51  ;;  %v5617_v53 = vld [vmem:[%s9220_s0 + $0x14] sm:$0x3] }
 0x14f   :  { %2508 = vst [vmem:[#allocation0 + $0x58] sm:$0x3] %v5616_v52  ;;  %v5618_v54 = vld [vmem:[%s9220_s0 + $0x12] sm:$0x3]  ;;  %v5619_v55 = vld [vmem:[%s9220_s0 + $0x10] sm:$0x3] }
 0x150   :  { %2513 = vst [vmem:[#allocation0 + $0x50] sm:$0x3] %v5617_v53  ;;  %2518 = vst [vmem:[#allocation0 + $0x48] sm:$0x3] %v5618_v54  ;;  %v5620_v56 = vld [vmem:[%s9220_s0 + $0xe] sm:$0x3] }
 0x151   :  { %2523 = vst [vmem:[#allocation0 + $0x40] sm:$0x3] %v5619_v55  ;;  %v5621_v57 = vld [vmem:[%s9220_s0 + $0xc] sm:$0x3]  ;;  %v5622_v58 = vld [vmem:[%s9220_s0 + $0xa] sm:$0x3] }
 0x152   :  { %2528 = vst [vmem:[#allocation0 + $0x38] sm:$0x3] %v5620_v56  ;;  %2533 = vst [vmem:[#allocation0 + $0x30] sm:$0x3] %v5621_v57  ;;  %v5623_v59 = vld [vmem:[%s9220_s0 + $0x8] sm:$0x3] }
 0x153   :  { %2538 = vst [vmem:[#allocation0 + $0x28] sm:$0x3] %v5622_v58  ;;  %v5624_v60 = vld [vmem:[%s9220_s0 + $0x6] sm:$0x3]  ;;  %v5625_v61 = vld [vmem:[%s9220_s0 + $0x4] sm:$0x3] }
 0x154   :  { %2543 = vst [vmem:[#allocation0 + $0x20] sm:$0x3] %v5623_v59  ;;  %2548 = vst [vmem:[#allocation0 + $0x18] sm:$0x3] %v5624_v60  ;;  %v5626_v62 = vld [vmem:[%s9220_s0 + $0x2] sm:$0x3] }
 0x155   :  { %2553 = vst [vmem:[#allocation0 + $0x10] sm:$0x3] %v5625_v61  ;;  %v2558_v63 = vld [vmem:[%s9220_s0] sm:$0x3]  ;;  %v2651_v0 = vld [vmem:[#allocation0 + $0xb8] sm:$0x3]  }
 0x156   :  { %2557 = vst [vmem:[#allocation0 + $0x8] sm:$0x3] %v5626_v62  ;;  %2559 = vst [vmem:[#allocation0] sm:$0x3] %v2558_v63  ;;  %v2639_v1 = vld [vmem:[#allocation0 + $0xa0] sm:$0x3]  }
 0x157   :  { %v2643_v2 = vld [vmem:[#allocation0 + $0xa8] sm:$0x3]   ;;  %v2647_v3 = vld [vmem:[#allocation0 + $0xb0] sm:$0x3]   ;;  %v2635_v6 = vld [vmem:[#allocation0 + $0x98] sm:$0x3]  }
 0x158   :  { %5649 = vst [vmem:[%s9221_s1 + $0x33] ss:$8 sm:$0x3] %v2651_v0   ;;  %v2627_v4 = vld [vmem:[#allocation0 + $0x88] sm:$0x3]  }
 0x159   :  { %v2631_v5 = vld [vmem:[#allocation0 + $0x90] sm:$0x3]   ;;  %5646 = vst [vmem:[%s9221_s1 + $0x22] ss:$8 sm:$0x3] %v2639_v1  }
 0x15a   :  { %5647 = vst [vmem:[%s9221_s1 + $0x32] ss:$8 sm:$0x3] %v2643_v2   ;;  %5648 = vst [vmem:[%s9221_s1 + $0x23] ss:$8 sm:$0x3] %v2647_v3  }
 0x15b   :  { %v2615_v7 = vld [vmem:[#allocation0 + $0x70] sm:$0x3]   ;;  %v2619_v8 = vld [vmem:[#allocation0 + $0x78] sm:$0x3]   ;;  %v2623_v9 = vld [vmem:[#allocation0 + $0x80] sm:$0x3]  }
 0x15c   :  { %5643 = vst [vmem:[%s9221_s1 + $0x30] ss:$8 sm:$0x3] %v2627_v4   ;;  %5644 = vst [vmem:[%s9221_s1 + $0x21] ss:$8 sm:$0x3] %v2631_v5  }
 0x15d   :  { %5645 = vst [vmem:[%s9221_s1 + $0x31] ss:$8 sm:$0x3] %v2635_v6   ;;  %v2603_v10 = vld [vmem:[#allocation0 + $0x58] sm:$0x3]  }
 0x15e   :  { %v2607_v11 = vld [vmem:[#allocation0 + $0x60] sm:$0x3]   ;;  %v2611_v12 = vld [vmem:[#allocation0 + $0x68] sm:$0x3]   ;;  %v2599_v15 = vld [vmem:[#allocation0 + $0x50] sm:$0x3]  }
 0x15f   :  { %5640 = vst [vmem:[%s9221_s1 + $0x7] ss:$8 sm:$0x3] %v2615_v7   ;;  %5641 = vst [vmem:[%s9221_s1 + $0x17] ss:$8 sm:$0x3] %v2619_v8  }
 0x160   :  { %5642 = vst [vmem:[%s9221_s1 + $0x20] ss:$8 sm:$0x3] %v2623_v9   ;;  %v2591_v13 = vld [vmem:[#allocation0 + $0x40] sm:$0x3]  }
 0x161   :  { %v2595_v14 = vld [vmem:[#allocation0 + $0x48] sm:$0x3]   ;;  %5637 = vst [vmem:[%s9221_s1 + $0x15] ss:$8 sm:$0x3] %v2603_v10  }
 0x162   :  { %5638 = vst [vmem:[%s9221_s1 + $0x6] ss:$8 sm:$0x3] %v2607_v11   ;;  %5639 = vst [vmem:[%s9221_s1 + $0x16] ss:$8 sm:$0x3] %v2611_v12  }
 0x163   :  { %v2579_v16 = vld [vmem:[#allocation0 + $0x28] sm:$0x3]   ;;  %v2583_v17 = vld [vmem:[#allocation0 + $0x30] sm:$0x3]   ;;  %v2587_v18 = vld [vmem:[#allocation0 + $0x38] sm:$0x3]  }
 0x164   :  { %5634 = vst [vmem:[%s9221_s1 + $0x4] ss:$8 sm:$0x3] %v2591_v13   ;;  %5635 = vst [vmem:[%s9221_s1 + $0x14] ss:$8 sm:$0x3] %v2595_v14  }
 0x165   :  { %5636 = vst [vmem:[%s9221_s1 + $0x5] ss:$8 sm:$0x3] %v2599_v15   ;;  %v2567_v19 = vld [vmem:[#allocation0 + $0x10] sm:$0x3]  }
 0x166   :  { %v2571_v20 = vld [vmem:[#allocation0 + $0x18] sm:$0x3]   ;;  %v2575_v21 = vld [vmem:[#allocation0 + $0x20] sm:$0x3]   ;;  %v2563_v23 = vld [vmem:[#allocation0 + $0x8] sm:$0x3]  }
 0x167   :  { %5631 = vst [vmem:[%s9221_s1 + $0x12] ss:$8 sm:$0x3] %v2579_v16   ;;  %5632 = vst [vmem:[%s9221_s1 + $0x3] ss:$8 sm:$0x3] %v2583_v17  }
 0x168   :  { %5633 = vst [vmem:[%s9221_s1 + $0x13] ss:$8 sm:$0x3] %v2587_v18   ;;  %v2560_v22 = vld [vmem:[#allocation0] sm:$0x3]  }
 0x169   :  { %5628 = vst [vmem:[%s9221_s1 + $0x1] ss:$8 sm:$0x3] %v2567_v19   ;;  %5629 = vst [vmem:[%s9221_s1 + $0x11] ss:$8 sm:$0x3] %v2571_v20  }
 0x16a   :  { %5630 = vst [vmem:[%s9221_s1 + $0x2] ss:$8 sm:$0x3] %v2575_v21   ;;  %v2655_v24 = vld [vmem:[#allocation0 + $0xc0] sm:$0x3]  }
 0x16b   :  { %2561 = vst [vmem:[%s9221_s1] ss:$8 sm:$0x3] %v2560_v22   ;;  %5627 = vst [vmem:[%s9221_s1 + $0x10] ss:$8 sm:$0x3] %v2563_v23  }
 0x16c   :  { %5650 = vst [vmem:[%s9221_s1 + $0x24] ss:$8 sm:$0x3] %v2655_v24   ;;  %v2659_v25 = vld [vmem:[#allocation0 + $0xc8] sm:$0x3]  }
 0x16d   :  { %v2663_v26 = vld [vmem:[#allocation0 + $0xd0] sm:$0x3]   ;;  %v2667_v27 = vld [vmem:[#allocation0 + $0xd8] sm:$0x3]   ;;  %v2671_v28 = vld [vmem:[#allocation0 + $0xe0] sm:$0x3]  }
 0x16e   :  { %5651 = vst [vmem:[%s9221_s1 + $0x34] ss:$8 sm:$0x3] %v2659_v25   ;;  %5652 = vst [vmem:[%s9221_s1 + $0x25] ss:$8 sm:$0x3] %v2663_v26  }
 0x16f   :  { %5653 = vst [vmem:[%s9221_s1 + $0x35] ss:$8 sm:$0x3] %v2667_v27   ;;  %v2675_v29 = vld [vmem:[#allocation0 + $0xe8] sm:$0x3]  }
 0x170   :  { %v2679_v30 = vld [vmem:[#allocation0 + $0xf0] sm:$0x3]   ;;  %5654 = vst [vmem:[%s9221_s1 + $0x26] ss:$8 sm:$0x3] %v2671_v28  }
 0x171   :  { %5655 = vst [vmem:[%s9221_s1 + $0x36] ss:$8 sm:$0x3] %v2675_v29   ;;  %5656 = vst [vmem:[%s9221_s1 + $0x27] ss:$8 sm:$0x3] %v2679_v30  }
 0x172   :  { %v2683_v31 = vld [vmem:[#allocation0 + $0xf8] sm:$0x3]   ;;  %v2687_v32 = vld [vmem:[#allocation0 + $0x100] sm:$0x3]   ;;  %v2691_v33 = vld [vmem:[#allocation0 + $0x108] sm:$0x3]  }
 0x173   :  { %5657 = vst [vmem:[%s9221_s1 + $0x37] ss:$8 sm:$0x3] %v2683_v31   ;;  %5658 = vst [vmem:[%s9221_s1 + $0x40] ss:$8 sm:$0x3] %v2687_v32  }
 0x174   :  { %5659 = vst [vmem:[%s9221_s1 + $0x50] ss:$8 sm:$0x3] %v2691_v33   ;;  %v2695_v34 = vld [vmem:[#allocation0 + $0x110] sm:$0x3]  }
 0x175   :  { %v2699_v35 = vld [vmem:[#allocation0 + $0x118] sm:$0x3]   ;;  %v2703_v36 = vld [vmem:[#allocation0 + $0x120] sm:$0x3]   ;;  %v2707_v37 = vld [vmem:[#allocation0 + $0x128] sm:$0x3]  }
 0x176   :  { %5660 = vst [vmem:[%s9221_s1 + $0x41] ss:$8 sm:$0x3] %v2695_v34   ;;  %5661 = vst [vmem:[%s9221_s1 + $0x51] ss:$8 sm:$0x3] %v2699_v35  }
 0x177   :  { %5662 = vst [vmem:[%s9221_s1 + $0x42] ss:$8 sm:$0x3] %v2703_v36   ;;  %v2711_v38 = vld [vmem:[#allocation0 + $0x130] sm:$0x3]  }
 0x178   :  { %v2715_v39 = vld [vmem:[#allocation0 + $0x138] sm:$0x3]   ;;  %5663 = vst [vmem:[%s9221_s1 + $0x52] ss:$8 sm:$0x3] %v2707_v37  }
 0x179   :  { %5664 = vst [vmem:[%s9221_s1 + $0x43] ss:$8 sm:$0x3] %v2711_v38   ;;  %5665 = vst [vmem:[%s9221_s1 + $0x53] ss:$8 sm:$0x3] %v2715_v39  }
 0x17a   :  { %v2719_v40 = vld [vmem:[#allocation0 + $0x140] sm:$0x3]   ;;  %v2723_v41 = vld [vmem:[#allocation0 + $0x148] sm:$0x3]   ;;  %v2727_v42 = vld [vmem:[#allocation0 + $0x150] sm:$0x3]  }
 0x17b   :  { %5666 = vst [vmem:[%s9221_s1 + $0x44] ss:$8 sm:$0x3] %v2719_v40   ;;  %5667 = vst [vmem:[%s9221_s1 + $0x54] ss:$8 sm:$0x3] %v2723_v41  }
 0x17c   :  { %5668 = vst [vmem:[%s9221_s1 + $0x45] ss:$8 sm:$0x3] %v2727_v42   ;;  %v2731_v43 = vld [vmem:[#allocation0 + $0x158] sm:$0x3]  }
 0x17d   :  { %v2735_v44 = vld [vmem:[#allocation0 + $0x160] sm:$0x3]   ;;  %v2739_v45 = vld [vmem:[#allocation0 + $0x168] sm:$0x3]   ;;  %v2743_v46 = vld [vmem:[#allocation0 + $0x170] sm:$0x3]  }
 0x17e   :  { %5669 = vst [vmem:[%s9221_s1 + $0x55] ss:$8 sm:$0x3] %v2731_v43   ;;  %5670 = vst [vmem:[%s9221_s1 + $0x46] ss:$8 sm:$0x3] %v2735_v44  }
 0x17f   :  { %5671 = vst [vmem:[%s9221_s1 + $0x56] ss:$8 sm:$0x3] %v2739_v45   ;;  %v2747_v47 = vld [vmem:[#allocation0 + $0x178] sm:$0x3]  }
 0x180   :  { %v2751_v48 = vld [vmem:[#allocation0 + $0x180] sm:$0x3]   ;;  %5672 = vst [vmem:[%s9221_s1 + $0x47] ss:$8 sm:$0x3] %v2743_v46  }
 0x181   :  { %5673 = vst [vmem:[%s9221_s1 + $0x57] ss:$8 sm:$0x3] %v2747_v47   ;;  %5674 = vst [vmem:[%s9221_s1 + $0x60] ss:$8 sm:$0x3] %v2751_v48  }
 0x182   :  { %v2755_v49 = vld [vmem:[#allocation0 + $0x188] sm:$0x3]   ;;  %v2759_v50 = vld [vmem:[#allocation0 + $0x190] sm:$0x3]   ;;  %v2763_v51 = vld [vmem:[#allocation0 + $0x198] sm:$0x3]  }
 0x183   :  { %5675 = vst [vmem:[%s9221_s1 + $0x70] ss:$8 sm:$0x3] %v2755_v49   ;;  %5676 = vst [vmem:[%s9221_s1 + $0x61] ss:$8 sm:$0x3] %v2759_v50  }
 0x184   :  { %5677 = vst [vmem:[%s9221_s1 + $0x71] ss:$8 sm:$0x3] %v2763_v51   ;;  %v2767_v52 = vld [vmem:[#allocation0 + $0x1a0] sm:$0x3]  }
 0x185   :  { %v2771_v53 = vld [vmem:[#allocation0 + $0x1a8] sm:$0x3]   ;;  %v2775_v54 = vld [vmem:[#allocation0 + $0x1b0] sm:$0x3]   ;;  %v2779_v55 = vld [vmem:[#allocation0 + $0x1b8] sm:$0x3]  }
 0x186   :  { %5678 = vst [vmem:[%s9221_s1 + $0x62] ss:$8 sm:$0x3] %v2767_v52   ;;  %5679 = vst [vmem:[%s9221_s1 + $0x72] ss:$8 sm:$0x3] %v2771_v53  }
 0x187   :  { %5680 = vst [vmem:[%s9221_s1 + $0x63] ss:$8 sm:$0x3] %v2775_v54   ;;  %v2783_v56 = vld [vmem:[#allocation0 + $0x1c0] sm:$0x3]  }
 0x188   :  { %v2787_v57 = vld [vmem:[#allocation0 + $0x1c8] sm:$0x3]   ;;  %5681 = vst [vmem:[%s9221_s1 + $0x73] ss:$8 sm:$0x3] %v2779_v55  }
 0x189   :  { %5682 = vst [vmem:[%s9221_s1 + $0x64] ss:$8 sm:$0x3] %v2783_v56   ;;  %5683 = vst [vmem:[%s9221_s1 + $0x74] ss:$8 sm:$0x3] %v2787_v57  }
 0x18a   :  { %v2791_v58 = vld [vmem:[#allocation0 + $0x1d0] sm:$0x3]   ;;  %v2795_v59 = vld [vmem:[#allocation0 + $0x1d8] sm:$0x3]   ;;  %v2799_v60 = vld [vmem:[#allocation0 + $0x1e0] sm:$0x3]  }
 0x18b   :  { %5684 = vst [vmem:[%s9221_s1 + $0x65] ss:$8 sm:$0x3] %v2791_v58   ;;  %5685 = vst [vmem:[%s9221_s1 + $0x75] ss:$8 sm:$0x3] %v2795_v59  }
 0x18c   :  { %5686 = vst [vmem:[%s9221_s1 + $0x66] ss:$8 sm:$0x3] %v2799_v60   ;;  %v2803_v61 = vld [vmem:[#allocation0 + $0x1e8] sm:$0x3]  }
 0x18d   :  { %v2807_v62 = vld [vmem:[#allocation0 + $0x1f0] sm:$0x3]   ;;  %v2811_v63 = vld [vmem:[#allocation0 + $0x1f8] sm:$0x3]   ;;  %v2815_v0 = vld [vmem:[#allocation0 + $0x200] sm:$0x3]  }
 0x18e   :  { %5687 = vst [vmem:[%s9221_s1 + $0x76] ss:$8 sm:$0x3] %v2803_v61   ;;  %5688 = vst [vmem:[%s9221_s1 + $0x67] ss:$8 sm:$0x3] %v2807_v62  }
 0x18f   :  { %5689 = vst [vmem:[%s9221_s1 + $0x77] ss:$8 sm:$0x3] %v2811_v63   ;;  %v2819_v1 = vld [vmem:[#allocation0 + $0x208] sm:$0x3]  }
 0x190   :  { %v2823_v2 = vld [vmem:[#allocation0 + $0x210] sm:$0x3]   ;;  %5690 = vst [vmem:[%s9221_s1 + $0x80] ss:$8 sm:$0x3] %v2815_v0  }
 0x191   :  { %5691 = vst [vmem:[%s9221_s1 + $0x90] ss:$8 sm:$0x3] %v2819_v1   ;;  %5692 = vst [vmem:[%s9221_s1 + $0x81] ss:$8 sm:$0x3] %v2823_v2  }
 0x192   :  { %v2827_v3 = vld [vmem:[#allocation0 + $0x218] sm:$0x3]   ;;  %v2831_v4 = vld [vmem:[#allocation0 + $0x220] sm:$0x3]   ;;  %v2835_v5 = vld [vmem:[#allocation0 + $0x228] sm:$0x3]  }
 0x193   :  { %5693 = vst [vmem:[%s9221_s1 + $0x91] ss:$8 sm:$0x3] %v2827_v3   ;;  %5694 = vst [vmem:[%s9221_s1 + $0x82] ss:$8 sm:$0x3] %v2831_v4  }
 0x194   :  { %5695 = vst [vmem:[%s9221_s1 + $0x92] ss:$8 sm:$0x3] %v2835_v5   ;;  %v2839_v6 = vld [vmem:[#allocation0 + $0x230] sm:$0x3]  }
 0x195   :  { %v2843_v7 = vld [vmem:[#allocation0 + $0x238] sm:$0x3]   ;;  %v2847_v8 = vld [vmem:[#allocation0 + $0x240] sm:$0x3]   ;;  %v2851_v9 = vld [vmem:[#allocation0 + $0x248] sm:$0x3]  }
 0x196   :  { %5696 = vst [vmem:[%s9221_s1 + $0x83] ss:$8 sm:$0x3] %v2839_v6   ;;  %5697 = vst [vmem:[%s9221_s1 + $0x93] ss:$8 sm:$0x3] %v2843_v7  }
 0x197   :  { %5698 = vst [vmem:[%s9221_s1 + $0x84] ss:$8 sm:$0x3] %v2847_v8   ;;  %v2855_v10 = vld [vmem:[#allocation0 + $0x250] sm:$0x3]  }
 0x198   :  { %v2859_v11 = vld [vmem:[#allocation0 + $0x258] sm:$0x3]   ;;  %5699 = vst [vmem:[%s9221_s1 + $0x94] ss:$8 sm:$0x3] %v2851_v9  }
 0x199   :  { %5700 = vst [vmem:[%s9221_s1 + $0x85] ss:$8 sm:$0x3] %v2855_v10   ;;  %5701 = vst [vmem:[%s9221_s1 + $0x95] ss:$8 sm:$0x3] %v2859_v11  }
 0x19a   :  { %v2863_v12 = vld [vmem:[#allocation0 + $0x260] sm:$0x3]   ;;  %v2867_v13 = vld [vmem:[#allocation0 + $0x268] sm:$0x3]   ;;  %v2871_v14 = vld [vmem:[#allocation0 + $0x270] sm:$0x3]  }
 0x19b   :  { %5702 = vst [vmem:[%s9221_s1 + $0x86] ss:$8 sm:$0x3] %v2863_v12   ;;  %5703 = vst [vmem:[%s9221_s1 + $0x96] ss:$8 sm:$0x3] %v2867_v13  }
 0x19c   :  { %5704 = vst [vmem:[%s9221_s1 + $0x87] ss:$8 sm:$0x3] %v2871_v14   ;;  %v2875_v15 = vld [vmem:[#allocation0 + $0x278] sm:$0x3]  }
 0x19d   :  { %v2879_v16 = vld [vmem:[#allocation0 + $0x280] sm:$0x3]   ;;  %v2883_v17 = vld [vmem:[#allocation0 + $0x288] sm:$0x3]   ;;  %v2887_v18 = vld [vmem:[#allocation0 + $0x290] sm:$0x3]  }
 0x19e   :  { %5705 = vst [vmem:[%s9221_s1 + $0x97] ss:$8 sm:$0x3] %v2875_v15   ;;  %5706 = vst [vmem:[%s9221_s1 + $0xa0] ss:$8 sm:$0x3] %v2879_v16  }
 0x19f   :  { %5707 = vst [vmem:[%s9221_s1 + $0xb0] ss:$8 sm:$0x3] %v2883_v17   ;;  %v2891_v19 = vld [vmem:[#allocation0 + $0x298] sm:$0x3]  }
 0x1a0   :  { %v2895_v20 = vld [vmem:[#allocation0 + $0x2a0] sm:$0x3]   ;;  %5708 = vst [vmem:[%s9221_s1 + $0xa1] ss:$8 sm:$0x3] %v2887_v18  }
 0x1a1   :  { %5709 = vst [vmem:[%s9221_s1 + $0xb1] ss:$8 sm:$0x3] %v2891_v19   ;;  %5710 = vst [vmem:[%s9221_s1 + $0xa2] ss:$8 sm:$0x3] %v2895_v20  }
 0x1a2   :  { %v2899_v21 = vld [vmem:[#allocation0 + $0x2a8] sm:$0x3]   ;;  %v2903_v22 = vld [vmem:[#allocation0 + $0x2b0] sm:$0x3]   ;;  %v2907_v23 = vld [vmem:[#allocation0 + $0x2b8] sm:$0x3]  }
 0x1a3   :  { %5711 = vst [vmem:[%s9221_s1 + $0xb2] ss:$8 sm:$0x3] %v2899_v21   ;;  %5712 = vst [vmem:[%s9221_s1 + $0xa3] ss:$8 sm:$0x3] %v2903_v22  }
 0x1a4   :  { %5713 = vst [vmem:[%s9221_s1 + $0xb3] ss:$8 sm:$0x3] %v2907_v23   ;;  %v2911_v24 = vld [vmem:[#allocation0 + $0x2c0] sm:$0x3]  }
 0x1a5   :  { %v2915_v25 = vld [vmem:[#allocation0 + $0x2c8] sm:$0x3]   ;;  %v2919_v26 = vld [vmem:[#allocation0 + $0x2d0] sm:$0x3]   ;;  %v2923_v27 = vld [vmem:[#allocation0 + $0x2d8] sm:$0x3]  }
 0x1a6   :  { %5714 = vst [vmem:[%s9221_s1 + $0xa4] ss:$8 sm:$0x3] %v2911_v24   ;;  %5715 = vst [vmem:[%s9221_s1 + $0xb4] ss:$8 sm:$0x3] %v2915_v25  }
 0x1a7   :  { %5716 = vst [vmem:[%s9221_s1 + $0xa5] ss:$8 sm:$0x3] %v2919_v26   ;;  %v2927_v28 = vld [vmem:[#allocation0 + $0x2e0] sm:$0x3]  }
 0x1a8   :  { %v2931_v29 = vld [vmem:[#allocation0 + $0x2e8] sm:$0x3]   ;;  %5717 = vst [vmem:[%s9221_s1 + $0xb5] ss:$8 sm:$0x3] %v2923_v27  }
 0x1a9   :  { %5718 = vst [vmem:[%s9221_s1 + $0xa6] ss:$8 sm:$0x3] %v2927_v28   ;;  %5719 = vst [vmem:[%s9221_s1 + $0xb6] ss:$8 sm:$0x3] %v2931_v29  }
 0x1aa   :  { %v2935_v30 = vld [vmem:[#allocation0 + $0x2f0] sm:$0x3]   ;;  %v2939_v31 = vld [vmem:[#allocation0 + $0x2f8] sm:$0x3]   ;;  %v2943_v32 = vld [vmem:[#allocation0 + $0x300] sm:$0x3]  }
 0x1ab   :  { %5720 = vst [vmem:[%s9221_s1 + $0xa7] ss:$8 sm:$0x3] %v2935_v30   ;;  %5721 = vst [vmem:[%s9221_s1 + $0xb7] ss:$8 sm:$0x3] %v2939_v31  }
 0x1ac   :  { %5722 = vst [vmem:[%s9221_s1 + $0xc0] ss:$8 sm:$0x3] %v2943_v32   ;;  %v2947_v33 = vld [vmem:[#allocation0 + $0x308] sm:$0x3]  }
 0x1ad   :  { %v2951_v34 = vld [vmem:[#allocation0 + $0x310] sm:$0x3]   ;;  %v2955_v35 = vld [vmem:[#allocation0 + $0x318] sm:$0x3]   ;;  %v2959_v36 = vld [vmem:[#allocation0 + $0x320] sm:$0x3]  }
 0x1ae   :  { %5723 = vst [vmem:[%s9221_s1 + $0xd0] ss:$8 sm:$0x3] %v2947_v33   ;;  %5724 = vst [vmem:[%s9221_s1 + $0xc1] ss:$8 sm:$0x3] %v2951_v34  }
 0x1af   :  { %5725 = vst [vmem:[%s9221_s1 + $0xd1] ss:$8 sm:$0x3] %v2955_v35   ;;  %v2963_v37 = vld [vmem:[#allocation0 + $0x328] sm:$0x3]  }
 0x1b0   :  { %v2967_v38 = vld [vmem:[#allocation0 + $0x330] sm:$0x3]   ;;  %5726 = vst [vmem:[%s9221_s1 + $0xc2] ss:$8 sm:$0x3] %v2959_v36  }
 0x1b1   :  { %5727 = vst [vmem:[%s9221_s1 + $0xd2] ss:$8 sm:$0x3] %v2963_v37   ;;  %5728 = vst [vmem:[%s9221_s1 + $0xc3] ss:$8 sm:$0x3] %v2967_v38  }
 0x1b2   :  { %v2971_v39 = vld [vmem:[#allocation0 + $0x338] sm:$0x3]   ;;  %v2975_v40 = vld [vmem:[#allocation0 + $0x340] sm:$0x3]   ;;  %v2979_v41 = vld [vmem:[#allocation0 + $0x348] sm:$0x3]  }
 0x1b3   :  { %5729 = vst [vmem:[%s9221_s1 + $0xd3] ss:$8 sm:$0x3] %v2971_v39   ;;  %5730 = vst [vmem:[%s9221_s1 + $0xc4] ss:$8 sm:$0x3] %v2975_v40  }
 0x1b4   :  { %5731 = vst [vmem:[%s9221_s1 + $0xd4] ss:$8 sm:$0x3] %v2979_v41   ;;  %v2983_v42 = vld [vmem:[#allocation0 + $0x350] sm:$0x3]  }
 0x1b5   :  { %v2987_v43 = vld [vmem:[#allocation0 + $0x358] sm:$0x3]   ;;  %v2991_v44 = vld [vmem:[#allocation0 + $0x360] sm:$0x3]   ;;  %v2995_v45 = vld [vmem:[#allocation0 + $0x368] sm:$0x3]  }
 0x1b6   :  { %5732 = vst [vmem:[%s9221_s1 + $0xc5] ss:$8 sm:$0x3] %v2983_v42   ;;  %5733 = vst [vmem:[%s9221_s1 + $0xd5] ss:$8 sm:$0x3] %v2987_v43  }
 0x1b7   :  { %5734 = vst [vmem:[%s9221_s1 + $0xc6] ss:$8 sm:$0x3] %v2991_v44   ;;  %v2999_v46 = vld [vmem:[#allocation0 + $0x370] sm:$0x3]  }
 0x1b8   :  { %v3003_v47 = vld [vmem:[#allocation0 + $0x378] sm:$0x3]   ;;  %5735 = vst [vmem:[%s9221_s1 + $0xd6] ss:$8 sm:$0x3] %v2995_v45  }
 0x1b9   :  { %5736 = vst [vmem:[%s9221_s1 + $0xc7] ss:$8 sm:$0x3] %v2999_v46   ;;  %5737 = vst [vmem:[%s9221_s1 + $0xd7] ss:$8 sm:$0x3] %v3003_v47  }
 0x1ba   :  { %v3007_v48 = vld [vmem:[#allocation0 + $0x380] sm:$0x3]   ;;  %v3011_v49 = vld [vmem:[#allocation0 + $0x388] sm:$0x3]   ;;  %v3015_v50 = vld [vmem:[#allocation0 + $0x390] sm:$0x3]  }
 0x1bb   :  { %5738 = vst [vmem:[%s9221_s1 + $0xe0] ss:$8 sm:$0x3] %v3007_v48   ;;  %5739 = vst [vmem:[%s9221_s1 + $0xf0] ss:$8 sm:$0x3] %v3011_v49  }
 0x1bc   :  { %5740 = vst [vmem:[%s9221_s1 + $0xe1] ss:$8 sm:$0x3] %v3015_v50   ;;  %v3019_v51 = vld [vmem:[#allocation0 + $0x398] sm:$0x3]  }
 0x1bd   :  { %v3023_v52 = vld [vmem:[#allocation0 + $0x3a0] sm:$0x3]   ;;  %v3027_v53 = vld [vmem:[#allocation0 + $0x3a8] sm:$0x3]   ;;  %v3031_v54 = vld [vmem:[#allocation0 + $0x3b0] sm:$0x3]  }
 0x1be   :  { %5741 = vst [vmem:[%s9221_s1 + $0xf1] ss:$8 sm:$0x3] %v3019_v51   ;;  %5742 = vst [vmem:[%s9221_s1 + $0xe2] ss:$8 sm:$0x3] %v3023_v52  }
 0x1bf   :  { %5743 = vst [vmem:[%s9221_s1 + $0xf2] ss:$8 sm:$0x3] %v3027_v53   ;;  %v3035_v55 = vld [vmem:[#allocation0 + $0x3b8] sm:$0x3]  }
 0x1c0   :  { %v3039_v56 = vld [vmem:[#allocation0 + $0x3c0] sm:$0x3]   ;;  %5744 = vst [vmem:[%s9221_s1 + $0xe3] ss:$8 sm:$0x3] %v3031_v54  }
 0x1c1   :  { %5745 = vst [vmem:[%s9221_s1 + $0xf3] ss:$8 sm:$0x3] %v3035_v55   ;;  %5746 = vst [vmem:[%s9221_s1 + $0xe4] ss:$8 sm:$0x3] %v3039_v56  }
 0x1c2   :  { %v3043_v57 = vld [vmem:[#allocation0 + $0x3c8] sm:$0x3]   ;;  %v3047_v58 = vld [vmem:[#allocation0 + $0x3d0] sm:$0x3]   ;;  %v3051_v59 = vld [vmem:[#allocation0 + $0x3d8] sm:$0x3]  }
 0x1c3   :  { %5747 = vst [vmem:[%s9221_s1 + $0xf4] ss:$8 sm:$0x3] %v3043_v57   ;;  %5748 = vst [vmem:[%s9221_s1 + $0xe5] ss:$8 sm:$0x3] %v3047_v58  }
 0x1c4   :  { %5749 = vst [vmem:[%s9221_s1 + $0xf5] ss:$8 sm:$0x3] %v3051_v59   ;;  %v3055_v60 = vld [vmem:[#allocation0 + $0x3e0] sm:$0x3]  }
 0x1c5   :  { %v3059_v61 = vld [vmem:[#allocation0 + $0x3e8] sm:$0x3]   ;;  %v3063_v62 = vld [vmem:[#allocation0 + $0x3f0] sm:$0x3]   ;;  %v3067_v63 = vld [vmem:[#allocation0 + $0x3f8] sm:$0x3]  }
 0x1c6   :  { %5750 = vst [vmem:[%s9221_s1 + $0xe6] ss:$8 sm:$0x3] %v3055_v60   ;;  %5751 = vst [vmem:[%s9221_s1 + $0xf6] ss:$8 sm:$0x3] %v3059_v61  }
 0x1c7   :  { %5752 = vst [vmem:[%s9221_s1 + $0xe7] ss:$8 sm:$0x3] %v3063_v62   ;;  %v3071_v0 = vld [vmem:[#allocation0 + $0x400] sm:$0x3]  }
 0x1c8   :  { %v3075_v1 = vld [vmem:[#allocation0 + $0x408] sm:$0x3]   ;;  %5753 = vst [vmem:[%s9221_s1 + $0xf7] ss:$8 sm:$0x3] %v3067_v63  }
 0x1c9   :  { %5754 = vst [vmem:[%s9221_s1 + $0x100] ss:$8 sm:$0x3] %v3071_v0   ;;  %5755 = vst [vmem:[%s9221_s1 + $0x110] ss:$8 sm:$0x3] %v3075_v1  }
 0x1ca   :  { %v3079_v2 = vld [vmem:[#allocation0 + $0x410] sm:$0x3]   ;;  %v3083_v3 = vld [vmem:[#allocation0 + $0x418] sm:$0x3]   ;;  %v3087_v4 = vld [vmem:[#allocation0 + $0x420] sm:$0x3]  }
 0x1cb   :  { %5756 = vst [vmem:[%s9221_s1 + $0x101] ss:$8 sm:$0x3] %v3079_v2   ;;  %5757 = vst [vmem:[%s9221_s1 + $0x111] ss:$8 sm:$0x3] %v3083_v3  }
 0x1cc   :  { %5758 = vst [vmem:[%s9221_s1 + $0x102] ss:$8 sm:$0x3] %v3087_v4   ;;  %v3091_v5 = vld [vmem:[#allocation0 + $0x428] sm:$0x3]  }
 0x1cd   :  { %v3095_v6 = vld [vmem:[#allocation0 + $0x430] sm:$0x3]   ;;  %v3099_v7 = vld [vmem:[#allocation0 + $0x438] sm:$0x3]   ;;  %v3103_v8 = vld [vmem:[#allocation0 + $0x440] sm:$0x3]  }
 0x1ce   :  { %5759 = vst [vmem:[%s9221_s1 + $0x112] ss:$8 sm:$0x3] %v3091_v5   ;;  %5760 = vst [vmem:[%s9221_s1 + $0x103] ss:$8 sm:$0x3] %v3095_v6  }
 0x1cf   :  { %5761 = vst [vmem:[%s9221_s1 + $0x113] ss:$8 sm:$0x3] %v3099_v7   ;;  %v3107_v9 = vld [vmem:[#allocation0 + $0x448] sm:$0x3]  }
 0x1d0   :  { %v3111_v10 = vld [vmem:[#allocation0 + $0x450] sm:$0x3]   ;;  %5762 = vst [vmem:[%s9221_s1 + $0x104] ss:$8 sm:$0x3] %v3103_v8  }
 0x1d1   :  { %5763 = vst [vmem:[%s9221_s1 + $0x114] ss:$8 sm:$0x3] %v3107_v9   ;;  %5764 = vst [vmem:[%s9221_s1 + $0x105] ss:$8 sm:$0x3] %v3111_v10  }
 0x1d2   :  { %v3115_v11 = vld [vmem:[#allocation0 + $0x458] sm:$0x3]   ;;  %v3119_v12 = vld [vmem:[#allocation0 + $0x460] sm:$0x3]   ;;  %v3123_v13 = vld [vmem:[#allocation0 + $0x468] sm:$0x3]  }
 0x1d3   :  { %5765 = vst [vmem:[%s9221_s1 + $0x115] ss:$8 sm:$0x3] %v3115_v11   ;;  %5766 = vst [vmem:[%s9221_s1 + $0x106] ss:$8 sm:$0x3] %v3119_v12  }
 0x1d4   :  { %5767 = vst [vmem:[%s9221_s1 + $0x116] ss:$8 sm:$0x3] %v3123_v13   ;;  %v3127_v14 = vld [vmem:[#allocation0 + $0x470] sm:$0x3]  }
 0x1d5   :  { %v3131_v15 = vld [vmem:[#allocation0 + $0x478] sm:$0x3]   ;;  %v3135_v16 = vld [vmem:[#allocation0 + $0x480] sm:$0x3]   ;;  %v3139_v17 = vld [vmem:[#allocation0 + $0x488] sm:$0x3]  }
 0x1d6   :  { %5768 = vst [vmem:[%s9221_s1 + $0x107] ss:$8 sm:$0x3] %v3127_v14   ;;  %5769 = vst [vmem:[%s9221_s1 + $0x117] ss:$8 sm:$0x3] %v3131_v15  }
 0x1d7   :  { %5770 = vst [vmem:[%s9221_s1 + $0x120] ss:$8 sm:$0x3] %v3135_v16   ;;  %v3143_v18 = vld [vmem:[#allocation0 + $0x490] sm:$0x3]  }
 0x1d8   :  { %v3147_v19 = vld [vmem:[#allocation0 + $0x498] sm:$0x3]   ;;  %5771 = vst [vmem:[%s9221_s1 + $0x130] ss:$8 sm:$0x3] %v3139_v17  }
 0x1d9   :  { %5772 = vst [vmem:[%s9221_s1 + $0x121] ss:$8 sm:$0x3] %v3143_v18   ;;  %5773 = vst [vmem:[%s9221_s1 + $0x131] ss:$8 sm:$0x3] %v3147_v19  }
 0x1da   :  { %v3151_v20 = vld [vmem:[#allocation0 + $0x4a0] sm:$0x3]   ;;  %v3155_v21 = vld [vmem:[#allocation0 + $0x4a8] sm:$0x3]   ;;  %v3159_v22 = vld [vmem:[#allocation0 + $0x4b0] sm:$0x3]  }
 0x1db   :  { %5774 = vst [vmem:[%s9221_s1 + $0x122] ss:$8 sm:$0x3] %v3151_v20   ;;  %5775 = vst [vmem:[%s9221_s1 + $0x132] ss:$8 sm:$0x3] %v3155_v21  }
 0x1dc   :  { %5776 = vst [vmem:[%s9221_s1 + $0x123] ss:$8 sm:$0x3] %v3159_v22   ;;  %v3163_v23 = vld [vmem:[#allocation0 + $0x4b8] sm:$0x3]  }
 0x1dd   :  { %v3167_v24 = vld [vmem:[#allocation0 + $0x4c0] sm:$0x3]   ;;  %v3171_v25 = vld [vmem:[#allocation0 + $0x4c8] sm:$0x3]   ;;  %v3175_v26 = vld [vmem:[#allocation0 + $0x4d0] sm:$0x3]  }
 0x1de   :  { %5777 = vst [vmem:[%s9221_s1 + $0x133] ss:$8 sm:$0x3] %v3163_v23   ;;  %5778 = vst [vmem:[%s9221_s1 + $0x124] ss:$8 sm:$0x3] %v3167_v24  }
 0x1df   :  { %5779 = vst [vmem:[%s9221_s1 + $0x134] ss:$8 sm:$0x3] %v3171_v25   ;;  %v3179_v27 = vld [vmem:[#allocation0 + $0x4d8] sm:$0x3]  }
 0x1e0   :  { %v3183_v28 = vld [vmem:[#allocation0 + $0x4e0] sm:$0x3]   ;;  %5780 = vst [vmem:[%s9221_s1 + $0x125] ss:$8 sm:$0x3] %v3175_v26  }
 0x1e1   :  { %5781 = vst [vmem:[%s9221_s1 + $0x135] ss:$8 sm:$0x3] %v3179_v27   ;;  %5782 = vst [vmem:[%s9221_s1 + $0x126] ss:$8 sm:$0x3] %v3183_v28  }
 0x1e2   :  { %v3187_v29 = vld [vmem:[#allocation0 + $0x4e8] sm:$0x3]   ;;  %v3191_v30 = vld [vmem:[#allocation0 + $0x4f0] sm:$0x3]   ;;  %v3195_v31 = vld [vmem:[#allocation0 + $0x4f8] sm:$0x3]  }
 0x1e3   :  { %5783 = vst [vmem:[%s9221_s1 + $0x136] ss:$8 sm:$0x3] %v3187_v29   ;;  %5784 = vst [vmem:[%s9221_s1 + $0x127] ss:$8 sm:$0x3] %v3191_v30  }
 0x1e4   :  { %5785 = vst [vmem:[%s9221_s1 + $0x137] ss:$8 sm:$0x3] %v3195_v31   ;;  %v3199_v32 = vld [vmem:[#allocation0 + $0x500] sm:$0x3]  }
 0x1e5   :  { %v3203_v33 = vld [vmem:[#allocation0 + $0x508] sm:$0x3]   ;;  %v3207_v34 = vld [vmem:[#allocation0 + $0x510] sm:$0x3]   ;;  %v3211_v35 = vld [vmem:[#allocation0 + $0x518] sm:$0x3]  }
 0x1e6   :  { %5786 = vst [vmem:[%s9221_s1 + $0x140] ss:$8 sm:$0x3] %v3199_v32   ;;  %5787 = vst [vmem:[%s9221_s1 + $0x150] ss:$8 sm:$0x3] %v3203_v33  }
 0x1e7   :  { %5788 = vst [vmem:[%s9221_s1 + $0x141] ss:$8 sm:$0x3] %v3207_v34   ;;  %v3215_v36 = vld [vmem:[#allocation0 + $0x520] sm:$0x3]  }
 0x1e8   :  { %v3219_v37 = vld [vmem:[#allocation0 + $0x528] sm:$0x3]   ;;  %5789 = vst [vmem:[%s9221_s1 + $0x151] ss:$8 sm:$0x3] %v3211_v35  }
 0x1e9   :  { %5790 = vst [vmem:[%s9221_s1 + $0x142] ss:$8 sm:$0x3] %v3215_v36   ;;  %5791 = vst [vmem:[%s9221_s1 + $0x152] ss:$8 sm:$0x3] %v3219_v37  }
 0x1ea   :  { %v3223_v38 = vld [vmem:[#allocation0 + $0x530] sm:$0x3]   ;;  %v3227_v39 = vld [vmem:[#allocation0 + $0x538] sm:$0x3]   ;;  %v3231_v40 = vld [vmem:[#allocation0 + $0x540] sm:$0x3]  }
 0x1eb   :  { %5792 = vst [vmem:[%s9221_s1 + $0x143] ss:$8 sm:$0x3] %v3223_v38   ;;  %5793 = vst [vmem:[%s9221_s1 + $0x153] ss:$8 sm:$0x3] %v3227_v39  }
 0x1ec   :  { %5794 = vst [vmem:[%s9221_s1 + $0x144] ss:$8 sm:$0x3] %v3231_v40   ;;  %v3235_v41 = vld [vmem:[#allocation0 + $0x548] sm:$0x3]  }
 0x1ed   :  { %v3239_v42 = vld [vmem:[#allocation0 + $0x550] sm:$0x3]   ;;  %v3243_v43 = vld [vmem:[#allocation0 + $0x558] sm:$0x3]   ;;  %v3247_v44 = vld [vmem:[#allocation0 + $0x560] sm:$0x3]  }
 0x1ee   :  { %5795 = vst [vmem:[%s9221_s1 + $0x154] ss:$8 sm:$0x3] %v3235_v41   ;;  %5796 = vst [vmem:[%s9221_s1 + $0x145] ss:$8 sm:$0x3] %v3239_v42  }
 0x1ef   :  { %5797 = vst [vmem:[%s9221_s1 + $0x155] ss:$8 sm:$0x3] %v3243_v43   ;;  %v3251_v45 = vld [vmem:[#allocation0 + $0x568] sm:$0x3]  }
 0x1f0   :  { %v3255_v46 = vld [vmem:[#allocation0 + $0x570] sm:$0x3]   ;;  %5798 = vst [vmem:[%s9221_s1 + $0x146] ss:$8 sm:$0x3] %v3247_v44  }
 0x1f1   :  { %5799 = vst [vmem:[%s9221_s1 + $0x156] ss:$8 sm:$0x3] %v3251_v45   ;;  %5800 = vst [vmem:[%s9221_s1 + $0x147] ss:$8 sm:$0x3] %v3255_v46  }
 0x1f2   :  { %v3259_v47 = vld [vmem:[#allocation0 + $0x578] sm:$0x3]   ;;  %v3263_v48 = vld [vmem:[#allocation0 + $0x580] sm:$0x3]   ;;  %v3267_v49 = vld [vmem:[#allocation0 + $0x588] sm:$0x3]  }
 0x1f3   :  { %5801 = vst [vmem:[%s9221_s1 + $0x157] ss:$8 sm:$0x3] %v3259_v47   ;;  %5802 = vst [vmem:[%s9221_s1 + $0x160] ss:$8 sm:$0x3] %v3263_v48  }
 0x1f4   :  { %5803 = vst [vmem:[%s9221_s1 + $0x170] ss:$8 sm:$0x3] %v3267_v49   ;;  %v3271_v50 = vld [vmem:[#allocation0 + $0x590] sm:$0x3]  }
 0x1f5   :  { %v3275_v51 = vld [vmem:[#allocation0 + $0x598] sm:$0x3]   ;;  %v3279_v52 = vld [vmem:[#allocation0 + $0x5a0] sm:$0x3]   ;;  %v3283_v53 = vld [vmem:[#allocation0 + $0x5a8] sm:$0x3]  }
 0x1f6   :  { %5804 = vst [vmem:[%s9221_s1 + $0x161] ss:$8 sm:$0x3] %v3271_v50   ;;  %5805 = vst [vmem:[%s9221_s1 + $0x171] ss:$8 sm:$0x3] %v3275_v51  }
 0x1f7   :  { %5806 = vst [vmem:[%s9221_s1 + $0x162] ss:$8 sm:$0x3] %v3279_v52   ;;  %v3287_v54 = vld [vmem:[#allocation0 + $0x5b0] sm:$0x3]  }
 0x1f8   :  { %v3291_v55 = vld [vmem:[#allocation0 + $0x5b8] sm:$0x3]   ;;  %5807 = vst [vmem:[%s9221_s1 + $0x172] ss:$8 sm:$0x3] %v3283_v53  }
 0x1f9   :  { %5808 = vst [vmem:[%s9221_s1 + $0x163] ss:$8 sm:$0x3] %v3287_v54   ;;  %5809 = vst [vmem:[%s9221_s1 + $0x173] ss:$8 sm:$0x3] %v3291_v55  }
 0x1fa   :  { %v3295_v56 = vld [vmem:[#allocation0 + $0x5c0] sm:$0x3]   ;;  %v3299_v57 = vld [vmem:[#allocation0 + $0x5c8] sm:$0x3]   ;;  %v3303_v58 = vld [vmem:[#allocation0 + $0x5d0] sm:$0x3]  }
 0x1fb   :  { %5810 = vst [vmem:[%s9221_s1 + $0x164] ss:$8 sm:$0x3] %v3295_v56   ;;  %5811 = vst [vmem:[%s9221_s1 + $0x174] ss:$8 sm:$0x3] %v3299_v57  }
 0x1fc   :  { %5812 = vst [vmem:[%s9221_s1 + $0x165] ss:$8 sm:$0x3] %v3303_v58   ;;  %v3307_v59 = vld [vmem:[#allocation0 + $0x5d8] sm:$0x3]  }
 0x1fd   :  { %v3311_v60 = vld [vmem:[#allocation0 + $0x5e0] sm:$0x3]   ;;  %v3315_v61 = vld [vmem:[#allocation0 + $0x5e8] sm:$0x3]   ;;  %v3319_v62 = vld [vmem:[#allocation0 + $0x5f0] sm:$0x3]  }
 0x1fe   :  { %5813 = vst [vmem:[%s9221_s1 + $0x175] ss:$8 sm:$0x3] %v3307_v59   ;;  %5814 = vst [vmem:[%s9221_s1 + $0x166] ss:$8 sm:$0x3] %v3311_v60  }
 0x1ff   :  { %5815 = vst [vmem:[%s9221_s1 + $0x176] ss:$8 sm:$0x3] %v3315_v61   ;;  %v3323_v63 = vld [vmem:[#allocation0 + $0x5f8] sm:$0x3]  }
 0x200   :  { %v3327_v0 = vld [vmem:[#allocation0 + $0x600] sm:$0x3]   ;;  %5816 = vst [vmem:[%s9221_s1 + $0x167] ss:$8 sm:$0x3] %v3319_v62  }
 0x201   :  { %5817 = vst [vmem:[%s9221_s1 + $0x177] ss:$8 sm:$0x3] %v3323_v63   ;;  %5818 = vst [vmem:[%s9221_s1 + $0x180] ss:$8 sm:$0x3] %v3327_v0  }
 0x202   :  { %v3331_v1 = vld [vmem:[#allocation0 + $0x608] sm:$0x3]   ;;  %v3335_v2 = vld [vmem:[#allocation0 + $0x610] sm:$0x3]   ;;  %v3339_v3 = vld [vmem:[#allocation0 + $0x618] sm:$0x3]  }
 0x203   :  { %5819 = vst [vmem:[%s9221_s1 + $0x190] ss:$8 sm:$0x3] %v3331_v1   ;;  %5820 = vst [vmem:[%s9221_s1 + $0x181] ss:$8 sm:$0x3] %v3335_v2  }
 0x204   :  { %5821 = vst [vmem:[%s9221_s1 + $0x191] ss:$8 sm:$0x3] %v3339_v3   ;;  %v3343_v4 = vld [vmem:[#allocation0 + $0x620] sm:$0x3]  }
 0x205   :  { %v3347_v5 = vld [vmem:[#allocation0 + $0x628] sm:$0x3]   ;;  %v3351_v6 = vld [vmem:[#allocation0 + $0x630] sm:$0x3]   ;;  %v3355_v7 = vld [vmem:[#allocation0 + $0x638] sm:$0x3]  }
 0x206   :  { %5822 = vst [vmem:[%s9221_s1 + $0x182] ss:$8 sm:$0x3] %v3343_v4   ;;  %5823 = vst [vmem:[%s9221_s1 + $0x192] ss:$8 sm:$0x3] %v3347_v5  }
 0x207   :  { %5824 = vst [vmem:[%s9221_s1 + $0x183] ss:$8 sm:$0x3] %v3351_v6   ;;  %v3359_v8 = vld [vmem:[#allocation0 + $0x640] sm:$0x3]  }
 0x208   :  { %v3363_v9 = vld [vmem:[#allocation0 + $0x648] sm:$0x3]   ;;  %5825 = vst [vmem:[%s9221_s1 + $0x193] ss:$8 sm:$0x3] %v3355_v7  }
 0x209   :  { %5826 = vst [vmem:[%s9221_s1 + $0x184] ss:$8 sm:$0x3] %v3359_v8   ;;  %5827 = vst [vmem:[%s9221_s1 + $0x194] ss:$8 sm:$0x3] %v3363_v9  }
 0x20a   :  { %v3367_v10 = vld [vmem:[#allocation0 + $0x650] sm:$0x3]   ;;  %v3371_v11 = vld [vmem:[#allocation0 + $0x658] sm:$0x3]   ;;  %v3375_v12 = vld [vmem:[#allocation0 + $0x660] sm:$0x3]  }
 0x20b   :  { %5828 = vst [vmem:[%s9221_s1 + $0x185] ss:$8 sm:$0x3] %v3367_v10   ;;  %5829 = vst [vmem:[%s9221_s1 + $0x195] ss:$8 sm:$0x3] %v3371_v11  }
 0x20c   :  { %5830 = vst [vmem:[%s9221_s1 + $0x186] ss:$8 sm:$0x3] %v3375_v12   ;;  %v3379_v13 = vld [vmem:[#allocation0 + $0x668] sm:$0x3]  }
 0x20d   :  { %v3383_v14 = vld [vmem:[#allocation0 + $0x670] sm:$0x3]   ;;  %v3387_v15 = vld [vmem:[#allocation0 + $0x678] sm:$0x3]   ;;  %v3391_v16 = vld [vmem:[#allocation0 + $0x680] sm:$0x3]  }
 0x20e   :  { %5831 = vst [vmem:[%s9221_s1 + $0x196] ss:$8 sm:$0x3] %v3379_v13   ;;  %5832 = vst [vmem:[%s9221_s1 + $0x187] ss:$8 sm:$0x3] %v3383_v14  }
 0x20f   :  { %5833 = vst [vmem:[%s9221_s1 + $0x197] ss:$8 sm:$0x3] %v3387_v15   ;;  %v3395_v17 = vld [vmem:[#allocation0 + $0x688] sm:$0x3]  }
 0x210   :  { %v3399_v18 = vld [vmem:[#allocation0 + $0x690] sm:$0x3]   ;;  %5834 = vst [vmem:[%s9221_s1 + $0x1a0] ss:$8 sm:$0x3] %v3391_v16  }
 0x211   :  { %5835 = vst [vmem:[%s9221_s1 + $0x1b0] ss:$8 sm:$0x3] %v3395_v17   ;;  %5836 = vst [vmem:[%s9221_s1 + $0x1a1] ss:$8 sm:$0x3] %v3399_v18  }
 0x212   :  { %v3403_v19 = vld [vmem:[#allocation0 + $0x698] sm:$0x3]   ;;  %v3407_v20 = vld [vmem:[#allocation0 + $0x6a0] sm:$0x3]   ;;  %v3411_v21 = vld [vmem:[#allocation0 + $0x6a8] sm:$0x3]  }
 0x213   :  { %5837 = vst [vmem:[%s9221_s1 + $0x1b1] ss:$8 sm:$0x3] %v3403_v19   ;;  %5838 = vst [vmem:[%s9221_s1 + $0x1a2] ss:$8 sm:$0x3] %v3407_v20  }
 0x214   :  { %5839 = vst [vmem:[%s9221_s1 + $0x1b2] ss:$8 sm:$0x3] %v3411_v21   ;;  %v3415_v22 = vld [vmem:[#allocation0 + $0x6b0] sm:$0x3]  }
 0x215   :  { %v3419_v23 = vld [vmem:[#allocation0 + $0x6b8] sm:$0x3]   ;;  %v3423_v24 = vld [vmem:[#allocation0 + $0x6c0] sm:$0x3]   ;;  %v3427_v25 = vld [vmem:[#allocation0 + $0x6c8] sm:$0x3]  }
 0x216   :  { %5840 = vst [vmem:[%s9221_s1 + $0x1a3] ss:$8 sm:$0x3] %v3415_v22   ;;  %5841 = vst [vmem:[%s9221_s1 + $0x1b3] ss:$8 sm:$0x3] %v3419_v23  }
 0x217   :  { %5842 = vst [vmem:[%s9221_s1 + $0x1a4] ss:$8 sm:$0x3] %v3423_v24   ;;  %v3431_v26 = vld [vmem:[#allocation0 + $0x6d0] sm:$0x3]  }
 0x218   :  { %v3435_v27 = vld [vmem:[#allocation0 + $0x6d8] sm:$0x3]   ;;  %5843 = vst [vmem:[%s9221_s1 + $0x1b4] ss:$8 sm:$0x3] %v3427_v25  }
 0x219   :  { %5844 = vst [vmem:[%s9221_s1 + $0x1a5] ss:$8 sm:$0x3] %v3431_v26   ;;  %5845 = vst [vmem:[%s9221_s1 + $0x1b5] ss:$8 sm:$0x3] %v3435_v27  }
 0x21a   :  { %v3439_v28 = vld [vmem:[#allocation0 + $0x6e0] sm:$0x3]   ;;  %v3443_v29 = vld [vmem:[#allocation0 + $0x6e8] sm:$0x3]   ;;  %v3447_v30 = vld [vmem:[#allocation0 + $0x6f0] sm:$0x3]  }
 0x21b   :  { %5846 = vst [vmem:[%s9221_s1 + $0x1a6] ss:$8 sm:$0x3] %v3439_v28   ;;  %5847 = vst [vmem:[%s9221_s1 + $0x1b6] ss:$8 sm:$0x3] %v3443_v29  }
 0x21c   :  { %5848 = vst [vmem:[%s9221_s1 + $0x1a7] ss:$8 sm:$0x3] %v3447_v30   ;;  %v3451_v31 = vld [vmem:[#allocation0 + $0x6f8] sm:$0x3]  }
 0x21d   :  { %v3455_v32 = vld [vmem:[#allocation0 + $0x700] sm:$0x3]   ;;  %v3459_v33 = vld [vmem:[#allocation0 + $0x708] sm:$0x3]   ;;  %v3463_v34 = vld [vmem:[#allocation0 + $0x710] sm:$0x3]  }
 0x21e   :  { %5849 = vst [vmem:[%s9221_s1 + $0x1b7] ss:$8 sm:$0x3] %v3451_v31   ;;  %5850 = vst [vmem:[%s9221_s1 + $0x1c0] ss:$8 sm:$0x3] %v3455_v32  }
 0x21f   :  { %5851 = vst [vmem:[%s9221_s1 + $0x1d0] ss:$8 sm:$0x3] %v3459_v33   ;;  %v3467_v35 = vld [vmem:[#allocation0 + $0x718] sm:$0x3]  }
 0x220   :  { %v3471_v36 = vld [vmem:[#allocation0 + $0x720] sm:$0x3]   ;;  %5852 = vst [vmem:[%s9221_s1 + $0x1c1] ss:$8 sm:$0x3] %v3463_v34  }
 0x221   :  { %5853 = vst [vmem:[%s9221_s1 + $0x1d1] ss:$8 sm:$0x3] %v3467_v35   ;;  %5854 = vst [vmem:[%s9221_s1 + $0x1c2] ss:$8 sm:$0x3] %v3471_v36  }
 0x222   :  { %v3475_v37 = vld [vmem:[#allocation0 + $0x728] sm:$0x3]   ;;  %v3479_v38 = vld [vmem:[#allocation0 + $0x730] sm:$0x3]   ;;  %v3483_v39 = vld [vmem:[#allocation0 + $0x738] sm:$0x3]  }
 0x223   :  { %5855 = vst [vmem:[%s9221_s1 + $0x1d2] ss:$8 sm:$0x3] %v3475_v37   ;;  %5856 = vst [vmem:[%s9221_s1 + $0x1c3] ss:$8 sm:$0x3] %v3479_v38  }
 0x224   :  { %5857 = vst [vmem:[%s9221_s1 + $0x1d3] ss:$8 sm:$0x3] %v3483_v39   ;;  %v3487_v40 = vld [vmem:[#allocation0 + $0x740] sm:$0x3]  }
 0x225   :  { %v3491_v41 = vld [vmem:[#allocation0 + $0x748] sm:$0x3]   ;;  %v3495_v42 = vld [vmem:[#allocation0 + $0x750] sm:$0x3]   ;;  %v3499_v43 = vld [vmem:[#allocation0 + $0x758] sm:$0x3]  }
 0x226   :  { %5858 = vst [vmem:[%s9221_s1 + $0x1c4] ss:$8 sm:$0x3] %v3487_v40   ;;  %5859 = vst [vmem:[%s9221_s1 + $0x1d4] ss:$8 sm:$0x3] %v3491_v41  }
 0x227   :  { %5860 = vst [vmem:[%s9221_s1 + $0x1c5] ss:$8 sm:$0x3] %v3495_v42   ;;  %v3503_v44 = vld [vmem:[#allocation0 + $0x760] sm:$0x3]  }
 0x228   :  { %v3507_v45 = vld [vmem:[#allocation0 + $0x768] sm:$0x3]   ;;  %5861 = vst [vmem:[%s9221_s1 + $0x1d5] ss:$8 sm:$0x3] %v3499_v43  }
 0x229   :  { %5862 = vst [vmem:[%s9221_s1 + $0x1c6] ss:$8 sm:$0x3] %v3503_v44   ;;  %5863 = vst [vmem:[%s9221_s1 + $0x1d6] ss:$8 sm:$0x3] %v3507_v45  }
 0x22a   :  { %v3511_v46 = vld [vmem:[#allocation0 + $0x770] sm:$0x3]   ;;  %v3515_v47 = vld [vmem:[#allocation0 + $0x778] sm:$0x3]   ;;  %v3519_v48 = vld [vmem:[#allocation0 + $0x780] sm:$0x3]  }
 0x22b   :  { %5864 = vst [vmem:[%s9221_s1 + $0x1c7] ss:$8 sm:$0x3] %v3511_v46   ;;  %5865 = vst [vmem:[%s9221_s1 + $0x1d7] ss:$8 sm:$0x3] %v3515_v47  }
 0x22c   :  { %5866 = vst [vmem:[%s9221_s1 + $0x1e0] ss:$8 sm:$0x3] %v3519_v48   ;;  %v3523_v49 = vld [vmem:[#allocation0 + $0x788] sm:$0x3]  }
 0x22d   :  { %v3527_v50 = vld [vmem:[#allocation0 + $0x790] sm:$0x3]   ;;  %v3531_v51 = vld [vmem:[#allocation0 + $0x798] sm:$0x3]   ;;  %v3535_v52 = vld [vmem:[#allocation0 + $0x7a0] sm:$0x3]  }
 0x22e   :  { %5867 = vst [vmem:[%s9221_s1 + $0x1f0] ss:$8 sm:$0x3] %v3523_v49   ;;  %5868 = vst [vmem:[%s9221_s1 + $0x1e1] ss:$8 sm:$0x3] %v3527_v50  }
 0x22f   :  { %5869 = vst [vmem:[%s9221_s1 + $0x1f1] ss:$8 sm:$0x3] %v3531_v51   ;;  %v3539_v53 = vld [vmem:[#allocation0 + $0x7a8] sm:$0x3]  }
 0x230   :  { %v3543_v54 = vld [vmem:[#allocation0 + $0x7b0] sm:$0x3]   ;;  %5870 = vst [vmem:[%s9221_s1 + $0x1e2] ss:$8 sm:$0x3] %v3535_v52  }
 0x231   :  { %5871 = vst [vmem:[%s9221_s1 + $0x1f2] ss:$8 sm:$0x3] %v3539_v53   ;;  %5872 = vst [vmem:[%s9221_s1 + $0x1e3] ss:$8 sm:$0x3] %v3543_v54  }
 0x232   :  { %v3547_v55 = vld [vmem:[#allocation0 + $0x7b8] sm:$0x3]   ;;  %v3551_v56 = vld [vmem:[#allocation0 + $0x7c0] sm:$0x3]   ;;  %v3555_v57 = vld [vmem:[#allocation0 + $0x7c8] sm:$0x3]  }
 0x233   :  { %5873 = vst [vmem:[%s9221_s1 + $0x1f3] ss:$8 sm:$0x3] %v3547_v55   ;;  %5874 = vst [vmem:[%s9221_s1 + $0x1e4] ss:$8 sm:$0x3] %v3551_v56  }
 0x234   :  { %5875 = vst [vmem:[%s9221_s1 + $0x1f4] ss:$8 sm:$0x3] %v3555_v57   ;;  %v3559_v58 = vld [vmem:[#allocation0 + $0x7d0] sm:$0x3]  }
 0x235   :  { %v3563_v59 = vld [vmem:[#allocation0 + $0x7d8] sm:$0x3]   ;;  %v3567_v60 = vld [vmem:[#allocation0 + $0x7e0] sm:$0x3]   ;;  %v3571_v61 = vld [vmem:[#allocation0 + $0x7e8] sm:$0x3]  }
 0x236   :  { %5876 = vst [vmem:[%s9221_s1 + $0x1e5] ss:$8 sm:$0x3] %v3559_v58   ;;  %5877 = vst [vmem:[%s9221_s1 + $0x1f5] ss:$8 sm:$0x3] %v3563_v59  }
 0x237   :  { %5878 = vst [vmem:[%s9221_s1 + $0x1e6] ss:$8 sm:$0x3] %v3567_v60   ;;  %v3575_v62 = vld [vmem:[#allocation0 + $0x7f0] sm:$0x3]  }
 0x238   :  { %v3579_v63 = vld [vmem:[#allocation0 + $0x7f8] sm:$0x3]   ;;  %5879 = vst [vmem:[%s9221_s1 + $0x1f6] ss:$8 sm:$0x3] %v3571_v61  }
 0x239   :  { %5880 = vst [vmem:[%s9221_s1 + $0x1e7] ss:$8 sm:$0x3] %v3575_v62   ;;  %5881 = vst [vmem:[%s9221_s1 + $0x1f7] ss:$8 sm:$0x3] %v3579_v63  }
 0x23a   :  { %v3583_v0 = vld [vmem:[#allocation0 + $0x800] sm:$0x3]   ;;  %v3587_v1 = vld [vmem:[#allocation0 + $0x808] sm:$0x3]   ;;  %v3591_v2 = vld [vmem:[#allocation0 + $0x810] sm:$0x3]  }
 0x23b   :  { %5882 = vst [vmem:[%s9221_s1 + $0x200] ss:$8 sm:$0x3] %v3583_v0   ;;  %5883 = vst [vmem:[%s9221_s1 + $0x210] ss:$8 sm:$0x3] %v3587_v1  }
 0x23c   :  { %5884 = vst [vmem:[%s9221_s1 + $0x201] ss:$8 sm:$0x3] %v3591_v2   ;;  %v3595_v3 = vld [vmem:[#allocation0 + $0x818] sm:$0x3]  }
 0x23d   :  { %v3599_v4 = vld [vmem:[#allocation0 + $0x820] sm:$0x3]   ;;  %v3603_v5 = vld [vmem:[#allocation0 + $0x828] sm:$0x3]   ;;  %v3607_v6 = vld [vmem:[#allocation0 + $0x830] sm:$0x3]  }
 0x23e   :  { %5885 = vst [vmem:[%s9221_s1 + $0x211] ss:$8 sm:$0x3] %v3595_v3   ;;  %5886 = vst [vmem:[%s9221_s1 + $0x202] ss:$8 sm:$0x3] %v3599_v4  }
 0x23f   :  { %5887 = vst [vmem:[%s9221_s1 + $0x212] ss:$8 sm:$0x3] %v3603_v5   ;;  %v3611_v7 = vld [vmem:[#allocation0 + $0x838] sm:$0x3]  }
 0x240   :  { %v3615_v8 = vld [vmem:[#allocation0 + $0x840] sm:$0x3]   ;;  %5888 = vst [vmem:[%s9221_s1 + $0x203] ss:$8 sm:$0x3] %v3607_v6  }
 0x241   :  { %5889 = vst [vmem:[%s9221_s1 + $0x213] ss:$8 sm:$0x3] %v3611_v7   ;;  %5890 = vst [vmem:[%s9221_s1 + $0x204] ss:$8 sm:$0x3] %v3615_v8  }
 0x242   :  { %v3619_v9 = vld [vmem:[#allocation0 + $0x848] sm:$0x3]   ;;  %v3623_v10 = vld [vmem:[#allocation0 + $0x850] sm:$0x3]   ;;  %v3627_v11 = vld [vmem:[#allocation0 + $0x858] sm:$0x3]  }
 0x243   :  { %5891 = vst [vmem:[%s9221_s1 + $0x214] ss:$8 sm:$0x3] %v3619_v9   ;;  %5892 = vst [vmem:[%s9221_s1 + $0x205] ss:$8 sm:$0x3] %v3623_v10  }
 0x244   :  { %5893 = vst [vmem:[%s9221_s1 + $0x215] ss:$8 sm:$0x3] %v3627_v11   ;;  %v3631_v12 = vld [vmem:[#allocation0 + $0x860] sm:$0x3]  }
 0x245   :  { %v3635_v13 = vld [vmem:[#allocation0 + $0x868] sm:$0x3]   ;;  %v3639_v14 = vld [vmem:[#allocation0 + $0x870] sm:$0x3]   ;;  %v3643_v15 = vld [vmem:[#allocation0 + $0x878] sm:$0x3]  }
 0x246   :  { %5894 = vst [vmem:[%s9221_s1 + $0x206] ss:$8 sm:$0x3] %v3631_v12   ;;  %5895 = vst [vmem:[%s9221_s1 + $0x216] ss:$8 sm:$0x3] %v3635_v13  }
 0x247   :  { %5896 = vst [vmem:[%s9221_s1 + $0x207] ss:$8 sm:$0x3] %v3639_v14   ;;  %v3647_v16 = vld [vmem:[#allocation0 + $0x880] sm:$0x3]  }
 0x248   :  { %v3651_v17 = vld [vmem:[#allocation0 + $0x888] sm:$0x3]   ;;  %5897 = vst [vmem:[%s9221_s1 + $0x217] ss:$8 sm:$0x3] %v3643_v15  }
 0x249   :  { %5898 = vst [vmem:[%s9221_s1 + $0x220] ss:$8 sm:$0x3] %v3647_v16   ;;  %5899 = vst [vmem:[%s9221_s1 + $0x230] ss:$8 sm:$0x3] %v3651_v17  }
 0x24a   :  { %v3655_v18 = vld [vmem:[#allocation0 + $0x890] sm:$0x3]   ;;  %v3659_v19 = vld [vmem:[#allocation0 + $0x898] sm:$0x3]   ;;  %v3663_v20 = vld [vmem:[#allocation0 + $0x8a0] sm:$0x3]  }
 0x24b   :  { %5900 = vst [vmem:[%s9221_s1 + $0x221] ss:$8 sm:$0x3] %v3655_v18   ;;  %5901 = vst [vmem:[%s9221_s1 + $0x231] ss:$8 sm:$0x3] %v3659_v19  }
 0x24c   :  { %5902 = vst [vmem:[%s9221_s1 + $0x222] ss:$8 sm:$0x3] %v3663_v20   ;;  %v3667_v21 = vld [vmem:[#allocation0 + $0x8a8] sm:$0x3]  }
 0x24d   :  { %v3671_v22 = vld [vmem:[#allocation0 + $0x8b0] sm:$0x3]   ;;  %v3675_v23 = vld [vmem:[#allocation0 + $0x8b8] sm:$0x3]   ;;  %v3679_v24 = vld [vmem:[#allocation0 + $0x8c0] sm:$0x3]  }
 0x24e   :  { %5903 = vst [vmem:[%s9221_s1 + $0x232] ss:$8 sm:$0x3] %v3667_v21   ;;  %5904 = vst [vmem:[%s9221_s1 + $0x223] ss:$8 sm:$0x3] %v3671_v22  }
 0x24f   :  { %5905 = vst [vmem:[%s9221_s1 + $0x233] ss:$8 sm:$0x3] %v3675_v23   ;;  %v3683_v25 = vld [vmem:[#allocation0 + $0x8c8] sm:$0x3]  }
 0x250   :  { %v3687_v26 = vld [vmem:[#allocation0 + $0x8d0] sm:$0x3]   ;;  %5906 = vst [vmem:[%s9221_s1 + $0x224] ss:$8 sm:$0x3] %v3679_v24  }
 0x251   :  { %5907 = vst [vmem:[%s9221_s1 + $0x234] ss:$8 sm:$0x3] %v3683_v25   ;;  %5908 = vst [vmem:[%s9221_s1 + $0x225] ss:$8 sm:$0x3] %v3687_v26  }
 0x252   :  { %v3691_v27 = vld [vmem:[#allocation0 + $0x8d8] sm:$0x3]   ;;  %v3695_v28 = vld [vmem:[#allocation0 + $0x8e0] sm:$0x3]   ;;  %v3699_v29 = vld [vmem:[#allocation0 + $0x8e8] sm:$0x3]  }
 0x253   :  { %5909 = vst [vmem:[%s9221_s1 + $0x235] ss:$8 sm:$0x3] %v3691_v27   ;;  %5910 = vst [vmem:[%s9221_s1 + $0x226] ss:$8 sm:$0x3] %v3695_v28  }
 0x254   :  { %5911 = vst [vmem:[%s9221_s1 + $0x236] ss:$8 sm:$0x3] %v3699_v29   ;;  %v3703_v30 = vld [vmem:[#allocation0 + $0x8f0] sm:$0x3]  }
 0x255   :  { %v3707_v31 = vld [vmem:[#allocation0 + $0x8f8] sm:$0x3]   ;;  %v3711_v32 = vld [vmem:[#allocation0 + $0x900] sm:$0x3]   ;;  %v3715_v33 = vld [vmem:[#allocation0 + $0x908] sm:$0x3]  }
 0x256   :  { %5912 = vst [vmem:[%s9221_s1 + $0x227] ss:$8 sm:$0x3] %v3703_v30   ;;  %5913 = vst [vmem:[%s9221_s1 + $0x237] ss:$8 sm:$0x3] %v3707_v31  }
 0x257   :  { %5914 = vst [vmem:[%s9221_s1 + $0x240] ss:$8 sm:$0x3] %v3711_v32   ;;  %v3719_v34 = vld [vmem:[#allocation0 + $0x910] sm:$0x3]  }
 0x258   :  { %v3723_v35 = vld [vmem:[#allocation0 + $0x918] sm:$0x3]   ;;  %5915 = vst [vmem:[%s9221_s1 + $0x250] ss:$8 sm:$0x3] %v3715_v33  }
 0x259   :  { %5916 = vst [vmem:[%s9221_s1 + $0x241] ss:$8 sm:$0x3] %v3719_v34   ;;  %5917 = vst [vmem:[%s9221_s1 + $0x251] ss:$8 sm:$0x3] %v3723_v35  }
 0x25a   :  { %v3727_v36 = vld [vmem:[#allocation0 + $0x920] sm:$0x3]   ;;  %v3731_v37 = vld [vmem:[#allocation0 + $0x928] sm:$0x3]   ;;  %v3735_v38 = vld [vmem:[#allocation0 + $0x930] sm:$0x3]  }
 0x25b   :  { %5918 = vst [vmem:[%s9221_s1 + $0x242] ss:$8 sm:$0x3] %v3727_v36   ;;  %5919 = vst [vmem:[%s9221_s1 + $0x252] ss:$8 sm:$0x3] %v3731_v37  }
 0x25c   :  { %5920 = vst [vmem:[%s9221_s1 + $0x243] ss:$8 sm:$0x3] %v3735_v38   ;;  %v3739_v39 = vld [vmem:[#allocation0 + $0x938] sm:$0x3]  }
 0x25d   :  { %v3743_v40 = vld [vmem:[#allocation0 + $0x940] sm:$0x3]   ;;  %v3747_v41 = vld [vmem:[#allocation0 + $0x948] sm:$0x3]   ;;  %v3751_v42 = vld [vmem:[#allocation0 + $0x950] sm:$0x3]  }
 0x25e   :  { %5921 = vst [vmem:[%s9221_s1 + $0x253] ss:$8 sm:$0x3] %v3739_v39   ;;  %5922 = vst [vmem:[%s9221_s1 + $0x244] ss:$8 sm:$0x3] %v3743_v40  }
 0x25f   :  { %5923 = vst [vmem:[%s9221_s1 + $0x254] ss:$8 sm:$0x3] %v3747_v41   ;;  %v3755_v43 = vld [vmem:[#allocation0 + $0x958] sm:$0x3]  }
 0x260   :  { %v3759_v44 = vld [vmem:[#allocation0 + $0x960] sm:$0x3]   ;;  %5924 = vst [vmem:[%s9221_s1 + $0x245] ss:$8 sm:$0x3] %v3751_v42  }
 0x261   :  { %5925 = vst [vmem:[%s9221_s1 + $0x255] ss:$8 sm:$0x3] %v3755_v43   ;;  %5926 = vst [vmem:[%s9221_s1 + $0x246] ss:$8 sm:$0x3] %v3759_v44  }
 0x262   :  { %v3763_v45 = vld [vmem:[#allocation0 + $0x968] sm:$0x3]   ;;  %v3767_v46 = vld [vmem:[#allocation0 + $0x970] sm:$0x3]   ;;  %v3771_v47 = vld [vmem:[#allocation0 + $0x978] sm:$0x3]  }
 0x263   :  { %5927 = vst [vmem:[%s9221_s1 + $0x256] ss:$8 sm:$0x3] %v3763_v45   ;;  %5928 = vst [vmem:[%s9221_s1 + $0x247] ss:$8 sm:$0x3] %v3767_v46  }
 0x264   :  { %5929 = vst [vmem:[%s9221_s1 + $0x257] ss:$8 sm:$0x3] %v3771_v47   ;;  %v3775_v48 = vld [vmem:[#allocation0 + $0x980] sm:$0x3]  }
 0x265   :  { %v3779_v49 = vld [vmem:[#allocation0 + $0x988] sm:$0x3]   ;;  %v3783_v50 = vld [vmem:[#allocation0 + $0x990] sm:$0x3]   ;;  %v3787_v51 = vld [vmem:[#allocation0 + $0x998] sm:$0x3]  }
 0x266   :  { %5930 = vst [vmem:[%s9221_s1 + $0x260] ss:$8 sm:$0x3] %v3775_v48   ;;  %5931 = vst [vmem:[%s9221_s1 + $0x270] ss:$8 sm:$0x3] %v3779_v49  }
 0x267   :  { %5932 = vst [vmem:[%s9221_s1 + $0x261] ss:$8 sm:$0x3] %v3783_v50   ;;  %v3791_v52 = vld [vmem:[#allocation0 + $0x9a0] sm:$0x3]  }
 0x268   :  { %v3795_v53 = vld [vmem:[#allocation0 + $0x9a8] sm:$0x3]   ;;  %5933 = vst [vmem:[%s9221_s1 + $0x271] ss:$8 sm:$0x3] %v3787_v51  }
 0x269   :  { %5934 = vst [vmem:[%s9221_s1 + $0x262] ss:$8 sm:$0x3] %v3791_v52   ;;  %5935 = vst [vmem:[%s9221_s1 + $0x272] ss:$8 sm:$0x3] %v3795_v53  }
 0x26a   :  { %v3799_v54 = vld [vmem:[#allocation0 + $0x9b0] sm:$0x3]   ;;  %v3803_v55 = vld [vmem:[#allocation0 + $0x9b8] sm:$0x3]   ;;  %v3807_v56 = vld [vmem:[#allocation0 + $0x9c0] sm:$0x3]  }
 0x26b   :  { %5936 = vst [vmem:[%s9221_s1 + $0x263] ss:$8 sm:$0x3] %v3799_v54   ;;  %5937 = vst [vmem:[%s9221_s1 + $0x273] ss:$8 sm:$0x3] %v3803_v55  }
 0x26c   :  { %5938 = vst [vmem:[%s9221_s1 + $0x264] ss:$8 sm:$0x3] %v3807_v56   ;;  %v3811_v57 = vld [vmem:[#allocation0 + $0x9c8] sm:$0x3]  }
 0x26d   :  { %v3815_v58 = vld [vmem:[#allocation0 + $0x9d0] sm:$0x3]   ;;  %v3819_v59 = vld [vmem:[#allocation0 + $0x9d8] sm:$0x3]   ;;  %v3823_v60 = vld [vmem:[#allocation0 + $0x9e0] sm:$0x3]  }
 0x26e   :  { %5939 = vst [vmem:[%s9221_s1 + $0x274] ss:$8 sm:$0x3] %v3811_v57   ;;  %5940 = vst [vmem:[%s9221_s1 + $0x265] ss:$8 sm:$0x3] %v3815_v58  }
 0x26f   :  { %5941 = vst [vmem:[%s9221_s1 + $0x275] ss:$8 sm:$0x3] %v3819_v59   ;;  %v3827_v61 = vld [vmem:[#allocation0 + $0x9e8] sm:$0x3]  }
 0x270   :  { %v3831_v62 = vld [vmem:[#allocation0 + $0x9f0] sm:$0x3]   ;;  %5942 = vst [vmem:[%s9221_s1 + $0x266] ss:$8 sm:$0x3] %v3823_v60  }
 0x271   :  { %5943 = vst [vmem:[%s9221_s1 + $0x276] ss:$8 sm:$0x3] %v3827_v61   ;;  %5944 = vst [vmem:[%s9221_s1 + $0x267] ss:$8 sm:$0x3] %v3831_v62  }
 0x272   :  { %v3835_v63 = vld [vmem:[#allocation0 + $0x9f8] sm:$0x3]   ;;  %v3839_v0 = vld [vmem:[#allocation0 + $0xa00] sm:$0x3]   ;;  %v3843_v1 = vld [vmem:[#allocation0 + $0xa08] sm:$0x3]  }
 0x273   :  { %5945 = vst [vmem:[%s9221_s1 + $0x277] ss:$8 sm:$0x3] %v3835_v63   ;;  %5946 = vst [vmem:[%s9221_s1 + $0x280] ss:$8 sm:$0x3] %v3839_v0  }
 0x274   :  { %5947 = vst [vmem:[%s9221_s1 + $0x290] ss:$8 sm:$0x3] %v3843_v1   ;;  %v3847_v2 = vld [vmem:[#allocation0 + $0xa10] sm:$0x3]  }
 0x275   :  { %v3851_v3 = vld [vmem:[#allocation0 + $0xa18] sm:$0x3]   ;;  %v3855_v4 = vld [vmem:[#allocation0 + $0xa20] sm:$0x3]   ;;  %v3859_v5 = vld [vmem:[#allocation0 + $0xa28] sm:$0x3]  }
 0x276   :  { %5948 = vst [vmem:[%s9221_s1 + $0x281] ss:$8 sm:$0x3] %v3847_v2   ;;  %5949 = vst [vmem:[%s9221_s1 + $0x291] ss:$8 sm:$0x3] %v3851_v3  }
 0x277   :  { %5950 = vst [vmem:[%s9221_s1 + $0x282] ss:$8 sm:$0x3] %v3855_v4   ;;  %v3863_v6 = vld [vmem:[#allocation0 + $0xa30] sm:$0x3]  }
 0x278   :  { %v3867_v7 = vld [vmem:[#allocation0 + $0xa38] sm:$0x3]   ;;  %5951 = vst [vmem:[%s9221_s1 + $0x292] ss:$8 sm:$0x3] %v3859_v5  }
 0x279   :  { %5952 = vst [vmem:[%s9221_s1 + $0x283] ss:$8 sm:$0x3] %v3863_v6   ;;  %5953 = vst [vmem:[%s9221_s1 + $0x293] ss:$8 sm:$0x3] %v3867_v7  }
 0x27a   :  { %v3871_v8 = vld [vmem:[#allocation0 + $0xa40] sm:$0x3]   ;;  %v3875_v9 = vld [vmem:[#allocation0 + $0xa48] sm:$0x3]   ;;  %v3879_v10 = vld [vmem:[#allocation0 + $0xa50] sm:$0x3]  }
 0x27b   :  { %5954 = vst [vmem:[%s9221_s1 + $0x284] ss:$8 sm:$0x3] %v3871_v8   ;;  %5955 = vst [vmem:[%s9221_s1 + $0x294] ss:$8 sm:$0x3] %v3875_v9  }
 0x27c   :  { %5956 = vst [vmem:[%s9221_s1 + $0x285] ss:$8 sm:$0x3] %v3879_v10   ;;  %v3883_v11 = vld [vmem:[#allocation0 + $0xa58] sm:$0x3]  }
 0x27d   :  { %v3887_v12 = vld [vmem:[#allocation0 + $0xa60] sm:$0x3]   ;;  %v3891_v13 = vld [vmem:[#allocation0 + $0xa68] sm:$0x3]   ;;  %v3895_v14 = vld [vmem:[#allocation0 + $0xa70] sm:$0x3]  }
 0x27e   :  { %5957 = vst [vmem:[%s9221_s1 + $0x295] ss:$8 sm:$0x3] %v3883_v11   ;;  %5958 = vst [vmem:[%s9221_s1 + $0x286] ss:$8 sm:$0x3] %v3887_v12  }
 0x27f   :  { %5959 = vst [vmem:[%s9221_s1 + $0x296] ss:$8 sm:$0x3] %v3891_v13   ;;  %v3899_v15 = vld [vmem:[#allocation0 + $0xa78] sm:$0x3]  }
 0x280   :  { %v3903_v16 = vld [vmem:[#allocation0 + $0xa80] sm:$0x3]   ;;  %5960 = vst [vmem:[%s9221_s1 + $0x287] ss:$8 sm:$0x3] %v3895_v14  }
 0x281   :  { %5961 = vst [vmem:[%s9221_s1 + $0x297] ss:$8 sm:$0x3] %v3899_v15   ;;  %5962 = vst [vmem:[%s9221_s1 + $0x2a0] ss:$8 sm:$0x3] %v3903_v16  }
 0x282   :  { %v3907_v17 = vld [vmem:[#allocation0 + $0xa88] sm:$0x3]   ;;  %v3911_v18 = vld [vmem:[#allocation0 + $0xa90] sm:$0x3]   ;;  %v3915_v19 = vld [vmem:[#allocation0 + $0xa98] sm:$0x3]  }
 0x283   :  { %5963 = vst [vmem:[%s9221_s1 + $0x2b0] ss:$8 sm:$0x3] %v3907_v17   ;;  %5964 = vst [vmem:[%s9221_s1 + $0x2a1] ss:$8 sm:$0x3] %v3911_v18  }
 0x284   :  { %5965 = vst [vmem:[%s9221_s1 + $0x2b1] ss:$8 sm:$0x3] %v3915_v19   ;;  %v3919_v20 = vld [vmem:[#allocation0 + $0xaa0] sm:$0x3]  }
 0x285   :  { %v3923_v21 = vld [vmem:[#allocation0 + $0xaa8] sm:$0x3]   ;;  %v3927_v22 = vld [vmem:[#allocation0 + $0xab0] sm:$0x3]   ;;  %v3931_v23 = vld [vmem:[#allocation0 + $0xab8] sm:$0x3]  }
 0x286   :  { %5966 = vst [vmem:[%s9221_s1 + $0x2a2] ss:$8 sm:$0x3] %v3919_v20   ;;  %5967 = vst [vmem:[%s9221_s1 + $0x2b2] ss:$8 sm:$0x3] %v3923_v21  }
 0x287   :  { %5968 = vst [vmem:[%s9221_s1 + $0x2a3] ss:$8 sm:$0x3] %v3927_v22   ;;  %v3935_v24 = vld [vmem:[#allocation0 + $0xac0] sm:$0x3]  }
 0x288   :  { %v3939_v25 = vld [vmem:[#allocation0 + $0xac8] sm:$0x3]   ;;  %5969 = vst [vmem:[%s9221_s1 + $0x2b3] ss:$8 sm:$0x3] %v3931_v23  }
 0x289   :  { %5970 = vst [vmem:[%s9221_s1 + $0x2a4] ss:$8 sm:$0x3] %v3935_v24   ;;  %5971 = vst [vmem:[%s9221_s1 + $0x2b4] ss:$8 sm:$0x3] %v3939_v25  }
 0x28a   :  { %v3943_v26 = vld [vmem:[#allocation0 + $0xad0] sm:$0x3]   ;;  %v3947_v27 = vld [vmem:[#allocation0 + $0xad8] sm:$0x3]   ;;  %v3951_v28 = vld [vmem:[#allocation0 + $0xae0] sm:$0x3]  }
 0x28b   :  { %5972 = vst [vmem:[%s9221_s1 + $0x2a5] ss:$8 sm:$0x3] %v3943_v26   ;;  %5973 = vst [vmem:[%s9221_s1 + $0x2b5] ss:$8 sm:$0x3] %v3947_v27  }
 0x28c   :  { %5974 = vst [vmem:[%s9221_s1 + $0x2a6] ss:$8 sm:$0x3] %v3951_v28   ;;  %v3955_v29 = vld [vmem:[#allocation0 + $0xae8] sm:$0x3]  }
 0x28d   :  { %v3959_v30 = vld [vmem:[#allocation0 + $0xaf0] sm:$0x3]   ;;  %v3963_v31 = vld [vmem:[#allocation0 + $0xaf8] sm:$0x3]   ;;  %v3967_v32 = vld [vmem:[#allocation0 + $0xb00] sm:$0x3]  }
 0x28e   :  { %5975 = vst [vmem:[%s9221_s1 + $0x2b6] ss:$8 sm:$0x3] %v3955_v29   ;;  %5976 = vst [vmem:[%s9221_s1 + $0x2a7] ss:$8 sm:$0x3] %v3959_v30  }
 0x28f   :  { %5977 = vst [vmem:[%s9221_s1 + $0x2b7] ss:$8 sm:$0x3] %v3963_v31   ;;  %v3971_v33 = vld [vmem:[#allocation0 + $0xb08] sm:$0x3]  }
 0x290   :  { %v3975_v34 = vld [vmem:[#allocation0 + $0xb10] sm:$0x3]   ;;  %5978 = vst [vmem:[%s9221_s1 + $0x2c0] ss:$8 sm:$0x3] %v3967_v32  }
 0x291   :  { %5979 = vst [vmem:[%s9221_s1 + $0x2d0] ss:$8 sm:$0x3] %v3971_v33   ;;  %5980 = vst [vmem:[%s9221_s1 + $0x2c1] ss:$8 sm:$0x3] %v3975_v34  }
 0x292   :  { %v3979_v35 = vld [vmem:[#allocation0 + $0xb18] sm:$0x3]   ;;  %v3983_v36 = vld [vmem:[#allocation0 + $0xb20] sm:$0x3]   ;;  %v3987_v37 = vld [vmem:[#allocation0 + $0xb28] sm:$0x3]  }
 0x293   :  { %5981 = vst [vmem:[%s9221_s1 + $0x2d1] ss:$8 sm:$0x3] %v3979_v35   ;;  %5982 = vst [vmem:[%s9221_s1 + $0x2c2] ss:$8 sm:$0x3] %v3983_v36  }
 0x294   :  { %5983 = vst [vmem:[%s9221_s1 + $0x2d2] ss:$8 sm:$0x3] %v3987_v37   ;;  %v3991_v38 = vld [vmem:[#allocation0 + $0xb30] sm:$0x3]  }
 0x295   :  { %v3995_v39 = vld [vmem:[#allocation0 + $0xb38] sm:$0x3]   ;;  %v3999_v40 = vld [vmem:[#allocation0 + $0xb40] sm:$0x3]   ;;  %v4003_v41 = vld [vmem:[#allocation0 + $0xb48] sm:$0x3]  }
 0x296   :  { %5984 = vst [vmem:[%s9221_s1 + $0x2c3] ss:$8 sm:$0x3] %v3991_v38   ;;  %5985 = vst [vmem:[%s9221_s1 + $0x2d3] ss:$8 sm:$0x3] %v3995_v39  }
 0x297   :  { %5986 = vst [vmem:[%s9221_s1 + $0x2c4] ss:$8 sm:$0x3] %v3999_v40   ;;  %v4007_v42 = vld [vmem:[#allocation0 + $0xb50] sm:$0x3]  }
 0x298   :  { %v4011_v43 = vld [vmem:[#allocation0 + $0xb58] sm:$0x3]   ;;  %5987 = vst [vmem:[%s9221_s1 + $0x2d4] ss:$8 sm:$0x3] %v4003_v41  }
 0x299   :  { %5988 = vst [vmem:[%s9221_s1 + $0x2c5] ss:$8 sm:$0x3] %v4007_v42   ;;  %5989 = vst [vmem:[%s9221_s1 + $0x2d5] ss:$8 sm:$0x3] %v4011_v43  }
 0x29a   :  { %v4015_v44 = vld [vmem:[#allocation0 + $0xb60] sm:$0x3]   ;;  %v4019_v45 = vld [vmem:[#allocation0 + $0xb68] sm:$0x3]   ;;  %v4023_v46 = vld [vmem:[#allocation0 + $0xb70] sm:$0x3]  }
 0x29b   :  { %5990 = vst [vmem:[%s9221_s1 + $0x2c6] ss:$8 sm:$0x3] %v4015_v44   ;;  %5991 = vst [vmem:[%s9221_s1 + $0x2d6] ss:$8 sm:$0x3] %v4019_v45  }
 0x29c   :  { %5992 = vst [vmem:[%s9221_s1 + $0x2c7] ss:$8 sm:$0x3] %v4023_v46   ;;  %v4027_v47 = vld [vmem:[#allocation0 + $0xb78] sm:$0x3]  }
 0x29d   :  { %v4031_v48 = vld [vmem:[#allocation0 + $0xb80] sm:$0x3]   ;;  %v4035_v49 = vld [vmem:[#allocation0 + $0xb88] sm:$0x3]   ;;  %v4039_v50 = vld [vmem:[#allocation0 + $0xb90] sm:$0x3]  }
 0x29e   :  { %5993 = vst [vmem:[%s9221_s1 + $0x2d7] ss:$8 sm:$0x3] %v4027_v47   ;;  %5994 = vst [vmem:[%s9221_s1 + $0x2e0] ss:$8 sm:$0x3] %v4031_v48  }
 0x29f   :  { %5995 = vst [vmem:[%s9221_s1 + $0x2f0] ss:$8 sm:$0x3] %v4035_v49   ;;  %v4043_v51 = vld [vmem:[#allocation0 + $0xb98] sm:$0x3]  }
 0x2a0   :  { %v4047_v52 = vld [vmem:[#allocation0 + $0xba0] sm:$0x3]   ;;  %5996 = vst [vmem:[%s9221_s1 + $0x2e1] ss:$8 sm:$0x3] %v4039_v50  }
 0x2a1   :  { %5997 = vst [vmem:[%s9221_s1 + $0x2f1] ss:$8 sm:$0x3] %v4043_v51   ;;  %5998 = vst [vmem:[%s9221_s1 + $0x2e2] ss:$8 sm:$0x3] %v4047_v52  }
 0x2a2   :  { %v4051_v53 = vld [vmem:[#allocation0 + $0xba8] sm:$0x3]   ;;  %v4055_v54 = vld [vmem:[#allocation0 + $0xbb0] sm:$0x3]   ;;  %v4059_v55 = vld [vmem:[#allocation0 + $0xbb8] sm:$0x3]  }
 0x2a3   :  { %5999 = vst [vmem:[%s9221_s1 + $0x2f2] ss:$8 sm:$0x3] %v4051_v53   ;;  %6000 = vst [vmem:[%s9221_s1 + $0x2e3] ss:$8 sm:$0x3] %v4055_v54  }
 0x2a4   :  { %6001 = vst [vmem:[%s9221_s1 + $0x2f3] ss:$8 sm:$0x3] %v4059_v55   ;;  %v4063_v56 = vld [vmem:[#allocation0 + $0xbc0] sm:$0x3]  }
 0x2a5   :  { %v4067_v57 = vld [vmem:[#allocation0 + $0xbc8] sm:$0x3]   ;;  %v4071_v58 = vld [vmem:[#allocation0 + $0xbd0] sm:$0x3]   ;;  %v4075_v59 = vld [vmem:[#allocation0 + $0xbd8] sm:$0x3]  }
 0x2a6   :  { %6002 = vst [vmem:[%s9221_s1 + $0x2e4] ss:$8 sm:$0x3] %v4063_v56   ;;  %6003 = vst [vmem:[%s9221_s1 + $0x2f4] ss:$8 sm:$0x3] %v4067_v57  }
 0x2a7   :  { %6004 = vst [vmem:[%s9221_s1 + $0x2e5] ss:$8 sm:$0x3] %v4071_v58   ;;  %v4079_v60 = vld [vmem:[#allocation0 + $0xbe0] sm:$0x3]  }
 0x2a8   :  { %v4083_v61 = vld [vmem:[#allocation0 + $0xbe8] sm:$0x3]   ;;  %6005 = vst [vmem:[%s9221_s1 + $0x2f5] ss:$8 sm:$0x3] %v4075_v59  }
 0x2a9   :  { %6006 = vst [vmem:[%s9221_s1 + $0x2e6] ss:$8 sm:$0x3] %v4079_v60   ;;  %6007 = vst [vmem:[%s9221_s1 + $0x2f6] ss:$8 sm:$0x3] %v4083_v61  }
 0x2aa   :  { %v4087_v62 = vld [vmem:[#allocation0 + $0xbf0] sm:$0x3]   ;;  %v4091_v63 = vld [vmem:[#allocation0 + $0xbf8] sm:$0x3]   ;;  %v4095_v0 = vld [vmem:[#allocation0 + $0xc00] sm:$0x3]  }
 0x2ab   :  { %6008 = vst [vmem:[%s9221_s1 + $0x2e7] ss:$8 sm:$0x3] %v4087_v62   ;;  %6009 = vst [vmem:[%s9221_s1 + $0x2f7] ss:$8 sm:$0x3] %v4091_v63  }
 0x2ac   :  { %6010 = vst [vmem:[%s9221_s1 + $0x300] ss:$8 sm:$0x3] %v4095_v0   ;;  %v4099_v1 = vld [vmem:[#allocation0 + $0xc08] sm:$0x3]  }
 0x2ad   :  { %v4103_v2 = vld [vmem:[#allocation0 + $0xc10] sm:$0x3]   ;;  %v4107_v3 = vld [vmem:[#allocation0 + $0xc18] sm:$0x3]   ;;  %v4111_v4 = vld [vmem:[#allocation0 + $0xc20] sm:$0x3]  }
 0x2ae   :  { %6011 = vst [vmem:[%s9221_s1 + $0x310] ss:$8 sm:$0x3] %v4099_v1   ;;  %6012 = vst [vmem:[%s9221_s1 + $0x301] ss:$8 sm:$0x3] %v4103_v2  }
 0x2af   :  { %6013 = vst [vmem:[%s9221_s1 + $0x311] ss:$8 sm:$0x3] %v4107_v3   ;;  %v4115_v5 = vld [vmem:[#allocation0 + $0xc28] sm:$0x3]  }
 0x2b0   :  { %v4119_v6 = vld [vmem:[#allocation0 + $0xc30] sm:$0x3]   ;;  %6014 = vst [vmem:[%s9221_s1 + $0x302] ss:$8 sm:$0x3] %v4111_v4  }
 0x2b1   :  { %6015 = vst [vmem:[%s9221_s1 + $0x312] ss:$8 sm:$0x3] %v4115_v5   ;;  %6016 = vst [vmem:[%s9221_s1 + $0x303] ss:$8 sm:$0x3] %v4119_v6  }
 0x2b2   :  { %v4123_v7 = vld [vmem:[#allocation0 + $0xc38] sm:$0x3]   ;;  %v4127_v8 = vld [vmem:[#allocation0 + $0xc40] sm:$0x3]   ;;  %v4131_v9 = vld [vmem:[#allocation0 + $0xc48] sm:$0x3]  }
 0x2b3   :  { %6017 = vst [vmem:[%s9221_s1 + $0x313] ss:$8 sm:$0x3] %v4123_v7   ;;  %6018 = vst [vmem:[%s9221_s1 + $0x304] ss:$8 sm:$0x3] %v4127_v8  }
 0x2b4   :  { %6019 = vst [vmem:[%s9221_s1 + $0x314] ss:$8 sm:$0x3] %v4131_v9   ;;  %v4135_v10 = vld [vmem:[#allocation0 + $0xc50] sm:$0x3]  }
 0x2b5   :  { %v4139_v11 = vld [vmem:[#allocation0 + $0xc58] sm:$0x3]   ;;  %v4143_v12 = vld [vmem:[#allocation0 + $0xc60] sm:$0x3]   ;;  %v4147_v13 = vld [vmem:[#allocation0 + $0xc68] sm:$0x3]  }
 0x2b6   :  { %6020 = vst [vmem:[%s9221_s1 + $0x305] ss:$8 sm:$0x3] %v4135_v10   ;;  %6021 = vst [vmem:[%s9221_s1 + $0x315] ss:$8 sm:$0x3] %v4139_v11  }
 0x2b7   :  { %6022 = vst [vmem:[%s9221_s1 + $0x306] ss:$8 sm:$0x3] %v4143_v12   ;;  %v4151_v14 = vld [vmem:[#allocation0 + $0xc70] sm:$0x3]  }
 0x2b8   :  { %v4155_v15 = vld [vmem:[#allocation0 + $0xc78] sm:$0x3]   ;;  %6023 = vst [vmem:[%s9221_s1 + $0x316] ss:$8 sm:$0x3] %v4147_v13  }
 0x2b9   :  { %6024 = vst [vmem:[%s9221_s1 + $0x307] ss:$8 sm:$0x3] %v4151_v14   ;;  %6025 = vst [vmem:[%s9221_s1 + $0x317] ss:$8 sm:$0x3] %v4155_v15  }
 0x2ba   :  { %v4159_v16 = vld [vmem:[#allocation0 + $0xc80] sm:$0x3]   ;;  %v4163_v17 = vld [vmem:[#allocation0 + $0xc88] sm:$0x3]   ;;  %v4167_v18 = vld [vmem:[#allocation0 + $0xc90] sm:$0x3]  }
 0x2bb   :  { %6026 = vst [vmem:[%s9221_s1 + $0x320] ss:$8 sm:$0x3] %v4159_v16   ;;  %6027 = vst [vmem:[%s9221_s1 + $0x330] ss:$8 sm:$0x3] %v4163_v17  }
 0x2bc   :  { %6028 = vst [vmem:[%s9221_s1 + $0x321] ss:$8 sm:$0x3] %v4167_v18   ;;  %v4171_v19 = vld [vmem:[#allocation0 + $0xc98] sm:$0x3]  }
 0x2bd   :  { %v4175_v20 = vld [vmem:[#allocation0 + $0xca0] sm:$0x3]   ;;  %v4179_v21 = vld [vmem:[#allocation0 + $0xca8] sm:$0x3]   ;;  %v4183_v22 = vld [vmem:[#allocation0 + $0xcb0] sm:$0x3]  }
 0x2be   :  { %6029 = vst [vmem:[%s9221_s1 + $0x331] ss:$8 sm:$0x3] %v4171_v19   ;;  %6030 = vst [vmem:[%s9221_s1 + $0x322] ss:$8 sm:$0x3] %v4175_v20  }
 0x2bf   :  { %6031 = vst [vmem:[%s9221_s1 + $0x332] ss:$8 sm:$0x3] %v4179_v21   ;;  %v4187_v23 = vld [vmem:[#allocation0 + $0xcb8] sm:$0x3]  }
 0x2c0   :  { %v4191_v24 = vld [vmem:[#allocation0 + $0xcc0] sm:$0x3]   ;;  %6032 = vst [vmem:[%s9221_s1 + $0x323] ss:$8 sm:$0x3] %v4183_v22  }
 0x2c1   :  { %6033 = vst [vmem:[%s9221_s1 + $0x333] ss:$8 sm:$0x3] %v4187_v23   ;;  %6034 = vst [vmem:[%s9221_s1 + $0x324] ss:$8 sm:$0x3] %v4191_v24  }
 0x2c2   :  { %v4195_v25 = vld [vmem:[#allocation0 + $0xcc8] sm:$0x3]   ;;  %v4199_v26 = vld [vmem:[#allocation0 + $0xcd0] sm:$0x3]   ;;  %v4203_v27 = vld [vmem:[#allocation0 + $0xcd8] sm:$0x3]  }
 0x2c3   :  { %6035 = vst [vmem:[%s9221_s1 + $0x334] ss:$8 sm:$0x3] %v4195_v25   ;;  %6036 = vst [vmem:[%s9221_s1 + $0x325] ss:$8 sm:$0x3] %v4199_v26  }
 0x2c4   :  { %6037 = vst [vmem:[%s9221_s1 + $0x335] ss:$8 sm:$0x3] %v4203_v27   ;;  %v4207_v28 = vld [vmem:[#allocation0 + $0xce0] sm:$0x3]  }
 0x2c5   :  { %v4211_v29 = vld [vmem:[#allocation0 + $0xce8] sm:$0x3]   ;;  %v4215_v30 = vld [vmem:[#allocation0 + $0xcf0] sm:$0x3]   ;;  %v4219_v31 = vld [vmem:[#allocation0 + $0xcf8] sm:$0x3]  }
 0x2c6   :  { %6038 = vst [vmem:[%s9221_s1 + $0x326] ss:$8 sm:$0x3] %v4207_v28   ;;  %6039 = vst [vmem:[%s9221_s1 + $0x336] ss:$8 sm:$0x3] %v4211_v29  }
 0x2c7   :  { %6040 = vst [vmem:[%s9221_s1 + $0x327] ss:$8 sm:$0x3] %v4215_v30   ;;  %v4223_v32 = vld [vmem:[#allocation0 + $0xd00] sm:$0x3]  }
 0x2c8   :  { %v4227_v33 = vld [vmem:[#allocation0 + $0xd08] sm:$0x3]   ;;  %6041 = vst [vmem:[%s9221_s1 + $0x337] ss:$8 sm:$0x3] %v4219_v31  }
 0x2c9   :  { %6042 = vst [vmem:[%s9221_s1 + $0x340] ss:$8 sm:$0x3] %v4223_v32   ;;  %6043 = vst [vmem:[%s9221_s1 + $0x350] ss:$8 sm:$0x3] %v4227_v33  }
 0x2ca   :  { %v4231_v34 = vld [vmem:[#allocation0 + $0xd10] sm:$0x3]   ;;  %v4235_v35 = vld [vmem:[#allocation0 + $0xd18] sm:$0x3]   ;;  %v4239_v36 = vld [vmem:[#allocation0 + $0xd20] sm:$0x3]  }
 0x2cb   :  { %6044 = vst [vmem:[%s9221_s1 + $0x341] ss:$8 sm:$0x3] %v4231_v34   ;;  %6045 = vst [vmem:[%s9221_s1 + $0x351] ss:$8 sm:$0x3] %v4235_v35  }
 0x2cc   :  { %6046 = vst [vmem:[%s9221_s1 + $0x342] ss:$8 sm:$0x3] %v4239_v36   ;;  %v4243_v37 = vld [vmem:[#allocation0 + $0xd28] sm:$0x3]  }
 0x2cd   :  { %v4247_v38 = vld [vmem:[#allocation0 + $0xd30] sm:$0x3]   ;;  %v4251_v39 = vld [vmem:[#allocation0 + $0xd38] sm:$0x3]   ;;  %v4255_v40 = vld [vmem:[#allocation0 + $0xd40] sm:$0x3]  }
 0x2ce   :  { %6047 = vst [vmem:[%s9221_s1 + $0x352] ss:$8 sm:$0x3] %v4243_v37   ;;  %6048 = vst [vmem:[%s9221_s1 + $0x343] ss:$8 sm:$0x3] %v4247_v38  }
 0x2cf   :  { %6049 = vst [vmem:[%s9221_s1 + $0x353] ss:$8 sm:$0x3] %v4251_v39   ;;  %v4259_v41 = vld [vmem:[#allocation0 + $0xd48] sm:$0x3]  }
 0x2d0   :  { %v4263_v42 = vld [vmem:[#allocation0 + $0xd50] sm:$0x3]   ;;  %6050 = vst [vmem:[%s9221_s1 + $0x344] ss:$8 sm:$0x3] %v4255_v40  }
 0x2d1   :  { %6051 = vst [vmem:[%s9221_s1 + $0x354] ss:$8 sm:$0x3] %v4259_v41   ;;  %6052 = vst [vmem:[%s9221_s1 + $0x345] ss:$8 sm:$0x3] %v4263_v42  }
 0x2d2   :  { %v4267_v43 = vld [vmem:[#allocation0 + $0xd58] sm:$0x3]   ;;  %v4271_v44 = vld [vmem:[#allocation0 + $0xd60] sm:$0x3]   ;;  %v4275_v45 = vld [vmem:[#allocation0 + $0xd68] sm:$0x3]  }
 0x2d3   :  { %6053 = vst [vmem:[%s9221_s1 + $0x355] ss:$8 sm:$0x3] %v4267_v43   ;;  %6054 = vst [vmem:[%s9221_s1 + $0x346] ss:$8 sm:$0x3] %v4271_v44  }
 0x2d4   :  { %6055 = vst [vmem:[%s9221_s1 + $0x356] ss:$8 sm:$0x3] %v4275_v45   ;;  %v4279_v46 = vld [vmem:[#allocation0 + $0xd70] sm:$0x3]  }
 0x2d5   :  { %v4283_v47 = vld [vmem:[#allocation0 + $0xd78] sm:$0x3]   ;;  %v4287_v48 = vld [vmem:[#allocation0 + $0xd80] sm:$0x3]   ;;  %v4291_v49 = vld [vmem:[#allocation0 + $0xd88] sm:$0x3]  }
 0x2d6   :  { %6056 = vst [vmem:[%s9221_s1 + $0x347] ss:$8 sm:$0x3] %v4279_v46   ;;  %6057 = vst [vmem:[%s9221_s1 + $0x357] ss:$8 sm:$0x3] %v4283_v47  }
 0x2d7   :  { %6058 = vst [vmem:[%s9221_s1 + $0x360] ss:$8 sm:$0x3] %v4287_v48   ;;  %v4295_v50 = vld [vmem:[#allocation0 + $0xd90] sm:$0x3]  }
 0x2d8   :  { %v4299_v51 = vld [vmem:[#allocation0 + $0xd98] sm:$0x3]   ;;  %6059 = vst [vmem:[%s9221_s1 + $0x370] ss:$8 sm:$0x3] %v4291_v49  }
 0x2d9   :  { %6060 = vst [vmem:[%s9221_s1 + $0x361] ss:$8 sm:$0x3] %v4295_v50   ;;  %6061 = vst [vmem:[%s9221_s1 + $0x371] ss:$8 sm:$0x3] %v4299_v51  }
 0x2da   :  { %v4303_v52 = vld [vmem:[#allocation0 + $0xda0] sm:$0x3]   ;;  %v4307_v53 = vld [vmem:[#allocation0 + $0xda8] sm:$0x3]   ;;  %v4311_v54 = vld [vmem:[#allocation0 + $0xdb0] sm:$0x3]  }
 0x2db   :  { %6062 = vst [vmem:[%s9221_s1 + $0x362] ss:$8 sm:$0x3] %v4303_v52   ;;  %6063 = vst [vmem:[%s9221_s1 + $0x372] ss:$8 sm:$0x3] %v4307_v53  }
 0x2dc   :  { %6064 = vst [vmem:[%s9221_s1 + $0x363] ss:$8 sm:$0x3] %v4311_v54   ;;  %v4315_v55 = vld [vmem:[#allocation0 + $0xdb8] sm:$0x3]  }
 0x2dd   :  { %v4319_v56 = vld [vmem:[#allocation0 + $0xdc0] sm:$0x3]   ;;  %v4323_v57 = vld [vmem:[#allocation0 + $0xdc8] sm:$0x3]   ;;  %v4327_v58 = vld [vmem:[#allocation0 + $0xdd0] sm:$0x3]  }
 0x2de   :  { %6065 = vst [vmem:[%s9221_s1 + $0x373] ss:$8 sm:$0x3] %v4315_v55   ;;  %6066 = vst [vmem:[%s9221_s1 + $0x364] ss:$8 sm:$0x3] %v4319_v56  }
 0x2df   :  { %6067 = vst [vmem:[%s9221_s1 + $0x374] ss:$8 sm:$0x3] %v4323_v57   ;;  %v4331_v59 = vld [vmem:[#allocation0 + $0xdd8] sm:$0x3]  }
 0x2e0   :  { %v4335_v60 = vld [vmem:[#allocation0 + $0xde0] sm:$0x3]   ;;  %6068 = vst [vmem:[%s9221_s1 + $0x365] ss:$8 sm:$0x3] %v4327_v58  }
 0x2e1   :  { %6069 = vst [vmem:[%s9221_s1 + $0x375] ss:$8 sm:$0x3] %v4331_v59   ;;  %6070 = vst [vmem:[%s9221_s1 + $0x366] ss:$8 sm:$0x3] %v4335_v60  }
 0x2e2   :  { %v4339_v61 = vld [vmem:[#allocation0 + $0xde8] sm:$0x3]   ;;  %v4343_v62 = vld [vmem:[#allocation0 + $0xdf0] sm:$0x3]   ;;  %v4347_v63 = vld [vmem:[#allocation0 + $0xdf8] sm:$0x3]  }
 0x2e3   :  { %6071 = vst [vmem:[%s9221_s1 + $0x376] ss:$8 sm:$0x3] %v4339_v61   ;;  %6072 = vst [vmem:[%s9221_s1 + $0x367] ss:$8 sm:$0x3] %v4343_v62  }
 0x2e4   :  { %6073 = vst [vmem:[%s9221_s1 + $0x377] ss:$8 sm:$0x3] %v4347_v63   ;;  %v4351_v0 = vld [vmem:[#allocation0 + $0xe00] sm:$0x3]  }
 0x2e5   :  { %v4355_v1 = vld [vmem:[#allocation0 + $0xe08] sm:$0x3]   ;;  %v4359_v2 = vld [vmem:[#allocation0 + $0xe10] sm:$0x3]   ;;  %v4363_v3 = vld [vmem:[#allocation0 + $0xe18] sm:$0x3]  }
 0x2e6   :  { %6074 = vst [vmem:[%s9221_s1 + $0x380] ss:$8 sm:$0x3] %v4351_v0   ;;  %6075 = vst [vmem:[%s9221_s1 + $0x390] ss:$8 sm:$0x3] %v4355_v1  }
 0x2e7   :  { %6076 = vst [vmem:[%s9221_s1 + $0x381] ss:$8 sm:$0x3] %v4359_v2   ;;  %v4367_v4 = vld [vmem:[#allocation0 + $0xe20] sm:$0x3]  }
 0x2e8   :  { %v4371_v5 = vld [vmem:[#allocation0 + $0xe28] sm:$0x3]   ;;  %6077 = vst [vmem:[%s9221_s1 + $0x391] ss:$8 sm:$0x3] %v4363_v3  }
 0x2e9   :  { %6078 = vst [vmem:[%s9221_s1 + $0x382] ss:$8 sm:$0x3] %v4367_v4   ;;  %6079 = vst [vmem:[%s9221_s1 + $0x392] ss:$8 sm:$0x3] %v4371_v5  }
 0x2ea   :  { %v4375_v6 = vld [vmem:[#allocation0 + $0xe30] sm:$0x3]   ;;  %v4379_v7 = vld [vmem:[#allocation0 + $0xe38] sm:$0x3]   ;;  %v4383_v8 = vld [vmem:[#allocation0 + $0xe40] sm:$0x3]  }
 0x2eb   :  { %6080 = vst [vmem:[%s9221_s1 + $0x383] ss:$8 sm:$0x3] %v4375_v6   ;;  %6081 = vst [vmem:[%s9221_s1 + $0x393] ss:$8 sm:$0x3] %v4379_v7  }
 0x2ec   :  { %6082 = vst [vmem:[%s9221_s1 + $0x384] ss:$8 sm:$0x3] %v4383_v8   ;;  %v4387_v9 = vld [vmem:[#allocation0 + $0xe48] sm:$0x3]  }
 0x2ed   :  { %v4391_v10 = vld [vmem:[#allocation0 + $0xe50] sm:$0x3]   ;;  %v4395_v11 = vld [vmem:[#allocation0 + $0xe58] sm:$0x3]   ;;  %v4399_v12 = vld [vmem:[#allocation0 + $0xe60] sm:$0x3]  }
 0x2ee   :  { %6083 = vst [vmem:[%s9221_s1 + $0x394] ss:$8 sm:$0x3] %v4387_v9   ;;  %6084 = vst [vmem:[%s9221_s1 + $0x385] ss:$8 sm:$0x3] %v4391_v10  }
 0x2ef   :  { %6085 = vst [vmem:[%s9221_s1 + $0x395] ss:$8 sm:$0x3] %v4395_v11   ;;  %v4403_v13 = vld [vmem:[#allocation0 + $0xe68] sm:$0x3]  }
 0x2f0   :  { %v4407_v14 = vld [vmem:[#allocation0 + $0xe70] sm:$0x3]   ;;  %6086 = vst [vmem:[%s9221_s1 + $0x386] ss:$8 sm:$0x3] %v4399_v12  }
 0x2f1   :  { %6087 = vst [vmem:[%s9221_s1 + $0x396] ss:$8 sm:$0x3] %v4403_v13   ;;  %6088 = vst [vmem:[%s9221_s1 + $0x387] ss:$8 sm:$0x3] %v4407_v14  }
 0x2f2   :  { %v4411_v15 = vld [vmem:[#allocation0 + $0xe78] sm:$0x3]   ;;  %v4415_v16 = vld [vmem:[#allocation0 + $0xe80] sm:$0x3]   ;;  %v4419_v17 = vld [vmem:[#allocation0 + $0xe88] sm:$0x3]  }
 0x2f3   :  { %6089 = vst [vmem:[%s9221_s1 + $0x397] ss:$8 sm:$0x3] %v4411_v15   ;;  %6090 = vst [vmem:[%s9221_s1 + $0x3a0] ss:$8 sm:$0x3] %v4415_v16  }
 0x2f4   :  { %6091 = vst [vmem:[%s9221_s1 + $0x3b0] ss:$8 sm:$0x3] %v4419_v17   ;;  %v4423_v18 = vld [vmem:[#allocation0 + $0xe90] sm:$0x3]  }
 0x2f5   :  { %v4427_v19 = vld [vmem:[#allocation0 + $0xe98] sm:$0x3]   ;;  %v4431_v20 = vld [vmem:[#allocation0 + $0xea0] sm:$0x3]   ;;  %v4435_v21 = vld [vmem:[#allocation0 + $0xea8] sm:$0x3]  }
 0x2f6   :  { %6092 = vst [vmem:[%s9221_s1 + $0x3a1] ss:$8 sm:$0x3] %v4423_v18   ;;  %6093 = vst [vmem:[%s9221_s1 + $0x3b1] ss:$8 sm:$0x3] %v4427_v19  }
 0x2f7   :  { %6094 = vst [vmem:[%s9221_s1 + $0x3a2] ss:$8 sm:$0x3] %v4431_v20   ;;  %v4439_v22 = vld [vmem:[#allocation0 + $0xeb0] sm:$0x3]  }
 0x2f8   :  { %v4443_v23 = vld [vmem:[#allocation0 + $0xeb8] sm:$0x3]   ;;  %6095 = vst [vmem:[%s9221_s1 + $0x3b2] ss:$8 sm:$0x3] %v4435_v21  }
 0x2f9   :  { %6096 = vst [vmem:[%s9221_s1 + $0x3a3] ss:$8 sm:$0x3] %v4439_v22   ;;  %6097 = vst [vmem:[%s9221_s1 + $0x3b3] ss:$8 sm:$0x3] %v4443_v23  }
 0x2fa   :  { %v4447_v24 = vld [vmem:[#allocation0 + $0xec0] sm:$0x3]   ;;  %v4451_v25 = vld [vmem:[#allocation0 + $0xec8] sm:$0x3]   ;;  %v4455_v26 = vld [vmem:[#allocation0 + $0xed0] sm:$0x3]  }
 0x2fb   :  { %6098 = vst [vmem:[%s9221_s1 + $0x3a4] ss:$8 sm:$0x3] %v4447_v24   ;;  %6099 = vst [vmem:[%s9221_s1 + $0x3b4] ss:$8 sm:$0x3] %v4451_v25  }
 0x2fc   :  { %6100 = vst [vmem:[%s9221_s1 + $0x3a5] ss:$8 sm:$0x3] %v4455_v26   ;;  %v4459_v27 = vld [vmem:[#allocation0 + $0xed8] sm:$0x3]  }
 0x2fd   :  { %v4463_v28 = vld [vmem:[#allocation0 + $0xee0] sm:$0x3]   ;;  %v4467_v29 = vld [vmem:[#allocation0 + $0xee8] sm:$0x3]   ;;  %v4471_v30 = vld [vmem:[#allocation0 + $0xef0] sm:$0x3]  }
 0x2fe   :  { %6101 = vst [vmem:[%s9221_s1 + $0x3b5] ss:$8 sm:$0x3] %v4459_v27   ;;  %6102 = vst [vmem:[%s9221_s1 + $0x3a6] ss:$8 sm:$0x3] %v4463_v28  }
 0x2ff   :  { %6103 = vst [vmem:[%s9221_s1 + $0x3b6] ss:$8 sm:$0x3] %v4467_v29   ;;  %v4475_v31 = vld [vmem:[#allocation0 + $0xef8] sm:$0x3]  }
 0x300   :  { %v4479_v32 = vld [vmem:[#allocation0 + $0xf00] sm:$0x3]   ;;  %6104 = vst [vmem:[%s9221_s1 + $0x3a7] ss:$8 sm:$0x3] %v4471_v30  }
 0x301   :  { %6105 = vst [vmem:[%s9221_s1 + $0x3b7] ss:$8 sm:$0x3] %v4475_v31   ;;  %6106 = vst [vmem:[%s9221_s1 + $0x3c0] ss:$8 sm:$0x3] %v4479_v32  }
 0x302   :  { %v4483_v33 = vld [vmem:[#allocation0 + $0xf08] sm:$0x3]   ;;  %v4487_v34 = vld [vmem:[#allocation0 + $0xf10] sm:$0x3]   ;;  %v4491_v35 = vld [vmem:[#allocation0 + $0xf18] sm:$0x3]  }
 0x303   :  { %6107 = vst [vmem:[%s9221_s1 + $0x3d0] ss:$8 sm:$0x3] %v4483_v33   ;;  %6108 = vst [vmem:[%s9221_s1 + $0x3c1] ss:$8 sm:$0x3] %v4487_v34  }
 0x304   :  { %6109 = vst [vmem:[%s9221_s1 + $0x3d1] ss:$8 sm:$0x3] %v4491_v35   ;;  %v4495_v36 = vld [vmem:[#allocation0 + $0xf20] sm:$0x3]  }
 0x305   :  { %v4499_v37 = vld [vmem:[#allocation0 + $0xf28] sm:$0x3]   ;;  %v4503_v38 = vld [vmem:[#allocation0 + $0xf30] sm:$0x3]   ;;  %v4507_v39 = vld [vmem:[#allocation0 + $0xf38] sm:$0x3]  }
 0x306   :  { %6110 = vst [vmem:[%s9221_s1 + $0x3c2] ss:$8 sm:$0x3] %v4495_v36   ;;  %6111 = vst [vmem:[%s9221_s1 + $0x3d2] ss:$8 sm:$0x3] %v4499_v37  }
 0x307   :  { %6112 = vst [vmem:[%s9221_s1 + $0x3c3] ss:$8 sm:$0x3] %v4503_v38   ;;  %v4511_v40 = vld [vmem:[#allocation0 + $0xf40] sm:$0x3]  }
 0x308   :  { %v4515_v41 = vld [vmem:[#allocation0 + $0xf48] sm:$0x3]   ;;  %6113 = vst [vmem:[%s9221_s1 + $0x3d3] ss:$8 sm:$0x3] %v4507_v39  }
 0x309   :  { %6114 = vst [vmem:[%s9221_s1 + $0x3c4] ss:$8 sm:$0x3] %v4511_v40   ;;  %6115 = vst [vmem:[%s9221_s1 + $0x3d4] ss:$8 sm:$0x3] %v4515_v41  }
 0x30a   :  { %v4519_v42 = vld [vmem:[#allocation0 + $0xf50] sm:$0x3]   ;;  %v4523_v43 = vld [vmem:[#allocation0 + $0xf58] sm:$0x3]   ;;  %v4527_v44 = vld [vmem:[#allocation0 + $0xf60] sm:$0x3]  }
 0x30b   :  { %6116 = vst [vmem:[%s9221_s1 + $0x3c5] ss:$8 sm:$0x3] %v4519_v42   ;;  %6117 = vst [vmem:[%s9221_s1 + $0x3d5] ss:$8 sm:$0x3] %v4523_v43  }
 0x30c   :  { %6118 = vst [vmem:[%s9221_s1 + $0x3c6] ss:$8 sm:$0x3] %v4527_v44   ;;  %v4531_v45 = vld [vmem:[#allocation0 + $0xf68] sm:$0x3]  }
 0x30d   :  { %v4535_v46 = vld [vmem:[#allocation0 + $0xf70] sm:$0x3]   ;;  %v4539_v47 = vld [vmem:[#allocation0 + $0xf78] sm:$0x3]   ;;  %v4543_v48 = vld [vmem:[#allocation0 + $0xf80] sm:$0x3]  }
 0x30e   :  { %6119 = vst [vmem:[%s9221_s1 + $0x3d6] ss:$8 sm:$0x3] %v4531_v45   ;;  %6120 = vst [vmem:[%s9221_s1 + $0x3c7] ss:$8 sm:$0x3] %v4535_v46  }
 0x30f   :  { %6121 = vst [vmem:[%s9221_s1 + $0x3d7] ss:$8 sm:$0x3] %v4539_v47   ;;  %v4547_v49 = vld [vmem:[#allocation0 + $0xf88] sm:$0x3]  }
 0x310   :  { %v4551_v50 = vld [vmem:[#allocation0 + $0xf90] sm:$0x3]   ;;  %6122 = vst [vmem:[%s9221_s1 + $0x3e0] ss:$8 sm:$0x3] %v4543_v48  }
 0x311   :  { %6123 = vst [vmem:[%s9221_s1 + $0x3f0] ss:$8 sm:$0x3] %v4547_v49   ;;  %6124 = vst [vmem:[%s9221_s1 + $0x3e1] ss:$8 sm:$0x3] %v4551_v50  }
 0x312   :  { %v4555_v51 = vld [vmem:[#allocation0 + $0xf98] sm:$0x3]   ;;  %v4559_v52 = vld [vmem:[#allocation0 + $0xfa0] sm:$0x3]   ;;  %v4563_v53 = vld [vmem:[#allocation0 + $0xfa8] sm:$0x3]  }
 0x313   :  { %6125 = vst [vmem:[%s9221_s1 + $0x3f1] ss:$8 sm:$0x3] %v4555_v51   ;;  %6126 = vst [vmem:[%s9221_s1 + $0x3e2] ss:$8 sm:$0x3] %v4559_v52  }
 0x314   :  { %6127 = vst [vmem:[%s9221_s1 + $0x3f2] ss:$8 sm:$0x3] %v4563_v53   ;;  %v4567_v54 = vld [vmem:[#allocation0 + $0xfb0] sm:$0x3]  }
 0x315   :  { %v4571_v55 = vld [vmem:[#allocation0 + $0xfb8] sm:$0x3]   ;;  %v4575_v56 = vld [vmem:[#allocation0 + $0xfc0] sm:$0x3]   ;;  %v4579_v57 = vld [vmem:[#allocation0 + $0xfc8] sm:$0x3]  }
 0x316   :  { %6128 = vst [vmem:[%s9221_s1 + $0x3e3] ss:$8 sm:$0x3] %v4567_v54   ;;  %6129 = vst [vmem:[%s9221_s1 + $0x3f3] ss:$8 sm:$0x3] %v4571_v55  }
 0x317   :  { %6130 = vst [vmem:[%s9221_s1 + $0x3e4] ss:$8 sm:$0x3] %v4575_v56   ;;  %v4583_v58 = vld [vmem:[#allocation0 + $0xfd0] sm:$0x3]  }
 0x318   :  { %v4587_v59 = vld [vmem:[#allocation0 + $0xfd8] sm:$0x3]   ;;  %6131 = vst [vmem:[%s9221_s1 + $0x3f4] ss:$8 sm:$0x3] %v4579_v57  }
 0x319   :  { %6132 = vst [vmem:[%s9221_s1 + $0x3e5] ss:$8 sm:$0x3] %v4583_v58   ;;  %6133 = vst [vmem:[%s9221_s1 + $0x3f5] ss:$8 sm:$0x3] %v4587_v59  }
 0x31a   :  { %v4591_v60 = vld [vmem:[#allocation0 + $0xfe0] sm:$0x3]   ;;  %v4595_v61 = vld [vmem:[#allocation0 + $0xfe8] sm:$0x3]   ;;  %v4599_v62 = vld [vmem:[#allocation0 + $0xff0] sm:$0x3]  }
 0x31b   :  { %6134 = vst [vmem:[%s9221_s1 + $0x3e6] ss:$8 sm:$0x3] %v4591_v60   ;;  %6135 = vst [vmem:[%s9221_s1 + $0x3f6] ss:$8 sm:$0x3] %v4595_v61  }
 0x31c   :  { %6136 = vst [vmem:[%s9221_s1 + $0x3e7] ss:$8 sm:$0x3] %v4599_v62   ;;  %v4603_v63 = vld [vmem:[#allocation0 + $0xff8] sm:$0x3]  }
 0x31d   :  { %6137 = vst [vmem:[%s9221_s1 + $0x3f7] ss:$8 sm:$0x3] %v4603_v63  }

// kernel: fused_upsample.1
= control target key start
LH: loop header
LB: loop body
LE: loop exit
PB: predicated region body
PF: predicated region fallthrough
CT: control target
= control target key end

     0   :  { %s2084_s15 = smov 0   ;;  %s2086_s16 = smov 0   ;;  %s3372_s0 = inlined_call_operand.vmem [shape: f32[2,432,256], index: 0, kind: input, shape index: {}]   ;;  %s3373_s1 = inlined_call_operand.vmem [shape: f32[256,512], index: 1, kind: input, shape index: {}]   ;;  %s3374_s2 = inlined_call_operand.vmem [shape: f32[256,512], index: 2, kind: input, shape index: {}]   ;;  %s3375_s3 = inlined_call_operand.vmem [shape: f32[1,512], index: 3, kind: input, shape index: {}]   ;;  %s3376_s4 = inlined_call_operand.vmem [shape: f32[2,432,512], index: 4, kind: output, shape index: {}]  }
   0x1   :  { %s2088_s17 = smov 0   ;;  %s2090_s18 = smov 0  }
   0x2   :  { %s2092_s19 = smov 0  }
   0x3 LB: > { %s23_s20 = sadd.s32 1, %s2049_s17  ;;  %s26_s21 = sadd.s32 1, %s2053_s18  ;;  %s2057_s19 = sphi %s2092_s19, %s14_s19   ;;  %s2053_s18 = sphi %s2090_s18, %s3383_s18   ;;  %s2049_s17 = sphi %s2088_s17, %s3382_s17   ;;  %s2045_s16 = sphi %s2086_s16, %s3381_s16   ;;  %s2041_s15 = sphi %s2084_s15, %s3380_s15  }
   0x4   : > { %p24_p0 = scmp.ge.s32.totalorder %s23_s20, 3  ;;  %p1642_p1 = scmp.ge.s32.totalorder %s2057_s19, 1 }
   0x5   : > { %p184_p2 = scmp.lt.s32.totalorder %s2057_s19, 7 }
   0x6   : > { %s3385_s20 = smov (%p24_p0, %s23_s20), 0  ;;  %s3387_s21 = smov (!%p24_p0, %s26_s21), %s2053_s18 }
   0x7   : > { %p185_p3 = pnand %p1642_p1, %p184_p2  ;;  %p28_p4 = scmp.ge.s32.totalorder %s3387_s21, 2 }
   0x8   : > { %v554_v0 = vld [vmem:[%s3374_s2 + $0x8] sm:$0xff] (!%p185_p3)  ;;  %v556_v2 = vld [vmem:[%s3374_s2 + $0x18] sm:$0xff] (!%p185_p3)  ;;  %s220_s28 = smul.u32 (!%p185_p3), 18, %s2041_s15  ;;  %p221_p5 = scmp.lt.s32.totalorder (!%p185_p3), %s2045_s16, 1  ;;  %v553_v5 = vld [vmem:[%s3374_s2] sm:$0xff] (!%p185_p3)  ;;  %vm314_vm0 = vcmask (!%p185_p3), 1046528  }
   0x9   : > { %s3389_s21 = smov (%p28_p4, %s3387_s21), 0  ;;  %188 = sbr.rel (%p185_p3) target bundleno = 434 (0x1b2), region = 36 }
   0xa   : > { %v558_v1 = vld [vmem:[%s3374_s2 + $0x28] sm:$0xff] (!%p185_p3)  ;;  %v560_v4 = vld [vmem:[%s3374_s2 + $0x38] sm:$0xff] (!%p185_p3)  ;;  %v557_v6 = vld [vmem:[%s3374_s2 + $0x20] sm:$0xff] (!%p185_p3)  ;;  %p2158_p6 = scmp.lt.s32.totalorder (!%p185_p3), %s220_s28, 53 }
   0xb   : > { %v1649_v3 = vpack.c.bf16 (!%p185_p3), %v558_v1, %v554_v0  ;;  %v1713_v7 = vpack.c.bf16 (!%p185_p3), %v560_v4, %v556_v2  ;;  %v1651_v8 = vpack.c.bf16 (!%p185_p3), %v557_v6, %v553_v5  ;;  %v555_v9 = vld [vmem:[%s3374_s2 + $0x10] sm:$0xff] (!%p185_p3)  ;;  %v562_v11 = vld [vmem:[%s3374_s2 + $0x48] sm:$0xff] (!%p185_p3)  ;;  %v564_v14 = vld [vmem:[%s3374_s2 + $0x58] sm:$0xff] (!%p185_p3) }
   0xc   : > { %v559_v10 = vld [vmem:[%s3374_s2 + $0x30] sm:$0xff] (!%p185_p3)  ;;  %v566_v13 = vld [vmem:[%s3374_s2 + $0x68] sm:$0xff] (!%p185_p3)  ;;  %v568_v15 = vld [vmem:[%s3374_s2 + $0x78] sm:$0xff] (!%p185_p3) }
   0xd   : > { %1650 = vmatprep.subr.bf16.mxu0 (!%p185_p3), %v1649_v3  ;;  %v1715_v12 = vpack.c.bf16 (!%p185_p3), %v559_v10, %v555_v9  ;;  %1714 = vmatprep.subr.bf16.mxu1 (!%p185_p3), %v1713_v7  ;;  %v1653_v16 = vpack.c.bf16 (!%p185_p3), %v566_v13, %v562_v11  ;;  %v1717_v17 = vpack.c.bf16 (!%p185_p3), %v568_v15, %v564_v14  ;;  %v561_v18 = vld [vmem:[%s3374_s2 + $0x40] sm:$0xff] (!%p185_p3)  ;;  %v563_v20 = vld [vmem:[%s3374_s2 + $0x50] sm:$0xff] (!%p185_p3)  ;;  %v570_v23 = vld [vmem:[%s3374_s2 + $0x88] sm:$0xff] (!%p185_p3) }
   0xe   : > { %1652 = vmatpush1.bf16.msra.mxu0 (!%p185_p3), %v1651_v8  ;;  %v565_v19 = vld [vmem:[%s3374_s2 + $0x60] sm:$0xff] (!%p185_p3)  ;;  %v567_v22 = vld [vmem:[%s3374_s2 + $0x70] sm:$0xff] (!%p185_p3)  ;;  %v574_v24 = vld [vmem:[%s3374_s2 + $0xa8] sm:$0xff] (!%p185_p3) }
   0xf   : > { %1716 = vmatpush1.bf16.msra.mxu1 (!%p185_p3), %v1715_v12  ;;  %v1655_v21 = vpack.c.bf16 (!%p185_p3), %v565_v19, %v561_v18  ;;  %1654 = vmatprep.subr.bf16.mxu0 (!%p185_p3), %v1653_v16  ;;  %v1719_v25 = vpack.c.bf16 (!%p185_p3), %v567_v22, %v563_v20  ;;  %v1657_v26 = vpack.c.bf16 (!%p185_p3), %v574_v24, %v570_v23  ;;  %v572_v27 = vld [vmem:[%s3374_s2 + $0x98] sm:$0xff] (!%p185_p3)  ;;  %v569_v29 = vld [vmem:[%s3374_s2 + $0x80] sm:$0xff] (!%p185_p3)  ;;  %v571_v32 = vld [vmem:[%s3374_s2 + $0x90] sm:$0xff] (!%p185_p3) }
  0x10   : > { %s3391_s16 = smov (!%p221_p5, %s2045_s16), 1  ;;  %s3393_s28 = smov (!%p2158_p6, %s220_s28), 53  ;;  %1718 = vmatprep.subr.bf16.mxu1 %v1717_v17  ;;  %v576_v28 = vld [vmem:[%s3374_s2 + $0xb8] sm:$0xff]  ;;  %v573_v31 = vld [vmem:[%s3374_s2 + $0xa0] sm:$0xff]  ;;  %v575_v33 = vld [vmem:[%s3374_s2 + $0xb0] sm:$0xff] }
  0x11   : > { %s1978_s15 = smul.u32 216, %s3391_s16  ;;  %v1721_v30 = vpack.c.bf16 %v576_v28, %v572_v27  ;;  %s1645_s10 = sshll.u32 %s3393_s28, 2  ;;  %v1659_v34 = vpack.c.bf16 %v573_v31, %v569_v29  ;;  %v578_v35 = vld [vmem:[%s3374_s2 + $0xc8] sm:$0xff]  ;;  %v580_v37 = vld [vmem:[%s3374_s2 + $0xd8] sm:$0xff]  ;;  %v1723_v38 = vpack.c.bf16 %v575_v33, %v571_v32  ;;  %v577_v41 = vld [vmem:[%s3374_s2 + $0xc0] sm:$0xff] }
  0x12   : > { %1656 = vmatpush1.bf16.msra.mxu0 %v1655_v21  ;;  %v582_v36 = vld [vmem:[%s3374_s2 + $0xe8] sm:$0xff]  ;;  %v584_v40 = vld [vmem:[%s3374_s2 + $0xf8] sm:$0xff]  ;;  %v581_v42 = vld [vmem:[%s3374_s2 + $0xe0] sm:$0xff]  ;;  %s1977_s22 = smul.u32 108, %s3391_s16  ;;  %s1643_s5 = sshll.u32 %s3393_s28, 1 }
  0x13   : > { %s2220_s24 = sadd.s32 %s1978_s15, %s1645_s10  ;;  %1720 = vmatpush1.bf16.msra.mxu1 %v1719_v25  ;;  %1658 = vmatprep.subr.bf16.mxu0 %v1657_v26  ;;  %v1661_v39 = vpack.c.bf16 %v582_v36, %v578_v35  ;;  %v1725_v43 = vpack.c.bf16 %v584_v40, %v580_v37  ;;  %v579_v44 = vld [vmem:[%s3374_s2 + $0xd0] sm:$0xff]  ;;  %v586_v46 = vld [vmem:[%s3374_s2 + $0x108] sm:$0xff]  ;;  %v588_v48 = vld [vmem:[%s3374_s2 + $0x118] sm:$0xff]  ;;  %v1663_v50 = vpack.c.bf16 %v581_v42, %v577_v41 }
  0x14   : > { %1722 = vmatprep.subr.bf16.mxu1 %v1721_v30  ;;  %v583_v45 = vld [vmem:[%s3374_s2 + $0xf0] sm:$0xff]  ;;  %v590_v47 = vld [vmem:[%s3374_s2 + $0x128] sm:$0xff]  ;;  %v592_v49 = vld [vmem:[%s3374_s2 + $0x138] sm:$0xff]  ;;  %s227_s13 = sadd.s32 %s1977_s22, %s1643_s5 }
  0x15   : > { %v1727_v51 = vpack.c.bf16 %v583_v45, %v579_v44  ;;  %v1665_v52 = vpack.c.bf16 %v590_v47, %v586_v46  ;;  %v585_v53 = vld [vmem:[%s3374_s2 + $0x100] sm:$0xff]  ;;  %v587_v55 = vld [vmem:[%s3374_s2 + $0x110] sm:$0xff]  ;;  %v1729_v56 = vpack.c.bf16 %v592_v49, %v588_v48  ;;  %v594_v58 = vld [vmem:[%s3374_s2 + $0x148] sm:$0xff]  ;;  %s1644_s5 = sshll.u32 %s227_s13, 3 }
  0x16   : > { %1660 = vmatpush1.bf16.msra.mxu0 %v1659_v34  ;;  %v589_v54 = vld [vmem:[%s3374_s2 + $0x120] sm:$0xff]  ;;  %v591_v57 = vld [vmem:[%s3374_s2 + $0x130] sm:$0xff]  ;;  %v598_v59 = vld [vmem:[%s3374_s2 + $0x168] sm:$0xff]  ;;  %s2422_s22 = scalar_lea.vmem %s3372_s0, %s1644_s5 }
  0x17   : > { %1724 = vmatpush1.bf16.msra.mxu1 %v1723_v38  ;;  %1662 = vmatprep.subr.bf16.mxu0 %v1661_v39  ;;  %v596_v60 = vld [vmem:[%s3374_s2 + $0x158] sm:$0xff]  ;;  %v1667_v62 = vpack.c.bf16 %v589_v54, %v585_v53  ;;  %v1731_v63 = vpack.c.bf16 %v591_v57, %v587_v55  ;;  %v1669_v0 = vpack.c.bf16 %v598_v59, %v594_v58  ;;  %v593_v1 = vld [vmem:[%s3374_s2 + $0x140] sm:$0xff]  ;;  %v595_v3 = vld [vmem:[%s3374_s2 + $0x150] sm:$0xff] }
  0x18   : > { %1726 = vmatprep.subr.bf16.mxu1 %v1725_v43  ;;  %v600_v61 = vld [vmem:[%s3374_s2 + $0x178] sm:$0xff]  ;;  %v597_v2 = vld [vmem:[%s3374_s2 + $0x160] sm:$0xff]  ;;  %v599_v5 = vld [vmem:[%s3374_s2 + $0x170] sm:$0xff] }
  0x19   : > { %v1733_v4 = vpack.c.bf16 %v600_v61, %v596_v60  ;;  %v602_v6 = vld [vmem:[%s3374_s2 + $0x188] sm:$0xff]  ;;  %v604_v8 = vld [vmem:[%s3374_s2 + $0x198] sm:$0xff]  ;;  %v1671_v10 = vpack.c.bf16 %v597_v2, %v593_v1  ;;  %v1735_v11 = vpack.c.bf16 %v599_v5, %v595_v3  ;;  %v601_v13 = vld [vmem:[%s3374_s2 + $0x180] sm:$0xff] }
  0x1a   : > { %1664 = vmatpush1.bf16.msra.mxu0 %v1663_v50  ;;  %v606_v7 = vld [vmem:[%s3374_s2 + $0x1a8] sm:$0xff]  ;;  %v608_v9 = vld [vmem:[%s3374_s2 + $0x1b8] sm:$0xff]  ;;  %v605_v14 = vld [vmem:[%s3374_s2 + $0x1a0] sm:$0xff] }
  0x1b   : > { %1728 = vmatpush1.bf16.msra.mxu1 %v1727_v51  ;;  %1666 = vmatprep.subr.bf16.mxu0 %v1665_v52  ;;  %v1673_v12 = vpack.c.bf16 %v606_v7, %v602_v6  ;;  %v603_v15 = vld [vmem:[%s3374_s2 + $0x190] sm:$0xff]  ;;  %v1737_v16 = vpack.c.bf16 %v608_v9, %v604_v8  ;;  %v610_v18 = vld [vmem:[%s3374_s2 + $0x1c8] sm:$0xff]  ;;  %v612_v20 = vld [vmem:[%s3374_s2 + $0x1d8] sm:$0xff]  ;;  %v1675_v22 = vpack.c.bf16 %v605_v14, %v601_v13 }
  0x1c   : > { %1730 = vmatprep.subr.bf16.mxu1 %v1729_v56  ;;  %v607_v17 = vld [vmem:[%s3374_s2 + $0x1b0] sm:$0xff]  ;;  %v614_v19 = vld [vmem:[%s3374_s2 + $0x1e8] sm:$0xff]  ;;  %v616_v21 = vld [vmem:[%s3374_s2 + $0x1f8] sm:$0xff] }
  0x1d   : > { %v1739_v23 = vpack.c.bf16 %v607_v17, %v603_v15  ;;  %v1677_v24 = vpack.c.bf16 %v614_v19, %v610_v18  ;;  %v609_v25 = vld [vmem:[%s3374_s2 + $0x1c0] sm:$0xff]  ;;  %v611_v27 = vld [vmem:[%s3374_s2 + $0x1d0] sm:$0xff]  ;;  %v1741_v28 = vpack.c.bf16 %v616_v21, %v612_v20  ;;  %v618_v30 = vld [vmem:[%s3374_s2 + $0x208] sm:$0xff] }
  0x1e   : > { %1668 = vmatpush1.bf16.msra.mxu0 %v1667_v62  ;;  %v613_v26 = vld [vmem:[%s3374_s2 + $0x1e0] sm:$0xff]  ;;  %v615_v29 = vld [vmem:[%s3374_s2 + $0x1f0] sm:$0xff]  ;;  %v622_v31 = vld [vmem:[%s3374_s2 + $0x228] sm:$0xff] }
  0x1f   : > { %1732 = vmatpush1.bf16.msra.mxu1 %v1731_v63  ;;  %1670 = vmatprep.subr.bf16.mxu0 %v1669_v0  ;;  %v620_v32 = vld [vmem:[%s3374_s2 + $0x218] sm:$0xff]  ;;  %v1679_v34 = vpack.c.bf16 %v613_v26, %v609_v25  ;;  %v1743_v35 = vpack.c.bf16 %v615_v29, %v611_v27  ;;  %v1681_v36 = vpack.c.bf16 %v622_v31, %v618_v30  ;;  %v617_v37 = vld [vmem:[%s3374_s2 + $0x200] sm:$0xff]  ;;  %v619_v39 = vld [vmem:[%s3374_s2 + $0x210] sm:$0xff] }
  0x20   : > { %1734 = vmatprep.subr.bf16.mxu1 %v1733_v4  ;;  %v624_v33 = vld [vmem:[%s3374_s2 + $0x238] sm:$0xff]  ;;  %v621_v38 = vld [vmem:[%s3374_s2 + $0x220] sm:$0xff]  ;;  %v623_v41 = vld [vmem:[%s3374_s2 + $0x230] sm:$0xff] }
  0x21   : > { %v1745_v40 = vpack.c.bf16 %v624_v33, %v620_v32  ;;  %v626_v42 = vld [vmem:[%s3374_s2 + $0x248] sm:$0xff]  ;;  %v628_v44 = vld [vmem:[%s3374_s2 + $0x258] sm:$0xff]  ;;  %v1683_v46 = vpack.c.bf16 %v621_v38, %v617_v37  ;;  %v1747_v47 = vpack.c.bf16 %v623_v41, %v619_v39  ;;  %v625_v49 = vld [vmem:[%s3374_s2 + $0x240] sm:$0xff] }
  0x22   : > { %1672 = vmatpush1.bf16.msra.mxu0 %v1671_v10  ;;  %v630_v43 = vld [vmem:[%s3374_s2 + $0x268] sm:$0xff]  ;;  %v632_v45 = vld [vmem:[%s3374_s2 + $0x278] sm:$0xff]  ;;  %v629_v50 = vld [vmem:[%s3374_s2 + $0x260] sm:$0xff] }
  0x23   : > { %1736 = vmatpush1.bf16.msra.mxu1 %v1735_v11  ;;  %1674 = vmatprep.subr.bf16.mxu0 %v1673_v12  ;;  %v1685_v48 = vpack.c.bf16 %v630_v43, %v626_v42  ;;  %v627_v51 = vld [vmem:[%s3374_s2 + $0x250] sm:$0xff]  ;;  %v1749_v52 = vpack.c.bf16 %v632_v45, %v628_v44  ;;  %v634_v54 = vld [vmem:[%s3374_s2 + $0x288] sm:$0xff]  ;;  %v636_v56 = vld [vmem:[%s3374_s2 + $0x298] sm:$0xff]  ;;  %v1687_v58 = vpack.c.bf16 %v629_v50, %v625_v49 }
  0x24   : > { %1738 = vmatprep.subr.bf16.mxu1 %v1737_v16  ;;  %v631_v53 = vld [vmem:[%s3374_s2 + $0x270] sm:$0xff]  ;;  %v638_v55 = vld [vmem:[%s3374_s2 + $0x2a8] sm:$0xff]  ;;  %v640_v57 = vld [vmem:[%s3374_s2 + $0x2b8] sm:$0xff] }
  0x25   : > { %v1751_v59 = vpack.c.bf16 %v631_v53, %v627_v51  ;;  %v1689_v60 = vpack.c.bf16 %v638_v55, %v634_v54  ;;  %v633_v61 = vld [vmem:[%s3374_s2 + $0x280] sm:$0xff]  ;;  %v635_v63 = vld [vmem:[%s3374_s2 + $0x290] sm:$0xff]  ;;  %v1753_v0 = vpack.c.bf16 %v640_v57, %v636_v56  ;;  %v642_v2 = vld [vmem:[%s3374_s2 + $0x2c8] sm:$0xff] }
  0x26   : > { %1676 = vmatpush1.bf16.msra.mxu0 %v1675_v22  ;;  %v637_v62 = vld [vmem:[%s3374_s2 + $0x2a0] sm:$0xff]  ;;  %v639_v1 = vld [vmem:[%s3374_s2 + $0x2b0] sm:$0xff]  ;;  %v646_v3 = vld [vmem:[%s3374_s2 + $0x2e8] sm:$0xff] }
  0x27   : > { %1740 = vmatpush1.bf16.msra.mxu1 %v1739_v23  ;;  %1678 = vmatprep.subr.bf16.mxu0 %v1677_v24  ;;  %v644_v4 = vld [vmem:[%s3374_s2 + $0x2d8] sm:$0xff]  ;;  %v1691_v6 = vpack.c.bf16 %v637_v62, %v633_v61  ;;  %v641_v7 = vld [vmem:[%s3374_s2 + $0x2c0] sm:$0xff]  ;;  %v1755_v8 = vpack.c.bf16 %v639_v1, %v635_v63  ;;  %v1693_v9 = vpack.c.bf16 %v646_v3, %v642_v2  ;;  %v643_v11 = vld [vmem:[%s3374_s2 + $0x2d0] sm:$0xff] }
  0x28   : > { %1742 = vmatprep.subr.bf16.mxu1 %v1741_v28  ;;  %v648_v5 = vld [vmem:[%s3374_s2 + $0x2f8] sm:$0xff]  ;;  %v645_v10 = vld [vmem:[%s3374_s2 + $0x2e0] sm:$0xff]  ;;  %v647_v12 = vld [vmem:[%s3374_s2 + $0x2f0] sm:$0xff] }
  0x29   : > { %v1757_v13 = vpack.c.bf16 %v648_v5, %v644_v4  ;;  %v650_v14 = vld [vmem:[%s3374_s2 + $0x308] sm:$0xff]  ;;  %v652_v17 = vld [vmem:[%s3374_s2 + $0x318] sm:$0xff]  ;;  %v1695_v21 = vpack.c.bf16 %v645_v10, %v641_v7  ;;  %v1759_v23 = vpack.c.bf16 %v647_v12, %v643_v11  ;;  %v649_v25 = vld [vmem:[%s3374_s2 + $0x300] sm:$0xff] }
  0x2a   : > { %1680 = vmatpush1.bf16.msra.mxu0 %v1679_v34  ;;  %v654_v15 = vld [vmem:[%s3374_s2 + $0x328] sm:$0xff]  ;;  %v656_v18 = vld [vmem:[%s3374_s2 + $0x338] sm:$0xff]  ;;  %v653_v26 = vld [vmem:[%s3374_s2 + $0x320] sm:$0xff] }
  0x2b   : > { %1744 = vmatpush1.bf16.msra.mxu1 %v1743_v35  ;;  %1682 = vmatprep.subr.bf16.mxu0 %v1681_v36  ;;  %v2443_v16 = vld [vmem:[%s2422_s22 + $0x8] sm:$0xff]  ;;  %v2452_v19 = vld [vmem:[%s2422_s22 + $0x18] sm:$0xff]  ;;  %v1697_v24 = vpack.c.bf16 %v654_v15, %v650_v14  ;;  %v651_v27 = vld [vmem:[%s3374_s2 + $0x310] sm:$0xff]  ;;  %v1761_v28 = vpack.c.bf16 %v656_v18, %v652_v17  ;;  %v1699_v35 = vpack.c.bf16 %v653_v26, %v649_v25 }
  0x2c   : > { %1746 = vmatprep.subr.bf16.mxu1 %v1745_v40  ;;  %v318_v20 = vrot.slane %v2443_v16, 1  ;;  %v319_v22 = vrot.slane %v2452_v19, 1  ;;  %v655_v29 = vld [vmem:[%s3374_s2 + $0x330] sm:$0xff]  ;;  %v658_v30 = vld [vmem:[%s3374_s2 + $0x348] sm:$0xff]  ;;  %v660_v33 = vld [vmem:[%s3374_s2 + $0x358] sm:$0xff] }
  0x2d   : > { %v662_v31 = vld [vmem:[%s3374_s2 + $0x368] sm:$0xff]  ;;  %v664_v34 = vld [vmem:[%s3374_s2 + $0x378] sm:$0xff]  ;;  %v1763_v36 = vpack.c.bf16 %v655_v29, %v651_v27  ;;  %v657_v38 = vld [vmem:[%s3374_s2 + $0x340] sm:$0xff] }
  0x2e   : > { %1684 = vmatpush1.bf16.msra.mxu0 %v1683_v46  ;;  %v320_v32 = vsel %vm314_vm0, %v318_v20, %v319_v22  ;;  %v1701_v37 = vpack.c.bf16 %v662_v31, %v658_v30  ;;  %v661_v39 = vld [vmem:[%s3374_s2 + $0x360] sm:$0xff]  ;;  %v659_v40 = vld [vmem:[%s3374_s2 + $0x350] sm:$0xff]  ;;  %v1765_v41 = vpack.c.bf16 %v664_v34, %v660_v33  ;;  %v666_v43 = vld [vmem:[%s3374_s2 + $0x388] sm:$0xff] }
  0x2f   : > { %1748 = vmatpush1.bf16.msra.mxu1 %v1747_v47  ;;  %1686 = vmatprep.subr.bf16.mxu0 %v1685_v48  ;;  %v663_v42 = vld [vmem:[%s3374_s2 + $0x370] sm:$0xff]  ;;  %v670_v44 = vld [vmem:[%s3374_s2 + $0x3a8] sm:$0xff]  ;;  %v668_v45 = vld [vmem:[%s3374_s2 + $0x398] sm:$0xff]  ;;  %v1703_v47 = vpack.c.bf16 %v661_v39, %v657_v38 }
  0x30   : > { %1750 = vmatprep.subr.bf16.mxu1 %v1749_v52  ;;  %745 = vmatprep.mubr.f32.mxu0 %v320_v32  ;;  %v672_v46 = vld [vmem:[%s3374_s2 + $0x3b8] sm:$0xff]  ;;  %v1767_v48 = vpack.c.bf16 %v663_v42, %v659_v40  ;;  %v1705_v49 = vpack.c.bf16 %v670_v44, %v666_v43  ;;  %v665_v50 = vld [vmem:[%s3374_s2 + $0x380] sm:$0xff]  ;;  %v667_v52 = vld [vmem:[%s3374_s2 + $0x390] sm:$0xff] }
  0x31   : > { %918 = vmatprep.mubr.f32.mxu1 %v320_v32  ;;  %v669_v51 = vld [vmem:[%s3374_s2 + $0x3a0] sm:$0xff]  ;;  %v1769_v53 = vpack.c.bf16 %v672_v46, %v668_v45  ;;  %v671_v54 = vld [vmem:[%s3374_s2 + $0x3b0] sm:$0xff]  ;;  %v674_v55 = vld [vmem:[%s3374_s2 + $0x3c8] sm:$0xff] }
  0x32   : > { %1688 = vmatpush1.bf16.msra.mxu0 %v1687_v58  ;;  %v678_v56 = vld [vmem:[%s3374_s2 + $0x3e8] sm:$0xff]  ;;  %v676_v57 = vld [vmem:[%s3374_s2 + $0x3d8] sm:$0xff]  ;;  %v677_v61 = vld [vmem:[%s3374_s2 + $0x3e0] sm:$0xff]  ;;  %v1771_v62 = vpack.c.bf16 %v671_v54, %v667_v52 }
  0x33   : > { %1752 = vmatpush1.bf16.msra.mxu1 %v1751_v59  ;;  %1690 = vmatprep.subr.bf16.mxu0 %v1689_v60  ;;  %v680_v58 = vld [vmem:[%s3374_s2 + $0x3f8] sm:$0xff]  ;;  %v1707_v59 = vpack.c.bf16 %v669_v51, %v665_v50  ;;  %v673_v60 = vld [vmem:[%s3374_s2 + $0x3c0] sm:$0xff]  ;;  %v1709_v63 = vpack.c.bf16 %v678_v56, %v674_v55  ;;  %v2546_v2 = vld [vmem:[%s2422_s22 + $0x10] sm:$0xff] }
  0x34   : > { %1754 = vmatprep.subr.bf16.mxu1 %v1753_v0  ;;  %v675_v0 = vld [vmem:[%s3374_s2 + $0x3d0] sm:$0xff]  ;;  %v2543_v1 = vld [vmem:[%s2422_s22] sm:$0xff]  ;;  %v1773_v3 = vpack.c.bf16 %v680_v58, %v676_v57  ;;  %v426_v5 = vld [vmem:[%s3373_s1 + $0x8] sm:$0xff]  ;;  %v1711_v10 = vpack.c.bf16 %v677_v61, %v673_v60  ;;  %v316_v12 = vrot.slane %v2546_v2, 1 }
  0x35   : > { %v679_v4 = vld [vmem:[%s3374_s2 + $0x3f0] sm:$0xff]  ;;  %v428_v7 = vld [vmem:[%s3373_s1 + $0x18] sm:$0xff]  ;;  %v315_v11 = vrot.slane %v2543_v1, 1  ;;  %v425_v15 = vld [vmem:[%s3373_s1] sm:$0xff] }
  0x36   : > { %1692 = vmatpush1.bf16.msra.mxu0 %v1691_v6  ;;  %v430_v6 = vld [vmem:[%s3373_s1 + $0x28] sm:$0xff]  ;;  %v429_v17 = vld [vmem:[%s3373_s1 + $0x20] sm:$0xff]  ;;  %v436_v32 = vld [vmem:[%s3373_s1 + $0x58] sm:$0xff] }
  0x37   : > { %1756 = vmatpush1.bf16.msra.mxu1 %v1755_v8  ;;  %1694 = vmatprep.subr.bf16.mxu0 %v1693_v9  ;;  %v432_v8 = vld [vmem:[%s3373_s1 + $0x38] sm:$0xff]  ;;  %v2564_v9 = vld [vmem:[%s2422_s22 + $0x28] sm:$0xff]  ;;  %v1777_v14 = vpack.c.bf16 %v430_v6, %v426_v5  ;;  %v2575_v18 = vld [vmem:[%s2422_s22 + $0x20] sm:$0xff]  ;;  %v317_v29 = vsel %vm314_vm0, %v315_v11, %v316_v12  ;;  %v1779_v30 = vpack.c.bf16 %v429_v17, %v425_v15 }
  0x38   : > { %1758 = vmatprep.subr.bf16.mxu1 %v1757_v13  ;;  %v1775_v13 = vpack.c.bf16 %v679_v4, %v675_v0  ;;  %v323_v25 = vrot.slane %v2564_v9, 1  ;;  %v434_v26 = vld [vmem:[%s3373_s1 + $0x48] sm:$0xff]  ;;  %v321_v31 = vrot.slane %v2575_v18, 1  ;;  %v440_v33 = vld [vmem:[%s3373_s1 + $0x78] sm:$0xff]  ;;  %v435_v40 = vld [vmem:[%s3373_s1 + $0x50] sm:$0xff] }
  0x39   : > { %v438_v27 = vld [vmem:[%s3373_s1 + $0x68] sm:$0xff]  ;;  %v1845_v43 = vpack.c.bf16 %v440_v33, %v436_v32  ;;  %v448_v50 = vld [vmem:[%s3373_s1 + $0xb8] sm:$0xff]  ;;  %v441_v52 = vld [vmem:[%s3373_s1 + $0x80] sm:$0xff] }
  0x3a   : > { %1696 = vmatpush1.bf16.msra.mxu0 %v1695_v21  ;;  %v1841_v21 = vpack.c.bf16 %v432_v8, %v428_v7  ;;  %v324_v38 = vsel %vm314_vm0, %v319_v22, %v323_v25  ;;  %v1781_v39 = vpack.c.bf16 %v438_v27, %v434_v26  ;;  %v442_v44 = vld [vmem:[%s3373_s1 + $0x88] sm:$0xff]  ;;  %v322_v46 = vsel %vm314_vm0, %v316_v12, %v321_v31  ;;  %v2646_v54 = vld [vmem:[%s2422_s22 + $0x40] sm:$0xff]  ;;  %v443_v57 = vld [vmem:[%s3373_s1 + $0x90] sm:$0xff] }
  0x3b   : > { %1760 = vmatpush1.bf16.msra.mxu1 %v1759_v23  ;;  %1698 = vmatprep.subr.bf16.mxu0 %v1697_v24  ;;  %v427_v23 = vld [vmem:[%s3373_s1 + $0x10] sm:$0xff]  ;;  %v446_v22 = vld [vmem:[%s3373_s1 + $0xa8] sm:$0xff]  ;;  %v2657_v60 = vld [vmem:[%s2422_s22 + $0x58] sm:$0xff]  ;;  %v329_v4 = vrot.slane %v2646_v54, 1 }
  0x3c   : > { %1762 = vmatprep.subr.bf16.mxu1 %v1761_v28  ;;  %v431_v24 = vld [vmem:[%s3373_s1 + $0x30] sm:$0xff]  ;;  %v2591_v28 = vld [vmem:[%s2422_s22 + $0x38] sm:$0xff]  ;;  %v2629_v45 = vld [vmem:[%s2422_s22 + $0x48] sm:$0xff]  ;;  %v1785_v56 = vpack.c.bf16 %v446_v22, %v442_v44  ;;  %v335_v8 = vrot.slane %v2657_v60, 1 }
  0x3d   : > { %v1843_v34 = vpack.c.bf16 %v431_v24, %v427_v23  ;;  %v327_v42 = vrot.slane %v2591_v28, 1  ;;  %v447_v58 = vld [vmem:[%s3373_s1 + $0xb0] sm:$0xff]  ;;  %v452_v5 = vld [vmem:[%s3373_s1 + $0xd8] sm:$0xff]  ;;  %v453_v15 = vld [vmem:[%s3373_s1 + $0xe0] sm:$0xff] }
  0x3e   : > { %1700 = vmatpush1.bf16.msra.mxu0 %v1699_v35  ;;  %v433_v35 = vld [vmem:[%s3373_s1 + $0x40] sm:$0xff]  ;;  %v456_v6 = vld [vmem:[%s3373_s1 + $0xf8] sm:$0xff]  ;;  %v1851_v7 = vpack.c.bf16 %v447_v58, %v443_v57  ;;  %v2678_v12 = vld [vmem:[%s2422_s22 + $0x50] sm:$0xff] }
  0x3f   : > { %1764 = vmatpush1.bf16.msra.mxu1 %v1763_v36  ;;  %1702 = vmatprep.subr.bf16.mxu0 %v1701_v37  ;;  %v437_v36 = vld [vmem:[%s3373_s1 + $0x60] sm:$0xff]  ;;  %v2610_v37 = vld [vmem:[%s2422_s22 + $0x30] sm:$0xff]  ;;  %v328_v55 = vsel %vm314_vm0, %v323_v25, %v327_v42  ;;  %v1853_v23 = vpack.c.bf16 %v456_v6, %v452_v5  ;;  %v458_v25 = vld [vmem:[%s3373_s1 + $0x108] sm:$0xff] }
  0x40   : > { %1766 = vmatprep.subr.bf16.mxu1 %v1765_v41  ;;  %v439_v41 = vld [vmem:[%s3373_s1 + $0x70] sm:$0xff]  ;;  %v462_v26 = vld [vmem:[%s3373_s1 + $0x128] sm:$0xff] }
  0x41   : > { %v1847_v51 = vpack.c.bf16 %v439_v41, %v435_v40  ;;  %v451_v17 = vld [vmem:[%s3373_s1 + $0xd0] sm:$0xff]  ;;  %v461_v40 = vld [vmem:[%s3373_s1 + $0x120] sm:$0xff]  ;;  %v466_v22 = vld [vmem:[%s3373_s1 + $0x148] sm:$0xff] }
  0x42   : > { %1704 = vmatpush1.bf16.msra.mxu0 %v1703_v47  ;;  %v1783_v47 = vpack.c.bf16 %v437_v36, %v433_v35  ;;  %v455_v24 = vld [vmem:[%s3373_s1 + $0xf0] sm:$0xff]  ;;  %v457_v35 = vld [vmem:[%s3373_s1 + $0x100] sm:$0xff] }
  0x43   : > { %1768 = vmatpush1.bf16.msra.mxu1 %v1767_v48  ;;  %1706 = vmatprep.subr.bf16.mxu0 %v1705_v49  ;;  %v325_v48 = vrot.slane %v2610_v37, 1  ;;  %v444_v49 = vld [vmem:[%s3373_s1 + $0x98] sm:$0xff]  ;;  %v2713_v36 = vld [vmem:[%s2422_s22 + $0x60] sm:$0xff]  ;;  %v459_v41 = vld [vmem:[%s3373_s1 + $0x110] sm:$0xff] }
  0x44   : > { %1770 = vmatprep.subr.bf16.mxu1 %v1769_v53  ;;  %v445_v53 = vld [vmem:[%s3373_s1 + $0xa0] sm:$0xff]  ;;  %v1849_v61 = vpack.c.bf16 %v448_v50, %v444_v49  ;;  %v463_v44 = vld [vmem:[%s3373_s1 + $0x130] sm:$0xff]  ;;  %v468_v49 = vld [vmem:[%s3373_s1 + $0x158] sm:$0xff] }
  0x45   : > { %v326_v0 = vsel %vm314_vm0, %v321_v31, %v325_v48  ;;  %v330_v27 = vsel %vm314_vm0, %v325_v48, %v329_v4  ;;  %v464_v31 = vld [vmem:[%s3373_s1 + $0x138] sm:$0xff]  ;;  %v337_v48 = vrot.slane %v2713_v36, 1  ;;  %v1859_v57 = vpack.c.bf16 %v463_v44, %v459_v41  ;;  %v481_v44 = vld [vmem:[%s3373_s1 + $0x1c0] sm:$0xff] }
  0x46   : > { %1708 = vmatpush1.bf16.msra.mxu0 %v1707_v59  ;;  %v331_v59 = vrot.slane %v2629_v45, 1  ;;  %v472_v50 = vld [vmem:[%s3373_s1 + $0x178] sm:$0xff] }
  0x47   : > { %1772 = vmatpush1.bf16.msra.mxu1 %v1771_v62  ;;  %1710 = vmatprep.subr.bf16.mxu0 %v1709_v63  ;;  %v450_v62 = vld [vmem:[%s3373_s1 + $0xc8] sm:$0xff] }
  0x48   : > { %1774 = vmatprep.subr.bf16.mxu1 %v1773_v3  ;;  %v454_v63 = vld [vmem:[%s3373_s1 + $0xe8] sm:$0xff]  ;;  %v1787_v3 = vpack.c.bf16 %v445_v53, %v441_v52  ;;  %v336_v32 = vsel %vm314_vm0, %v331_v59, %v335_v8  ;;  %v1795_v52 = vpack.c.bf16 %v461_v40, %v457_v35  ;;  %v484_v35 = vld [vmem:[%s3373_s1 + $0x1d8] sm:$0xff] }
  0x4a   : > { %1712 = vmatpush1.bf16.msra.mxu0 %v1711_v10  ;;  %v449_v10 = vld [vmem:[%s3373_s1 + $0xc0] sm:$0xff] }
  0x4b   : > { %1776 = vmatpush1.bf16.msra.mxu1 %v1775_v13  ;;  %1778 = vmatprep.subr.bf16.mxu0 %v1777_v14  ;;  %v332_v13 = vsel %vm314_vm0, %v327_v42, %v331_v59  ;;  %v1789_v14 = vpack.c.bf16 %v454_v63, %v450_v62  ;;  %v1791_v33 = vpack.c.bf16 %v453_v15, %v449_v10  ;;  %v2722_v42 = vld [vmem:[%s2422_s22 + $0x78] sm:$0xff]  ;;  %v469_v59 = vld [vmem:[%s3373_s1 + $0x160] sm:$0xff]  ;;  %v2756_v62 = vld [vmem:[%s2422_s22 + $0x88] sm:$0xff] }
  0x4c   : > { %1842 = vmatprep.subr.bf16.mxu1 %v1841_v21  ;;  %v2688_v21 = vld [vmem:[%s2422_s22 + $0x68] sm:$0xff]  ;;  %v343_v53 = vrot.slane %v2722_v42, 1  ;;  %v1861_v63 = vpack.c.bf16 %v472_v50, %v468_v49  ;;  %v2778_v15 = vld [vmem:[%s2422_s22 + $0x80] sm:$0xff]  ;;  %v487_v49 = vld [vmem:[%s3373_s1 + $0x1f0] sm:$0xff] }
  0x4d   : > { %746 = vmatmul.mubr.f32.vlgmr.msra.gmra.mrb[0].mxu0 %v317_v29  ;;  %v2827_v50 = vld [vmem:[%s2422_s22 + $0xa8] sm:$0xff] }
  0x4e   : > { %919 = vmatmul.mubr.f32.vlgmr.msra.gmra.mrb[0].mxu1 %v317_v29  ;;  %1780 = vmatpush1.bf16.msra.mxu0 %v1779_v30  ;;  %v333_v29 = vrot.slane %v2678_v12, 1  ;;  %v460_v30 = vld [vmem:[%s3373_s1 + $0x118] sm:$0xff] }
  0x4f   : > { %1844 = vmatpush1.bf16.msra.mxu1 %v1843_v34  ;;  %751 = vmatprep.mubr.f32.mxu0 %v324_v38  ;;  %v339_v34 = vrot.slane %v2688_v21, 1 }
  0x50   : > { %924 = vmatprep.mubr.f32.mxu1 %v324_v38  ;;  %1782 = vmatprep.subr.bf16.mxu0 %v1781_v39  ;;  %v1855_v38 = vpack.c.bf16 %v455_v24, %v451_v17  ;;  %v1793_v39 = vpack.c.bf16 %v462_v26, %v458_v25  ;;  %v338_v5 = vsel %vm314_vm0, %v333_v29, %v337_v48  ;;  %v473_v17 = vld [vmem:[%s3373_s1 + $0x180] sm:$0xff]  ;;  %v475_v26 = vld [vmem:[%s3373_s1 + $0x190] sm:$0xff] }
  0x51   : > { %752 = vmatmul.mubr.f32.gmra.mrb[2].mxu0 %v322_v46  ;;  %1846 = vmatprep.subr.bf16.mxu1 %v1845_v43  ;;  %v1857_v43 = vpack.c.bf16 %v464_v31, %v460_v30  ;;  %v344_v10 = vsel %vm314_vm0, %v339_v34, %v343_v53  ;;  %v477_v25 = vld [vmem:[%s3373_s1 + $0x1a0] sm:$0xff]  ;;  %v479_v30 = vld [vmem:[%s3373_s1 + $0x1b0] sm:$0xff]  ;;  %v482_v31 = vld [vmem:[%s3373_s1 + $0x1c8] sm:$0xff] }
  0x52   : > { %925 = vmatmul.mubr.f32.gmra.mrb[2].mxu1 %v322_v46  ;;  %1784 = vmatpush1.bf16.msra.mxu0 %v1783_v47  ;;  %v470_v46 = vld [vmem:[%s3373_s1 + $0x168] sm:$0xff]  ;;  %v334_v47 = vsel %vm314_vm0, %v329_v4, %v333_v29  ;;  %v1803_v40 = vpack.c.bf16 %v477_v25, %v473_v17  ;;  %v2865_v17 = vld [vmem:[%s2422_s22 + $0xb8] sm:$0xff] }
  0x53   : > { %1848 = vmatpush1.bf16.msra.mxu1 %v1847_v51  ;;  %757 = vmatprep.mubr.f32.mxu0 %v328_v55  ;;  %v340_v51 = vsel %vm314_vm0, %v335_v8, %v339_v34  ;;  %v1797_v58 = vpack.c.bf16 %v470_v46, %v466_v22  ;;  %v478_v4 = vld [vmem:[%s3373_s1 + $0x1a8] sm:$0xff]  ;;  %v480_v8 = vld [vmem:[%s3373_s1 + $0x1b8] sm:$0xff]  ;;  %v345_v34 = vrot.slane %v2778_v15, 1  ;;  %v485_v22 = vld [vmem:[%s3373_s1 + $0x1e0] sm:$0xff]  ;;  %v1867_v46 = vpack.c.bf16 %v479_v30, %v475_v26 }
  0x54   : > { %930 = vmatprep.mubr.f32.mxu1 %v328_v55  ;;  %1786 = vmatprep.subr.bf16.mxu0 %v1785_v56  ;;  %v2744_v55 = vld [vmem:[%s2422_s22 + $0x70] sm:$0xff]  ;;  %v465_v56 = vld [vmem:[%s3373_s1 + $0x140] sm:$0xff]  ;;  %v502_v30 = vld [vmem:[%s3373_s1 + $0x268] sm:$0xff] }
  0x55   : > { %758 = vmatmul.mubr.f32.gmra.mrb[4].mxu0 %v326_v0  ;;  %1850 = vmatprep.subr.bf16.mxu1 %v1849_v61  ;;  %v467_v61 = vld [vmem:[%s3373_s1 + $0x150] sm:$0xff]  ;;  %v341_v6 = vrot.slane %v2744_v55, 1 }
  0x56   : > { %931 = vmatmul.mubr.f32.gmra.mrb[4].mxu1 %v326_v0  ;;  %1788 = vmatpush1.bf16.msra.mxu0 %v1787_v3  ;;  %v471_v0 = vld [vmem:[%s3373_s1 + $0x170] sm:$0xff]  ;;  %v474_v3 = vld [vmem:[%s3373_s1 + $0x188] sm:$0xff] }
  0x57   : > { %1852 = vmatpush1.bf16.msra.mxu1 %v1851_v7  ;;  %763 = vmatprep.mubr.f32.mxu0 %v332_v13  ;;  %v476_v7 = vld [vmem:[%s3373_s1 + $0x198] sm:$0xff]  ;;  %v1801_v24 = vpack.c.bf16 %v478_v4, %v474_v3  ;;  %v1807_v3 = vpack.c.bf16 %v485_v22, %v481_v44  ;;  %v355_v4 = vrot.slane %v2827_v50, 1  ;;  %v495_v26 = vld [vmem:[%s3373_s1 + $0x230] sm:$0xff]  ;;  %v497_v44 = vld [vmem:[%s3373_s1 + $0x240] sm:$0xff] }
  0x58   : > { %936 = vmatprep.mubr.f32.mxu1 %v332_v13  ;;  %1790 = vmatprep.subr.bf16.mxu0 %v1789_v14  ;;  %v1799_v13 = vpack.c.bf16 %v469_v59, %v465_v56  ;;  %v347_v14 = vrot.slane %v2756_v62, 1  ;;  %v1865_v29 = vpack.c.bf16 %v480_v8, %v476_v7  ;;  %v2836_v56 = vld [vmem:[%s2422_s22 + $0x118] sm:$0xff]  ;;  %v2856_v7 = vld [vmem:[%s2422_s22 + $0x110] sm:$0xff] }
  0x59   : > { %764 = vmatmul.mubr.f32.gmra.mrb[6].mxu0 %v330_v27  ;;  %1854 = vmatprep.subr.bf16.mxu1 %v1853_v23  ;;  %v1863_v23 = vpack.c.bf16 %v471_v0, %v467_v61  ;;  %v492_v59 = vld [vmem:[%s3373_s1 + $0x218] sm:$0xff] }
  0x5a   : > { %937 = vmatmul.mubr.f32.gmra.mrb[6].mxu1 %v330_v27  ;;  %769 = vmatprep.mubr.f32.mxu0 %v336_v32  ;;  %v2790_v27 = vld [vmem:[%s2422_s22 + $0x98] sm:$0xff] }
  0x5b   : > { %942 = vmatprep.mubr.f32.mxu1 %v336_v32  ;;  %1792 = vmatpush1.bf16.msra.mxu0 %v1791_v33  ;;  %v486_v32 = vld [vmem:[%s3373_s1 + $0x1e8] sm:$0xff]  ;;  %v342_v33 = vsel %vm314_vm0, %v337_v48, %v341_v6  ;;  %v351_v41 = vrot.slane %v2790_v27, 1  ;;  %v483_v48 = vld [vmem:[%s3373_s1 + $0x1d0] sm:$0xff]  ;;  %v496_v61 = vld [vmem:[%s3373_s1 + $0x238] sm:$0xff] }
  0x5c   : > { %1856 = vmatpush1.bf16.msra.mxu1 %v1855_v38  ;;  %1794 = vmatprep.subr.bf16.mxu0 %v1793_v39  ;;  %v488_v38 = vld [vmem:[%s3373_s1 + $0x1f8] sm:$0xff]  ;;  %v348_v39 = vsel %vm314_vm0, %v343_v53, %v347_v14  ;;  %v494_v53 = vld [vmem:[%s3373_s1 + $0x228] sm:$0xff]  ;;  %v1871_v8 = vpack.c.bf16 %v487_v49, %v483_v48  ;;  %v1873_v25 = vpack.c.bf16 %v496_v61, %v492_v59  ;;  %v503_v49 = vld [vmem:[%s3373_s1 + $0x270] sm:$0xff] }
  0x5d   : > { %770 = vmatmul.mubr.f32.gmra.mrb[8].mxu0 %v334_v47  ;;  %1858 = vmatprep.subr.bf16.mxu1 %v1857_v43  ;;  %v2812_v43 = vld [vmem:[%s2422_s22 + $0x90] sm:$0xff]  ;;  %v352_v0 = vsel %vm314_vm0, %v347_v14, %v351_v41  ;;  %v508_v59 = vld [vmem:[%s3373_s1 + $0x298] sm:$0xff] }
  0x5e   : > { %943 = vmatmul.mubr.f32.gmra.mrb[8].mxu1 %v334_v47  ;;  %775 = vmatprep.mubr.f32.mxu0 %v340_v51  ;;  %v1805_v47 = vpack.c.bf16 %v486_v32, %v482_v31  ;;  %v491_v14 = vld [vmem:[%s3373_s1 + $0x210] sm:$0xff]  ;;  %v500_v32 = vld [vmem:[%s3373_s1 + $0x258] sm:$0xff] }
  0x5f   : > { %948 = vmatprep.mubr.f32.mxu1 %v340_v51  ;;  %1796 = vmatpush1.bf16.msra.mxu0 %v1795_v52  ;;  %v1869_v51 = vpack.c.bf16 %v488_v38, %v484_v35  ;;  %v490_v52 = vld [vmem:[%s3373_s1 + $0x208] sm:$0xff]  ;;  %v1875_v22 = vpack.c.bf16 %v495_v26, %v491_v14  ;;  %v512_v61 = vld [vmem:[%s3373_s1 + $0x2b8] sm:$0xff]  ;;  %v509_v14 = vld [vmem:[%s3373_s1 + $0x2a0] sm:$0xff] }
  0x60   : > { %1860 = vmatpush1.bf16.msra.mxu1 %v1859_v57  ;;  %1798 = vmatprep.subr.bf16.mxu0 %v1797_v58  ;;  %v346_v57 = vsel %vm314_vm0, %v341_v6, %v345_v34  ;;  %v349_v58 = vrot.slane %v2812_v43, 1  ;;  %v489_v6 = vld [vmem:[%s3373_s1 + $0x200] sm:$0xff]  ;;  %v1881_v26 = vpack.c.bf16 %v512_v61, %v508_v59  ;;  %v522_v59 = vld [vmem:[%s3373_s1 + $0x308] sm:$0xff] }
  0x61   : > { %776 = vmatmul.mubr.f32.gmra.mrb[10].mxu0 %v338_v5  ;;  %1862 = vmatprep.subr.bf16.mxu1 %v1861_v63  ;;  %v383_v63 = vrot.slane %v2836_v56, 1  ;;  %v526_v61 = vld [vmem:[%s3373_s1 + $0x328] sm:$0xff] }
  0x62   : > { %949 = vmatmul.mubr.f32.gmra.mrb[10].mxu1 %v338_v5  ;;  %781 = vmatprep.mubr.f32.mxu0 %v344_v10  ;;  %v2850_v5 = vld [vmem:[%s2422_s22 + $0xa0] sm:$0xff] }
  0x63   : > { %954 = vmatprep.mubr.f32.mxu1 %v344_v10  ;;  %1800 = vmatpush1.bf16.msra.mxu0 %v1799_v13  ;;  %v1809_v10 = vpack.c.bf16 %v494_v53, %v490_v52  ;;  %v493_v13 = vld [vmem:[%s3373_s1 + $0x220] sm:$0xff]  ;;  %v353_v31 = vrot.slane %v2850_v5, 1  ;;  %v510_v52 = vld [vmem:[%s3373_s1 + $0x2a8] sm:$0xff] }
  0x64   : > { %1864 = vmatpush1.bf16.msra.mxu1 %v1863_v23  ;;  %1802 = vmatprep.subr.bf16.mxu0 %v1801_v24  ;;  %v3377_v23 = vrot.slane %v2856_v7, 1  ;;  %v2873_v24 = vsel %vm314_vm0, %v383_v63, %v318_v20  ;;  %v350_v20 = vsel %vm314_vm0, %v345_v34, %v349_v58  ;;  %v356_v34 = vsel %vm314_vm0, %v351_v41, %v355_v4  ;;  %v499_v41 = vld [vmem:[%s3373_s1 + $0x250] sm:$0xff] }
  0x65   : > { %782 = vmatmul.mubr.f32.gmra.mrb[12].mxu0 %v342_v33  ;;  %1866 = vmatprep.subr.bf16.mxu1 %v1865_v29  ;;  %v498_v29 = vld [vmem:[%s3373_s1 + $0x248] sm:$0xff]  ;;  %v1811_v38 = vpack.c.bf16 %v493_v13, %v489_v6  ;;  %v354_v53 = vsel %vm314_vm0, %v349_v58, %v353_v31  ;;  %v505_v58 = vld [vmem:[%s3373_s1 + $0x280] sm:$0xff] }
  0x66   : > { %955 = vmatmul.mubr.f32.gmra.mrb[12].mxu1 %v342_v33  ;;  %787 = vmatprep.mubr.f32.mxu0 %v348_v39  ;;  %v504_v33 = vld [vmem:[%s3373_s1 + $0x278] sm:$0xff]  ;;  %v2897_v35 = vsel %vm314_vm0, %v3377_v23, %v315_v11  ;;  %v501_v11 = vld [vmem:[%s3373_s1 + $0x260] sm:$0xff] }
  0x67   : > { %960 = vmatprep.mubr.f32.mxu1 %v348_v39  ;;  %1804 = vmatpush1.bf16.msra.mxu0 %v1803_v40  ;;  %v359_v39 = vrot.slane %v2865_v17, 1  ;;  %v2902_v40 = vld [vmem:[%s2422_s22 + $0xb0] sm:$0xff]  ;;  %v1877_v48 = vpack.c.bf16 %v504_v33, %v500_v32 }
  0x68   : > { %1868 = vmatpush1.bf16.msra.mxu1 %v1867_v46  ;;  %1806 = vmatprep.subr.bf16.mxu0 %v1805_v47  ;;  %v1813_v46 = vpack.c.bf16 %v502_v30, %v498_v29  ;;  %v2914_v47 = vld [vmem:[%s2422_s22 + $0xc8] sm:$0xff]  ;;  %v511_v29 = vld [vmem:[%s3373_s1 + $0x2b0] sm:$0xff] }
  0x69   : > { %788 = vmatmul.mubr.f32.gmra.mrb[14].mxu0 %v346_v57  ;;  %1870 = vmatprep.subr.bf16.mxu1 %v1869_v51  ;;  %v506_v51 = vld [vmem:[%s3373_s1 + $0x288] sm:$0xff]  ;;  %v363_v6 = vrot.slane %v2914_v47, 1 }
  0x6a   : > { %961 = vmatmul.mubr.f32.gmra.mrb[14].mxu1 %v346_v57  ;;  %793 = vmatprep.mubr.f32.mxu0 %v352_v0  ;;  %v357_v57 = vrot.slane %v2902_v40, 1  ;;  %v1817_v13 = vpack.c.bf16 %v510_v52, %v506_v51  ;;  %v514_v30 = vld [vmem:[%s3373_s1 + $0x2c8] sm:$0xff]  ;;  %v517_v51 = vld [vmem:[%s3373_s1 + $0x2e0] sm:$0xff] }
  0x6b   : > { %966 = vmatprep.mubr.f32.mxu1 %v352_v0  ;;  %1808 = vmatpush1.bf16.msra.mxu0 %v1807_v3  ;;  %v360_v0 = vsel %vm314_vm0, %v355_v4, %v359_v39  ;;  %v1815_v3 = vpack.c.bf16 %v501_v11, %v497_v44  ;;  %v507_v4 = vld [vmem:[%s3373_s1 + $0x290] sm:$0xff]  ;;  %v364_v44 = vsel %vm314_vm0, %v359_v39, %v363_v6 }
  0x6c   : > { %1872 = vmatpush1.bf16.msra.mxu1 %v1871_v8  ;;  %1810 = vmatprep.subr.bf16.mxu0 %v1809_v10  ;;  %v2936_v8 = vld [vmem:[%s2422_s22 + $0xc0] sm:$0xff]  ;;  %v1879_v10 = vpack.c.bf16 %v503_v49, %v499_v41  ;;  %v358_v32 = vsel %vm314_vm0, %v353_v31, %v357_v57  ;;  %v2970_v11 = vld [vmem:[%s2422_s22 + $0xd0] sm:$0xff]  ;;  %v2973_v31 = vld [vmem:[%s2422_s22 + $0xe8] sm:$0xff]  ;;  %v1883_v41 = vpack.c.bf16 %v511_v29, %v507_v4 }
  0x6d   : > { %794 = vmatmul.mubr.f32.gmra.mrb[16].mxu0 %v350_v20  ;;  %1874 = vmatprep.subr.bf16.mxu1 %v1873_v25  ;;  %v2948_v25 = vld [vmem:[%s2422_s22 + $0xd8] sm:$0xff]  ;;  %v361_v33 = vrot.slane %v2936_v8, 1  ;;  %v513_v49 = vld [vmem:[%s3373_s1 + $0x2c0] sm:$0xff]  ;;  %v515_v39 = vld [vmem:[%s3373_s1 + $0x2d0] sm:$0xff] }
  0x6e   : > { %967 = vmatmul.mubr.f32.gmra.mrb[16].mxu1 %v350_v20  ;;  %799 = vmatprep.mubr.f32.mxu0 %v356_v34  ;;  %v518_v20 = vld [vmem:[%s3373_s1 + $0x2e8] sm:$0xff]  ;;  %v1823_v4 = vpack.c.bf16 %v517_v51, %v513_v49  ;;  %v532_v49 = vld [vmem:[%s3373_s1 + $0x358] sm:$0xff] }
  0x6f   : > { %972 = vmatprep.mubr.f32.mxu1 %v356_v34  ;;  %1812 = vmatpush1.bf16.msra.mxu0 %v1811_v38  ;;  %v516_v34 = vld [vmem:[%s3373_s1 + $0x2d8] sm:$0xff] }
  0x70   : > { %1876 = vmatpush1.bf16.msra.mxu1 %v1875_v22  ;;  %1814 = vmatprep.subr.bf16.mxu0 %v1813_v46  ;;  %v520_v38 = vld [vmem:[%s3373_s1 + $0x2f8] sm:$0xff]  ;;  %v1819_v22 = vpack.c.bf16 %v509_v14, %v505_v58  ;;  %v367_v46 = vrot.slane %v2948_v25, 1  ;;  %v371_v14 = vrot.slane %v2973_v31, 1 }
  0x71   : > { %800 = vmatmul.mubr.f32.gmra.mrb[18].mxu0 %v354_v53  ;;  %1878 = vmatprep.subr.bf16.mxu1 %v1877_v48  ;;  %v1821_v48 = vpack.c.bf16 %v518_v20, %v514_v30  ;;  %v1885_v52 = vpack.c.bf16 %v520_v38, %v516_v34  ;;  %v524_v58 = vld [vmem:[%s3373_s1 + $0x318] sm:$0xff]  ;;  %v1825_v30 = vpack.c.bf16 %v526_v61, %v522_v59  ;;  %v521_v20 = vld [vmem:[%s3373_s1 + $0x300] sm:$0xff]  ;;  %v527_v38 = vld [vmem:[%s3373_s1 + $0x330] sm:$0xff] }
  0x72   : > { %973 = vmatmul.mubr.f32.gmra.mrb[18].mxu1 %v354_v53  ;;  %805 = vmatprep.mubr.f32.mxu0 %v360_v0  ;;  %v519_v53 = vld [vmem:[%s3373_s1 + $0x2f0] sm:$0xff]  ;;  %v536_v51 = vld [vmem:[%s3373_s1 + $0x378] sm:$0xff] }
  0x73   : > { %978 = vmatprep.mubr.f32.mxu1 %v360_v0  ;;  %1816 = vmatpush1.bf16.msra.mxu0 %v1815_v3  ;;  %v362_v0 = vsel %vm314_vm0, %v357_v57, %v361_v33  ;;  %v365_v3 = vrot.slane %v2970_v11, 1  ;;  %v3007_v57 = vld [vmem:[%s2422_s22 + $0xf8] sm:$0xff]  ;;  %v1887_v29 = vpack.c.bf16 %v519_v53, %v515_v39  ;;  %v372_v39 = vsel %vm314_vm0, %v367_v46, %v371_v14  ;;  %v3038_v59 = vld [vmem:[%s2422_s22 + $0xf0] sm:$0xff] }
  0x74   : > { %1880 = vmatpush1.bf16.msra.mxu1 %v1879_v10  ;;  %1818 = vmatprep.subr.bf16.mxu0 %v1817_v13  ;;  %v528_v10 = vld [vmem:[%s3373_s1 + $0x338] sm:$0xff]  ;;  %v368_v13 = vsel %vm314_vm0, %v363_v6, %v367_v46  ;;  %v523_v6 = vld [vmem:[%s3373_s1 + $0x310] sm:$0xff]  ;;  %v533_v46 = vld [vmem:[%s3373_s1 + $0x360] sm:$0xff] }
  0x75   : > { %806 = vmatmul.mubr.f32.gmra.mrb[20].mxu0 %v358_v32  ;;  %1882 = vmatprep.subr.bf16.mxu1 %v1881_v26  ;;  %v3004_v26 = vld [vmem:[%s2422_s22 + $0xe0] sm:$0xff]  ;;  %v1889_v34 = vpack.c.bf16 %v528_v10, %v524_v58  ;;  %v1891_v61 = vpack.c.bf16 %v527_v38, %v523_v6  ;;  %v531_v10 = vld [vmem:[%s3373_s1 + $0x350] sm:$0xff]  ;;  %v540_v6 = vld [vmem:[%s3373_s1 + $0x398] sm:$0xff] }
  0x76   : > { %979 = vmatmul.mubr.f32.gmra.mrb[20].mxu1 %v358_v32  ;;  %811 = vmatprep.mubr.f32.mxu0 %v364_v44  ;;  %v525_v32 = vld [vmem:[%s3373_s1 + $0x320] sm:$0xff] }
  0x77   : > { %984 = vmatprep.mubr.f32.mxu1 %v364_v44  ;;  %1820 = vmatpush1.bf16.msra.mxu0 %v1819_v22  ;;  %v530_v44 = vld [vmem:[%s3373_s1 + $0x348] sm:$0xff]  ;;  %v1827_v53 = vpack.c.bf16 %v525_v32, %v521_v20  ;;  %v529_v58 = vld [vmem:[%s3373_s1 + $0x340] sm:$0xff]  ;;  %v373_v32 = vrot.slane %v3038_v59, 1 }
  0x78   : > { %1884 = vmatpush1.bf16.msra.mxu1 %v1883_v41  ;;  %1822 = vmatprep.subr.bf16.mxu0 %v1821_v48  ;;  %v534_v22 = vld [vmem:[%s3373_s1 + $0x368] sm:$0xff]  ;;  %v366_v41 = vsel %vm314_vm0, %v361_v33, %v365_v3  ;;  %v369_v48 = vrot.slane %v3004_v26, 1 }
  0x79   : > { %812 = vmatmul.mubr.f32.gmra.mrb[22].mxu0 %v362_v0  ;;  %1886 = vmatprep.subr.bf16.mxu1 %v1885_v52  ;;  %v375_v52 = vrot.slane %v3007_v57, 1  ;;  %v3041_v33 = vld [vmem:[%s2422_s22 + $0x108] sm:$0xff] }
  0x7a   : > { %985 = vmatmul.mubr.f32.gmra.mrb[22].mxu1 %v362_v0  ;;  %817 = vmatprep.mubr.f32.mxu0 %v368_v13  ;;  %v1829_v0 = vpack.c.bf16 %v534_v22, %v530_v44  ;;  %v370_v20 = vsel %vm314_vm0, %v365_v3, %v369_v48  ;;  %v379_v44 = vrot.slane %v3041_v33, 1  ;;  %v3072_v22 = vld [vmem:[%s2422_s22 + $0x100] sm:$0xff]  ;;  %s1646_s22 = sshll.u32 %s2220_s24, 3 }
  0x7b   : > { %990 = vmatprep.mubr.f32.mxu1 %v368_v13  ;;  %1824 = vmatpush1.bf16.msra.mxu0 %v1823_v4  ;;  %v1893_v13 = vpack.c.bf16 %v536_v51, %v532_v49  ;;  %v535_v4 = vld [vmem:[%s3373_s1 + $0x370] sm:$0xff]  ;;  %v376_v38 = vsel %vm314_vm0, %v371_v14, %v375_v52  ;;  %v537_v51 = vld [vmem:[%s3373_s1 + $0x380] sm:$0xff]  ;;  %s3211_s12 = scalar_lea.vmem %s3376_s4, %s1646_s22 }
  0x7c   : > { %1888 = vmatpush1.bf16.msra.mxu1 %v1887_v29  ;;  %1826 = vmatprep.subr.bf16.mxu0 %v1825_v30  ;;  %v538_v29 = vld [vmem:[%s3373_s1 + $0x388] sm:$0xff]  ;;  %v1895_v3 = vpack.c.bf16 %v535_v4, %v531_v10  ;;  %v539_v14 = vld [vmem:[%s3373_s1 + $0x390] sm:$0xff]  ;;  %v377_v10 = vrot.slane %v3072_v22, 1  ;;  %v552_v4 = vld [vmem:[%s3373_s1 + $0x3f8] sm:$0xff] }
  0x7d   : > { %818 = vmatmul.mubr.f32.gmra.mrb[24].mxu0 %v366_v41  ;;  %1890 = vmatprep.subr.bf16.mxu1 %v1889_v34  ;;  %v542_v30 = vld [vmem:[%s3373_s1 + $0x3a8] sm:$0xff]  ;;  %v544_v34 = vld [vmem:[%s3373_s1 + $0x3b8] sm:$0xff] }
  0x7e   : > { %991 = vmatmul.mubr.f32.gmra.mrb[24].mxu1 %v366_v41  ;;  %823 = vmatprep.mubr.f32.mxu0 %v372_v39  ;;  %v1831_v41 = vpack.c.bf16 %v533_v46, %v529_v58  ;;  %v1833_v49 = vpack.c.bf16 %v542_v30, %v538_v29  ;;  %v550_v58 = vld [vmem:[%s3373_s1 + $0x3e8] sm:$0xff]  ;;  %v374_v46 = vsel %vm314_vm0, %v369_v48, %v373_v32  ;;  %v545_v48 = vld [vmem:[%s3373_s1 + $0x3c0] sm:$0xff] }
  0x7f   : > { %996 = vmatprep.mubr.f32.mxu1 %v372_v39  ;;  %1828 = vmatpush1.bf16.msra.mxu0 %v1827_v53  ;;  %v541_v39 = vld [vmem:[%s3373_s1 + $0x3a0] sm:$0xff]  ;;  %v1897_v53 = vpack.c.bf16 %v544_v34, %v540_v6  ;;  %v380_v29 = vsel %vm314_vm0, %v375_v52, %v379_v44  ;;  %v547_v52 = vld [vmem:[%s3373_s1 + $0x3d0] sm:$0xff] }
  0x80   : > { %1892 = vmatpush1.bf16.msra.mxu1 %v1891_v61  ;;  %1830 = vmatprep.subr.bf16.mxu0 %v1829_v0  ;;  %v543_v61 = vld [vmem:[%s3373_s1 + $0x3b0] sm:$0xff]  ;;  %v546_v0 = vld [vmem:[%s3373_s1 + $0x3c8] sm:$0xff]  ;;  %v1835_v30 = vpack.c.bf16 %v541_v39, %v537_v51  ;;  %v549_v34 = vld [vmem:[%s3373_s1 + $0x3e0] sm:$0xff]  ;;  %v3379_v39 = vrot.slane %v2856_v7, 1 }
  0x81   : > { %824 = vmatmul.mubr.f32.gmra.mrb[26].mxu0 %v370_v20  ;;  %1894 = vmatprep.subr.bf16.mxu1 %v1893_v13  ;;  %v548_v13 = vld [vmem:[%s3373_s1 + $0x3d8] sm:$0xff]  ;;  %v1837_v6 = vpack.c.bf16 %v550_v58, %v546_v0 }
  0x82   : > { %997 = vmatmul.mubr.f32.gmra.mrb[26].mxu1 %v370_v20  ;;  %829 = vmatprep.mubr.f32.mxu0 %v376_v38  ;;  %v1899_v20 = vpack.c.bf16 %v543_v61, %v539_v14  ;;  %v1901_v23 = vpack.c.bf16 %v552_v4, %v548_v13  ;;  %v382_v14 = vsel %vm314_vm0, %v377_v10, %v3379_v39 }
  0x83   : > { %1002 = vmatprep.mubr.f32.mxu1 %v376_v38  ;;  %1832 = vmatpush1.bf16.msra.mxu0 %v1831_v41  ;;  %v551_v38 = vld [vmem:[%s3373_s1 + $0x3f0] sm:$0xff]  ;;  %v378_v41 = vsel %vm314_vm0, %v373_v32, %v377_v10 }
  0x84   : > { %1896 = vmatpush1.bf16.msra.mxu1 %v1895_v3  ;;  %1834 = vmatprep.subr.bf16.mxu0 %v1833_v49  ;;  %v384_v3 = vsel %vm314_vm0, %v379_v44, %v383_v63  ;;  %v1839_v49 = vpack.c.bf16 %v549_v34, %v545_v48  ;;  %v1903_v51 = vpack.c.bf16 %v551_v38, %v547_v52 }
  0x85   : > { %830 = vmatmul.mubr.f32.gmra.mrb[28].mxu0 %v374_v46  ;;  %1898 = vmatprep.subr.bf16.mxu1 %v1897_v53 }
  0x86   : > { %1003 = vmatmul.mubr.f32.gmra.mrb[28].mxu1 %v374_v46  ;;  %835 = vmatprep.mubr.f32.mxu0 %v380_v29 }
  0x87   : > { %1008 = vmatprep.mubr.f32.mxu1 %v380_v29  ;;  %1836 = vmatpush1.bf16.msra.mxu0 %v1835_v30 }
  0x88   : > { %1900 = vmatpush1.bf16.msra.mxu1 %v1899_v20  ;;  %1838 = vmatprep.subr.bf16.mxu0 %v1837_v6 }
  0x89   : > { %836 = vmatmul.mubr.f32.gmra.mrb[30].mxu0 %v378_v41  ;;  %1902 = vmatprep.subr.bf16.mxu1 %v1901_v23 }
  0x8a   : > { %1009 = vmatmul.mubr.f32.gmra.mrb[30].mxu1 %v378_v41  ;;  %841 = vmatprep.mubr.f32.mxu0 %v384_v3 }
  0x8b   : > { %1014 = vmatprep.mubr.f32.mxu1 %v384_v3  ;;  %1840 = vmatpush1.bf16.msra.mxu0 %v1839_v49 }
  0x8c   : > { %1904 = vmatpush1.bf16.msra.mxu1 %v1903_v51 }
  0x8d   : > { %842 = vmatmul.mubr.f32.gmra.mrb[32].mxu0 %v382_v14 }
  0x8e   : > { %1015 = vmatmul.mubr.f32.gmra.mrb[32].mxu1 %v382_v14  ;;  %847 = vmatprep.mubr.f32.mxu0 %v2873_v24 }
  0x8f   : > { %1020 = vmatprep.mubr.f32.mxu1 %v2873_v24 }
  0x91   : > { %848 = vmatmul.mubr.f32.gmra.mrb[34].mxu0 %v2897_v35 }
  0x92   : > { %1021 = vmatmul.mubr.f32.gmra.mrb[34].mxu1 %v2897_v35  ;;  %1091 = vmatprep.mubr.f32.mxu0 %v2443_v16 }
  0x93   : > { %1264 = vmatprep.mubr.f32.mxu1 %v2443_v16  ;;  %v1375_v16 = vlaneseq }
  0x95   : > { %1092 = vmatmul.mubr.f32.vlgmr.msra.gmra.mrb[0].mxu0 %v2543_v1 }
  0x96   : > { %1265 = vmatmul.mubr.f32.vlgmr.msra.gmra.mrb[0].mxu1 %v2543_v1  ;;  %1097 = vmatprep.mubr.f32.mxu0 %v2452_v19 }
  0x97   : > { %1270 = vmatprep.mubr.f32.mxu1 %v2452_v19  ;;  %v1376_v19 = vshrl.u32 %v1375_v16, 7 }
  0x99   : > { %1098 = vmatmul.mubr.f32.gmra.mrb[2].mxu0 %v2546_v2  ;;  %v1377_v1 = vsub.s32 0, %v1376_v19 }
  0x9a   : > { %1271 = vmatmul.mubr.f32.gmra.mrb[2].mxu1 %v2546_v2  ;;  %1103 = vmatprep.mubr.f32.mxu0 %v2564_v9  ;;  %v1373_v2 = vld [vmem:[%s3375_s3] sm:$0xf] }
  0x9b   : > { %1276 = vmatprep.mubr.f32.mxu1 %v2564_v9  ;;  %v1385_v9 = vsub.s32 2, %v1376_v19 }
  0x9d   : > { %1104 = vmatmul.mubr.f32.gmra.mrb[4].mxu0 %v2575_v18 }
  0x9e   : > { %1277 = vmatmul.mubr.f32.gmra.mrb[4].mxu1 %v2575_v18  ;;  %1109 = vmatprep.mubr.f32.mxu0 %v2591_v28  ;;  %v1381_v18 = vsub.s32 1, %v1376_v19 }
  0x9f   : > { %1282 = vmatprep.mubr.f32.mxu1 %v2591_v28  ;;  %v1389_v28 = vsub.s32 3, %v1376_v19 }
  0xa1   : > { %1110 = vmatmul.mubr.f32.gmra.mrb[6].mxu0 %v2610_v37 }
  0xa2   : > { %1283 = vmatmul.mubr.f32.gmra.mrb[6].mxu1 %v2610_v37  ;;  %1115 = vmatprep.mubr.f32.mxu0 %v2629_v45  ;;  %v3200_v37 = vrot.slane %v1373_v2, %v1377_v1 }
  0xa3   : > { %1288 = vmatprep.mubr.f32.mxu1 %v2629_v45  ;;  %v3202_v45 = vrot.slane %v1373_v2, %v1385_v9 }
  0xa5   : > { %1116 = vmatmul.mubr.f32.gmra.mrb[8].mxu0 %v2646_v54 }
  0xa6   : > { %1289 = vmatmul.mubr.f32.gmra.mrb[8].mxu1 %v2646_v54  ;;  %1121 = vmatprep.mubr.f32.mxu0 %v2657_v60  ;;  %v3204_v54 = vrot.slane %v1373_v2, %v1381_v18 }
  0xa7   : > { %1294 = vmatprep.mubr.f32.mxu1 %v2657_v60  ;;  %v3206_v60 = vrot.slane %v1373_v2, %v1389_v28 }
  0xa9   : > { %1122 = vmatmul.mubr.f32.gmra.mrb[10].mxu0 %v2678_v12 }
  0xaa   : > { %1295 = vmatmul.mubr.f32.gmra.mrb[10].mxu1 %v2678_v12  ;;  %1127 = vmatprep.mubr.f32.mxu0 %v2688_v21 }
  0xab   : > { %1300 = vmatprep.mubr.f32.mxu1 %v2688_v21 }
  0xad   : > { %1128 = vmatmul.mubr.f32.gmra.mrb[12].mxu0 %v2713_v36 }
  0xae   : > { %1301 = vmatmul.mubr.f32.gmra.mrb[12].mxu1 %v2713_v36  ;;  %1133 = vmatprep.mubr.f32.mxu0 %v2722_v42 }
  0xaf   : > { %1306 = vmatprep.mubr.f32.mxu1 %v2722_v42 }
  0xb1   : > { %1134 = vmatmul.mubr.f32.gmra.mrb[14].mxu0 %v2744_v55 }
  0xb2   : > { %1307 = vmatmul.mubr.f32.gmra.mrb[14].mxu1 %v2744_v55  ;;  %1139 = vmatprep.mubr.f32.mxu0 %v2756_v62 }
  0xb3   : > { %1312 = vmatprep.mubr.f32.mxu1 %v2756_v62 }
  0xb5   : > { %1140 = vmatmul.mubr.f32.gmra.mrb[16].mxu0 %v2778_v15 }
  0xb6   : > { %1313 = vmatmul.mubr.f32.gmra.mrb[16].mxu1 %v2778_v15  ;;  %1145 = vmatprep.mubr.f32.mxu0 %v2790_v27 }
  0xb7   : > { %1318 = vmatprep.mubr.f32.mxu1 %v2790_v27 }
  0xb9   : > { %1146 = vmatmul.mubr.f32.gmra.mrb[18].mxu0 %v2812_v43 }
  0xba   : > { %1319 = vmatmul.mubr.f32.gmra.mrb[18].mxu1 %v2812_v43  ;;  %1151 = vmatprep.mubr.f32.mxu0 %v2827_v50 }
  0xbb   : > { %1324 = vmatprep.mubr.f32.mxu1 %v2827_v50 }
  0xbd   : > { %1152 = vmatmul.mubr.f32.gmra.mrb[20].mxu0 %v2850_v5 }
  0xbe   : > { %1325 = vmatmul.mubr.f32.gmra.mrb[20].mxu1 %v2850_v5  ;;  %1157 = vmatprep.mubr.f32.mxu0 %v2865_v17 }
  0xbf   : > { %1330 = vmatprep.mubr.f32.mxu1 %v2865_v17 }
  0xc1   : > { %1158 = vmatmul.mubr.f32.gmra.mrb[22].mxu0 %v2902_v40 }
  0xc2   : > { %1331 = vmatmul.mubr.f32.gmra.mrb[22].mxu1 %v2902_v40  ;;  %1163 = vmatprep.mubr.f32.mxu0 %v2914_v47 }
  0xc3   : > { %1336 = vmatprep.mubr.f32.mxu1 %v2914_v47 }
  0xc5   : > { %1164 = vmatmul.mubr.f32.gmra.mrb[24].mxu0 %v2936_v8 }
  0xc6   : > { %1337 = vmatmul.mubr.f32.gmra.mrb[24].mxu1 %v2936_v8  ;;  %1169 = vmatprep.mubr.f32.mxu0 %v2948_v25 }
  0xc7   : > { %1342 = vmatprep.mubr.f32.mxu1 %v2948_v25 }
  0xc9   : > { %1170 = vmatmul.mubr.f32.gmra.mrb[26].mxu0 %v2970_v11 }
  0xca   : > { %1343 = vmatmul.mubr.f32.gmra.mrb[26].mxu1 %v2970_v11  ;;  %1175 = vmatprep.mubr.f32.mxu0 %v2973_v31 }
  0xcb   : > { %1348 = vmatprep.mubr.f32.mxu1 %v2973_v31 }
  0xcd   : > { %1176 = vmatmul.mubr.f32.gmra.mrb[28].mxu0 %v3004_v26 }
  0xce   : > { %1349 = vmatmul.mubr.f32.gmra.mrb[28].mxu1 %v3004_v26  ;;  %1181 = vmatprep.mubr.f32.mxu0 %v3007_v57 }
  0xcf   : > { %1354 = vmatprep.mubr.f32.mxu1 %v3007_v57 }
  0xd1   : > { %1182 = vmatmul.mubr.f32.gmra.mrb[30].mxu0 %v3038_v59 }
  0xd2   : > { %1355 = vmatmul.mubr.f32.gmra.mrb[30].mxu1 %v3038_v59  ;;  %1187 = vmatprep.mubr.f32.mxu0 %v3041_v33 }
  0xd3   : > { %1360 = vmatprep.mubr.f32.mxu1 %v3041_v33 }
  0xd5   : > { %1188 = vmatmul.mubr.f32.gmra.mrb[32].mxu0 %v3072_v22 }
  0xd6   : > { %1361 = vmatmul.mubr.f32.gmra.mrb[32].mxu1 %v3072_v22  ;;  %1193 = vmatprep.mubr.f32.mxu0 %v2836_v56 }
  0xd7   : > { %1366 = vmatprep.mubr.f32.mxu1 %v2836_v56 }
  0xd9   : > { %1194 = vmatmul.mubr.f32.gmra.mrb[34].mxu0 %v2856_v7 }
  0xda   : > { %1367 = vmatmul.mubr.f32.gmra.mrb[34].mxu1 %v2856_v7 }
 0x168   : > { %v1093_v12 = vpop.f32.mrb[0].mxu0 }
 0x169   : > { %v1395_v21 = vadd.f32 %v3200_v37, %v1093_v12  ;;  %v1266_v36 = vpop.f32.mrb[0].mxu1  ;;  %v1095_v42 = vpop.f32.mrb[1].mxu0 }
 0x16a   : > { %v1397_v55 = vadd.f32 %v3202_v45, %v1266_v36  ;;  %v1396_v62 = vadd.f32 %v3204_v54, %v1095_v42  ;;  %v1268_v15 = vpop.f32.mrb[1].mxu1 }
 0x16b   : > { %1467 = vst [vmem:[%s3211_s12] sm:$0xff] %v1395_v21  ;;  %v1398_v27 = vadd.f32 %v3206_v60, %v1268_v15 }
 0x16c   : > { %1469 = vst [vmem:[%s3211_s12 + $0x10] sm:$0xff] %v1397_v55  ;;  %1468 = vst [vmem:[%s3211_s12 + $0x8] sm:$0xff] %v1396_v62  ;;  %v1099_v43 = vpop.f32.mrb[2].mxu0 }
 0x16d   : > { %1470 = vst [vmem:[%s3211_s12 + $0x18] sm:$0xff] %v1398_v27  ;;  %v1399_v50 = vadd.f32 %v3200_v37, %v1099_v43  ;;  %v1272_v56 = vpop.f32.mrb[2].mxu1  ;;  %v1101_v63 = vpop.f32.mrb[3].mxu0 }
 0x16e   : > { %v1401_v5 = vadd.f32 %v3202_v45, %v1272_v56  ;;  %v1400_v7 = vadd.f32 %v3204_v54, %v1101_v63  ;;  %v1274_v17 = vpop.f32.mrb[3].mxu1 }
 0x16f   : > { %1471 = vst [vmem:[%s3211_s12 + $0x20] sm:$0xff] %v1399_v50  ;;  %v1402_v23 = vadd.f32 %v3206_v60, %v1274_v17 }
 0x170   : > { %1473 = vst [vmem:[%s3211_s12 + $0x30] sm:$0xff] %v1401_v5  ;;  %1472 = vst [vmem:[%s3211_s12 + $0x28] sm:$0xff] %v1400_v7  ;;  %v1105_v24 = vpop.f32.mrb[4].mxu0 }
 0x171   : > { %1474 = vst [vmem:[%s3211_s12 + $0x38] sm:$0xff] %v1402_v23  ;;  %v1403_v35 = vadd.f32 %v3200_v37, %v1105_v24  ;;  %v1278_v40 = vpop.f32.mrb[4].mxu1  ;;  %v1107_v47 = vpop.f32.mrb[5].mxu0 }
 0x172   : > { %v1405_v8 = vadd.f32 %v3202_v45, %v1278_v40  ;;  %v1404_v25 = vadd.f32 %v3204_v54, %v1107_v47  ;;  %v1280_v11 = vpop.f32.mrb[5].mxu1 }
 0x173   : > { %1475 = vst [vmem:[%s3211_s12 + $0x40] sm:$0xff] %v1403_v35  ;;  %v1406_v31 = vadd.f32 %v3206_v60, %v1280_v11 }
 0x174   : > { %1477 = vst [vmem:[%s3211_s12 + $0x50] sm:$0xff] %v1405_v8  ;;  %1476 = vst [vmem:[%s3211_s12 + $0x48] sm:$0xff] %v1404_v25  ;;  %v1111_v26 = vpop.f32.mrb[6].mxu0 }
 0x175   : > { %1478 = vst [vmem:[%s3211_s12 + $0x58] sm:$0xff] %v1406_v31  ;;  %v1407_v57 = vadd.f32 %v3200_v37, %v1111_v26  ;;  %v1284_v59 = vpop.f32.mrb[6].mxu1  ;;  %v1113_v33 = vpop.f32.mrb[7].mxu0 }
 0x176   : > { %v1409_v32 = vadd.f32 %v3202_v45, %v1284_v59  ;;  %v1408_v44 = vadd.f32 %v3204_v54, %v1113_v33  ;;  %v1286_v22 = vpop.f32.mrb[7].mxu1 }
 0x177   : > { %1479 = vst [vmem:[%s3211_s12 + $0x60] sm:$0xff] %v1407_v57  ;;  %v1410_v53 = vadd.f32 %v3206_v60, %v1286_v22 }
 0x178   : > { %1481 = vst [vmem:[%s3211_s12 + $0x70] sm:$0xff] %v1409_v32  ;;  %1480 = vst [vmem:[%s3211_s12 + $0x68] sm:$0xff] %v1408_v44  ;;  %v1117_v61 = vpop.f32.mrb[8].mxu0 }
 0x179   : > { %1482 = vst [vmem:[%s3211_s12 + $0x78] sm:$0xff] %v1410_v53  ;;  %v1411_v0 = vadd.f32 %v3200_v37, %v1117_v61  ;;  %v1290_v58 = vpop.f32.mrb[8].mxu1  ;;  %v1119_v46 = vpop.f32.mrb[9].mxu0 }
 0x17a   : > { %v1413_v10 = vadd.f32 %v3202_v45, %v1290_v58  ;;  %v1412_v13 = vadd.f32 %v3204_v54, %v1119_v46  ;;  %v1292_v4 = vpop.f32.mrb[9].mxu1 }
 0x17b   : > { %1483 = vst [vmem:[%s3211_s12 + $0x80] sm:$0xff] %v1411_v0  ;;  %v1414_v29 = vadd.f32 %v3206_v60, %v1292_v4 }
 0x17c   : > { %1485 = vst [vmem:[%s3211_s12 + $0x90] sm:$0xff] %v1413_v10  ;;  %1484 = vst [vmem:[%s3211_s12 + $0x88] sm:$0xff] %v1412_v13  ;;  %v1123_v30 = vpop.f32.mrb[10].mxu0 }
 0x17d   : > { %1486 = vst [vmem:[%s3211_s12 + $0x98] sm:$0xff] %v1414_v29  ;;  %v1415_v20 = vadd.f32 %v3200_v37, %v1123_v30  ;;  %v1296_v6 = vpop.f32.mrb[10].mxu1  ;;  %v1125_v48 = vpop.f32.mrb[11].mxu0 }
 0x17e   : > { %v1417_v34 = vadd.f32 %v3202_v45, %v1296_v6  ;;  %v1416_v52 = vadd.f32 %v3204_v54, %v1125_v48  ;;  %v1298_v38 = vpop.f32.mrb[11].mxu1 }
 0x17f   : > { %1487 = vst [vmem:[%s3211_s12 + $0xa0] sm:$0xff] %v1415_v20  ;;  %v1418_v41 = vadd.f32 %v3206_v60, %v1298_v38 }
 0x180   : > { %1489 = vst [vmem:[%s3211_s12 + $0xb0] sm:$0xff] %v1417_v34  ;;  %1488 = vst [vmem:[%s3211_s12 + $0xa8] sm:$0xff] %v1416_v52  ;;  %v1129_v3 = vpop.f32.mrb[12].mxu0 }
 0x181   : > { %1490 = vst [vmem:[%s3211_s12 + $0xb8] sm:$0xff] %v1418_v41  ;;  %v1419_v49 = vadd.f32 %v3200_v37, %v1129_v3  ;;  %v1302_v51 = vpop.f32.mrb[12].mxu1  ;;  %v1131_v39 = vpop.f32.mrb[13].mxu0 }
 0x182   : > { %v1421_v14 = vadd.f32 %v3202_v45, %v1302_v51  ;;  %v1420_v16 = vadd.f32 %v3204_v54, %v1131_v39  ;;  %v1304_v19 = vpop.f32.mrb[13].mxu1 }
 0x183   : > { %1491 = vst [vmem:[%s3211_s12 + $0xc0] sm:$0xff] %v1419_v49  ;;  %v1422_v1 = vadd.f32 %v3206_v60, %v1304_v19 }
 0x184   : > { %1493 = vst [vmem:[%s3211_s12 + $0xd0] sm:$0xff] %v1421_v14  ;;  %1492 = vst [vmem:[%s3211_s12 + $0xc8] sm:$0xff] %v1420_v16  ;;  %v1135_v2 = vpop.f32.mrb[14].mxu0 }
 0x185   : > { %1494 = vst [vmem:[%s3211_s12 + $0xd8] sm:$0xff] %v1422_v1  ;;  %v1423_v9 = vadd.f32 %v3200_v37, %v1135_v2  ;;  %v1308_v18 = vpop.f32.mrb[14].mxu1  ;;  %v1137_v28 = vpop.f32.mrb[15].mxu0 }
 0x186   : > { %v1425_v12 = vadd.f32 %v3202_v45, %v1308_v18  ;;  %v1424_v21 = vadd.f32 %v3204_v54, %v1137_v28  ;;  %v1310_v36 = vpop.f32.mrb[15].mxu1 }
 0x187   : > { %1495 = vst [vmem:[%s3211_s12 + $0xe0] sm:$0xff] %v1423_v9  ;;  %v1426_v42 = vadd.f32 %v3206_v60, %v1310_v36 }
 0x188   : > { %1497 = vst [vmem:[%s3211_s12 + $0xf0] sm:$0xff] %v1425_v12  ;;  %1496 = vst [vmem:[%s3211_s12 + $0xe8] sm:$0xff] %v1424_v21  ;;  %v1141_v55 = vpop.f32.mrb[16].mxu0 }
 0x189   : > { %1498 = vst [vmem:[%s3211_s12 + $0xf8] sm:$0xff] %v1426_v42  ;;  %v1427_v62 = vadd.f32 %v3200_v37, %v1141_v55  ;;  %v1314_v15 = vpop.f32.mrb[16].mxu1  ;;  %v1143_v27 = vpop.f32.mrb[17].mxu0 }
 0x18a   : > { %v1429_v43 = vadd.f32 %v3202_v45, %v1314_v15  ;;  %v1428_v50 = vadd.f32 %v3204_v54, %v1143_v27  ;;  %v1316_v56 = vpop.f32.mrb[17].mxu1 }
 0x18b   : > { %1499 = vst [vmem:[%s3211_s12 + $0x100] sm:$0xff] %v1427_v62  ;;  %v1430_v63 = vadd.f32 %v3206_v60, %v1316_v56 }
 0x18c   : > { %1501 = vst [vmem:[%s3211_s12 + $0x110] sm:$0xff] %v1429_v43  ;;  %1500 = vst [vmem:[%s3211_s12 + $0x108] sm:$0xff] %v1428_v50  ;;  %v1147_v5 = vpop.f32.mrb[18].mxu0 }
 0x18d   : > { %1502 = vst [vmem:[%s3211_s12 + $0x118] sm:$0xff] %v1430_v63  ;;  %v1431_v7 = vadd.f32 %v3200_v37, %v1147_v5  ;;  %v1320_v17 = vpop.f32.mrb[18].mxu1  ;;  %v1149_v23 = vpop.f32.mrb[19].mxu0 }
 0x18e   : > { %v1433_v24 = vadd.f32 %v3202_v45, %v1320_v17  ;;  %v1432_v35 = vadd.f32 %v3204_v54, %v1149_v23  ;;  %v1322_v40 = vpop.f32.mrb[19].mxu1 }
 0x18f   : > { %1503 = vst [vmem:[%s3211_s12 + $0x120] sm:$0xff] %v1431_v7  ;;  %v1434_v47 = vadd.f32 %v3206_v60, %v1322_v40 }
 0x190   : > { %1505 = vst [vmem:[%s3211_s12 + $0x130] sm:$0xff] %v1433_v24  ;;  %1504 = vst [vmem:[%s3211_s12 + $0x128] sm:$0xff] %v1432_v35  ;;  %v1153_v8 = vpop.f32.mrb[20].mxu0 }
 0x191   : > { %1506 = vst [vmem:[%s3211_s12 + $0x138] sm:$0xff] %v1434_v47  ;;  %v1435_v25 = vadd.f32 %v3200_v37, %v1153_v8  ;;  %v1326_v11 = vpop.f32.mrb[20].mxu1  ;;  %v1155_v31 = vpop.f32.mrb[21].mxu0 }
 0x192   : > { %v1437_v26 = vadd.f32 %v3202_v45, %v1326_v11  ;;  %v1436_v57 = vadd.f32 %v3204_v54, %v1155_v31  ;;  %v1328_v59 = vpop.f32.mrb[21].mxu1 }
 0x193   : > { %1507 = vst [vmem:[%s3211_s12 + $0x140] sm:$0xff] %v1435_v25  ;;  %v1438_v33 = vadd.f32 %v3206_v60, %v1328_v59 }
 0x194   : > { %1509 = vst [vmem:[%s3211_s12 + $0x150] sm:$0xff] %v1437_v26  ;;  %1508 = vst [vmem:[%s3211_s12 + $0x148] sm:$0xff] %v1436_v57  ;;  %v1159_v32 = vpop.f32.mrb[22].mxu0 }
 0x195   : > { %1510 = vst [vmem:[%s3211_s12 + $0x158] sm:$0xff] %v1438_v33  ;;  %v1439_v44 = vadd.f32 %v3200_v37, %v1159_v32  ;;  %v1332_v22 = vpop.f32.mrb[22].mxu1  ;;  %v1161_v53 = vpop.f32.mrb[23].mxu0 }
 0x196   : > { %v1441_v61 = vadd.f32 %v3202_v45, %v1332_v22  ;;  %v1440_v0 = vadd.f32 %v3204_v54, %v1161_v53  ;;  %v1334_v58 = vpop.f32.mrb[23].mxu1 }
 0x197   : > { %1511 = vst [vmem:[%s3211_s12 + $0x160] sm:$0xff] %v1439_v44  ;;  %v1442_v46 = vadd.f32 %v3206_v60, %v1334_v58 }
 0x198   : > { %1513 = vst [vmem:[%s3211_s12 + $0x170] sm:$0xff] %v1441_v61  ;;  %1512 = vst [vmem:[%s3211_s12 + $0x168] sm:$0xff] %v1440_v0  ;;  %v1165_v10 = vpop.f32.mrb[24].mxu0 }
 0x199   : > { %1514 = vst [vmem:[%s3211_s12 + $0x178] sm:$0xff] %v1442_v46  ;;  %v1443_v13 = vadd.f32 %v3200_v37, %v1165_v10  ;;  %v1338_v4 = vpop.f32.mrb[24].mxu1  ;;  %v1167_v29 = vpop.f32.mrb[25].mxu0 }
 0x19a   : > { %v1445_v30 = vadd.f32 %v3202_v45, %v1338_v4  ;;  %v1444_v20 = vadd.f32 %v3204_v54, %v1167_v29  ;;  %v1340_v6 = vpop.f32.mrb[25].mxu1 }
 0x19b   : > { %1515 = vst [vmem:[%s3211_s12 + $0x180] sm:$0xff] %v1443_v13  ;;  %v1446_v48 = vadd.f32 %v3206_v60, %v1340_v6 }
 0x19c   : > { %1517 = vst [vmem:[%s3211_s12 + $0x190] sm:$0xff] %v1445_v30  ;;  %1516 = vst [vmem:[%s3211_s12 + $0x188] sm:$0xff] %v1444_v20  ;;  %v1171_v34 = vpop.f32.mrb[26].mxu0 }
 0x19d   : > { %1518 = vst [vmem:[%s3211_s12 + $0x198] sm:$0xff] %v1446_v48  ;;  %v1447_v52 = vadd.f32 %v3200_v37, %v1171_v34  ;;  %v1344_v38 = vpop.f32.mrb[26].mxu1  ;;  %v1173_v41 = vpop.f32.mrb[27].mxu0 }
 0x19e   : > { %v1449_v3 = vadd.f32 %v3202_v45, %v1344_v38  ;;  %v1448_v49 = vadd.f32 %v3204_v54, %v1173_v41  ;;  %v1346_v51 = vpop.f32.mrb[27].mxu1 }
 0x19f   : > { %1519 = vst [vmem:[%s3211_s12 + $0x1a0] sm:$0xff] %v1447_v52  ;;  %v1450_v39 = vadd.f32 %v3206_v60, %v1346_v51 }
 0x1a0   : > { %1521 = vst [vmem:[%s3211_s12 + $0x1b0] sm:$0xff] %v1449_v3  ;;  %1520 = vst [vmem:[%s3211_s12 + $0x1a8] sm:$0xff] %v1448_v49  ;;  %v1177_v14 = vpop.f32.mrb[28].mxu0 }
 0x1a1   : > { %1522 = vst [vmem:[%s3211_s12 + $0x1b8] sm:$0xff] %v1450_v39  ;;  %v1451_v16 = vadd.f32 %v3200_v37, %v1177_v14  ;;  %v1350_v19 = vpop.f32.mrb[28].mxu1  ;;  %v1179_v1 = vpop.f32.mrb[29].mxu0 }
 0x1a2   : > { %v1453_v2 = vadd.f32 %v3202_v45, %v1350_v19  ;;  %v1452_v9 = vadd.f32 %v3204_v54, %v1179_v1  ;;  %v1352_v18 = vpop.f32.mrb[29].mxu1 }
 0x1a3   : > { %1523 = vst [vmem:[%s3211_s12 + $0x1c0] sm:$0xff] %v1451_v16  ;;  %v1454_v28 = vadd.f32 %v3206_v60, %v1352_v18 }
 0x1a4   : > { %1525 = vst [vmem:[%s3211_s12 + $0x1d0] sm:$0xff] %v1453_v2  ;;  %1524 = vst [vmem:[%s3211_s12 + $0x1c8] sm:$0xff] %v1452_v9  ;;  %v1183_v12 = vpop.f32.mrb[30].mxu0 }
 0x1a5   : > { %1526 = vst [vmem:[%s3211_s12 + $0x1d8] sm:$0xff] %v1454_v28  ;;  %v1455_v21 = vadd.f32 %v3200_v37, %v1183_v12  ;;  %v1356_v36 = vpop.f32.mrb[30].mxu1  ;;  %v1185_v42 = vpop.f32.mrb[31].mxu0 }
 0x1a6   : > { %v1457_v55 = vadd.f32 %v3202_v45, %v1356_v36  ;;  %v1456_v62 = vadd.f32 %v3204_v54, %v1185_v42  ;;  %v1358_v15 = vpop.f32.mrb[31].mxu1 }
 0x1a7   : > { %1527 = vst [vmem:[%s3211_s12 + $0x1e0] sm:$0xff] %v1455_v21  ;;  %v1458_v27 = vadd.f32 %v3206_v60, %v1358_v15 }
 0x1a8   : > { %1529 = vst [vmem:[%s3211_s12 + $0x1f0] sm:$0xff] %v1457_v55  ;;  %1528 = vst [vmem:[%s3211_s12 + $0x1e8] sm:$0xff] %v1456_v62  ;;  %v1189_v43 = vpop.f32.mrb[32].mxu0 }
 0x1a9   : > { %1530 = vst [vmem:[%s3211_s12 + $0x1f8] sm:$0xff] %v1458_v27  ;;  %v1459_v50 = vadd.f32 %v3200_v37, %v1189_v43  ;;  %v1362_v56 = vpop.f32.mrb[32].mxu1  ;;  %v1191_v63 = vpop.f32.mrb[33].mxu0 }
 0x1aa   : > { %v1461_v5 = vadd.f32 %v3202_v45, %v1362_v56  ;;  %v1460_v7 = vadd.f32 %v3204_v54, %v1191_v63  ;;  %v1364_v17 = vpop.f32.mrb[33].mxu1 }
 0x1ab   : > { %1531 = vst [vmem:[%s3211_s12 + $0x200] sm:$0xff] %v1459_v50  ;;  %v1462_v23 = vadd.f32 %v3206_v60, %v1364_v17 }
 0x1ac   : > { %1533 = vst [vmem:[%s3211_s12 + $0x210] sm:$0xff] %v1461_v5  ;;  %1532 = vst [vmem:[%s3211_s12 + $0x208] sm:$0xff] %v1460_v7  ;;  %v1195_v24 = vpop.f32.mrb[34].mxu0 }
 0x1ad   : > { %1534 = vst [vmem:[%s3211_s12 + $0x218] sm:$0xff] %v1462_v23  ;;  %v1463_v35 = vadd.f32 %v3200_v37, %v1195_v24  ;;  %v1368_v40 = vpop.f32.mrb[34].mxu1  ;;  %v1197_v47 = vpop.f32.mrb[35].mxu0 }
 0x1ae   : > { %v1465_v8 = vadd.f32 %v3202_v45, %v1368_v40  ;;  %v1464_v25 = vadd.f32 %v3204_v54, %v1197_v47  ;;  %v1370_v11 = vpop.f32.mrb[35].mxu1 }
 0x1af   : > { %1535 = vst [vmem:[%s3211_s12 + $0x220] sm:$0xff] %v1463_v35  ;;  %v1466_v31 = vadd.f32 %v3206_v60, %v1370_v11 }
 0x1b0   : > { %1537 = vst [vmem:[%s3211_s12 + $0x230] sm:$0xff] %v1465_v8  ;;  %1536 = vst [vmem:[%s3211_s12 + $0x228] sm:$0xff] %v1464_v25 }
 0x1b1   : > { %1538 = vst [vmem:[%s3211_s12 + $0x238] sm:$0xff] %v1466_v31 }
 0x1b2 PF: > { %s14_s19 = sadd.s32 1, %s2057_s19   ;;  %s3380_s15 = smov %s2049_s17 }
 0x1b3   : > { %p11_p7 = scmp.ge.s32.totalorder %s14_s19, 8   ;;  %s3381_s16 = smov %s2053_s18 }
 0x1b4   : > { %s3382_s17 = smov %s3385_s20  ;;  %s3383_s18 = smov %s3389_s21 }
 0x1b5   :  { %13 = sbr.rel (!%p11_p7) target bundleno = 3 (0x3), region = 66 }

</bundles_post_ra>
